<compile_context>
chip_gen: v5e
topology: v5e:2x2
jax: 0.10.0
libtpu: 0.0.40
codegen_flags: <defaults>
</compile_context>

<pallas_src>
import functools
import math

import jax
import jax.numpy as jnp
from jax import lax
from jax.experimental import pallas as pl
from jax.experimental.pallas import tpu as pltpu


# ----------------------------------------------------------------------------- helpers
def _full_spec(shape):
    nd = len(shape)
    return pl.BlockSpec(shape, lambda *_: (0,) * nd)


def sinusoidal_pe(L, D):
    pos = jnp.arange(L, dtype=jnp.float32)[:, None]
    div = jnp.exp(jnp.arange(0, D, 2, dtype=jnp.float32) * (-math.log(10000.0) / D))
    pe = jnp.zeros((L, D), jnp.float32)
    pe = pe.at[:, 0::2].set(jnp.sin(pos * div))
    pe = pe.at[:, 1::2].set(jnp.cos(pos * div))
    return pe


# --------------------------------------------- fused context encoders (2x LSTM + combine_ctx)
def lstm_ctx_kernel(x_ref, wih_ref, whh_ref, b_ref, wctx_ref, bctx_ref, ctx_ref,
                    *, seq_len, batch, hidden):
    T, B, H = seq_len, batch, hidden

    # Hoisted input projection: one large matmul per encoder, OUTSIDE the recurrence.
    gx = [jnp.dot(x_ref[k].astype(jnp.bfloat16), wih_ref[k],
                  preferred_element_type=jnp.float32) for k in range(2)]      # 2 x (T*B, 4H) f32
    whh = [whh_ref[0], whh_ref[1]]                                            # (H, 4H) bf16
    bias = [b_ref[0], b_ref[1]]                                               # (1, 4H) f32

    h = [jnp.zeros((B, H), jnp.float32), jnp.zeros((B, H), jnp.float32)]
    c = [jnp.zeros((B, H), jnp.float32), jnp.zeros((B, H), jnp.float32)]

    # Fully unrolled recurrence (T is small): only h @ whh remains on the serial critical path.
    for t in range(T):
        for k in range(2):
            gh = jnp.dot(h[k].astype(jnp.bfloat16), whh[k],
                         preferred_element_type=jnp.float32)                   # (B, 4H)
            gates = gx[k][t * B:(t + 1) * B, :] + gh + bias[k]
            i = jax.nn.sigmoid(gates[:, 0 * H:1 * H])
            f = jax.nn.sigmoid(gates[:, 1 * H:2 * H])
            g = jnp.tanh(gates[:, 2 * H:3 * H])
            o = jax.nn.sigmoid(gates[:, 3 * H:4 * H])
            c[k] = f * c[k] + i * g
            h[k] = o * jnp.tanh(c[k])

    # Fused combine_ctx: tanh(h_before @ W[:D] + h_after @ W[D:] + b) -- no lane concatenate,
    # no extra kernel launch.
    ctx_ref[...] = jnp.tanh(
        jnp.dot(h[0].astype(jnp.bfloat16), wctx_ref[0], preferred_element_type=jnp.float32)
        + jnp.dot(h[1].astype(jnp.bfloat16), wctx_ref[1], preferred_element_type=jnp.float32)
        + bctx_ref[...])


def lstm_ctx_encode(x_ctx, wih, whh, bias, wctx, bctx, *, seq_len, batch, hidden):
    kernel = functools.partial(lstm_ctx_kernel, seq_len=seq_len, batch=batch, hidden=hidden)
    return pl.pallas_call(
        kernel,
        out_shape=jax.ShapeDtypeStruct((batch, hidden), jnp.float32),
        grid=(1,),
        in_specs=[_full_spec(x_ctx.shape), _full_spec(wih.shape), _full_spec(whh.shape),
                  _full_spec(bias.shape), _full_spec(wctx.shape), _full_spec(bctx.shape)],
        out_specs=_full_spec((batch, hidden)),
    )(x_ctx, wih, whh, bias, wctx, bctx)


# ---------------------------------------------------- Transformer encoder layer + emissions
def transformer_kernel(emb_ref, ctx_ref, pos_ref, bias_ref,
                       wq_ref, bq_ref, wk_ref, bk_ref, wv_ref, bv_ref, wo_ref, bo_ref,
                       ln1g_ref, ln1b_ref, ln2g_ref, ln2b_ref,
                       w1_ref, b1_ref, w2_ref, b2_ref, wl_ref, bl_ref,
                       out_ref, *, nhead):
    R, d_model = emb_ref.shape                  # R = L*B time-major flattened rows
    hd = d_model // nhead
    scale = 1.0 / math.sqrt(hd)

    h = emb_ref[...] * math.sqrt(d_model) + ctx_ref[...] + pos_ref[...]        # (R, D) f32

    def lin(x, w_ref, b_ref):
        # bf16 into the MXU, f32 accumulation; element-wise math stays f32.
        return (jnp.dot(x.astype(jnp.bfloat16), w_ref[...],
                        preferred_element_type=jnp.float32) + b_ref[...])

    q = lin(h, wq_ref, bq_ref)
    k = lin(h, wk_ref, bk_ref)
    v = lin(h, wv_ref, bv_ref)
    qb, kb, vb = q.astype(jnp.bfloat16), k.astype(jnp.bfloat16), v.astype(jnp.bfloat16)

    bias = bias_ref[...]                        # (R, R): -1e9 for cross-batch or padded keys
    wo = wo_ref[...]
    attn = jnp.zeros((R, d_model), jnp.float32)
    for hh in range(nhead):                     # per-head out-projection accumulation (no concat)
        sl = slice(hh * hd, (hh + 1) * hd)
        s = lax.dot_general(qb[:, sl], kb[:, sl], (((1,), (1,)), ((), ())),
                            preferred_element_type=jnp.float32) * scale + bias
        s = s - jnp.max(s, axis=-1, keepdims=True)
        p = jnp.exp(s)
        p = p * pl.reciprocal(jnp.sum(p, axis=-1, keepdims=True), approx=True)
        hout = jnp.dot(p.astype(jnp.bfloat16), vb[:, sl], preferred_element_type=jnp.float32)
        attn = attn + jnp.dot(hout.astype(jnp.bfloat16), wo[sl, :],
                              preferred_element_type=jnp.float32)
    attn = attn + bo_ref[...]

    def layer_norm(x, g, b):
        mu = jnp.mean(x, axis=-1, keepdims=True)
        var = jnp.mean((x - mu) ** 2, axis=-1, keepdims=True)
        return (x - mu) * lax.rsqrt(var + 1e-5) * g + b

    h1 = layer_norm(h + attn, ln1g_ref[...], ln1b_ref[...])
    ff = jnp.maximum(lin(h1, w1_ref, b1_ref), 0.0)
    ff = lin(ff, w2_ref, b2_ref)
    h2 = layer_norm(h1 + ff, ln2g_ref[...], ln2b_ref[...])
    out_ref[...] = lin(h2, wl_ref, bl_ref)      # (R, C) time-major emissions


def transformer_emissions(emb_rows, ctx_rows, pos_rows, attn_bias, params, *, nhead, nb_labels):
    # Whole batch processed in one grid step (R = L*B rows per matmul).  At larger batch sizes
    # this grid would tile whole-batch groups and be marked "parallel" for megacore sharding.
    R, _ = emb_rows.shape
    wnames = ['wq', 'bq', 'wk', 'bk', 'wv', 'bv', 'wo', 'bo',
              'ln1_g', 'ln1_b', 'ln2_g', 'ln2_b',
              'w1', 'b1', 'w2', 'b2', 'wl', 'bl']
    weights = [params[n] for n in wnames]
    kernel = functools.partial(transformer_kernel, nhead=nhead)
    in_specs = ([_full_spec(emb_rows.shape), _full_spec(ctx_rows.shape),
                 _full_spec(pos_rows.shape), _full_spec(attn_bias.shape)]
                + [_full_spec(w.shape) for w in weights])
    return pl.pallas_call(
        kernel,
        out_shape=jax.ShapeDtypeStruct((R, nb_labels), jnp.float32),
        grid=(1,),
        in_specs=in_specs,
        out_specs=_full_spec((R, nb_labels)),
    )(emb_rows, ctx_rows, pos_rows, attn_bias, *weights)


# --------------------------------------------------------------------- CRF Viterbi decode
def viterbi_kernel(em_ref, mask_ref, trans_ref, bos_ref, eos_ref,
                   score_ref, path_ref, alpha_scr, bp_scr, *, nb_labels):
    # Layout: tags on the sublane axis, batch on the lane axis (no per-step lane relayout).
    #   em_ref: (L, C, B)  mask_ref: (L, 1, B)  trans_ref: (C_prev, C_cur, 1)
    #   bos_ref/eos_ref: (C, 1)  -> score (1, B), path (L, B)
    L = em_ref.shape[0]
    B = em_ref.shape[2]
    C = nb_labels

    trans = trans_ref[...]                                          # (C, C, 1)
    tag_ids = lax.broadcasted_iota(jnp.int32, (C, B), 0)            # tag index on sublanes
    ids3 = lax.broadcast_in_dim(tag_ids, (C, C, B), (0, 2))         # prev-tag id
    row_ids = lax.broadcasted_iota(jnp.int32, (L, B), 0)

    alpha_scr[...] = bos_ref[...] + em_ref[0]                       # (C, B)

    @pl.loop(1, L)
    def _(t):
        alphas = alpha_scr[...]                                     # (C_prev, B)
        a3 = lax.broadcast_in_dim(alphas, (C, C, B), (0, 2))
        scores = a3 + trans                                         # (C_prev, C_cur, B)
        best = jnp.max(scores, axis=0)                              # (C_cur, B)
        b3 = lax.broadcast_in_dim(best, (C, C, B), (1, 2))
        bp_t = jnp.min(jnp.where(scores == b3, ids3, C), axis=0)    # argmax over prev (ties->low)
        new_alphas = best + em_ref[t]
        alpha_scr[...] = jnp.where(mask_ref[t] > 0.0, new_alphas, alphas)
        bp_scr[t] = bp_t

    end = alpha_scr[...] + eos_ref[...]                             # (C, B)
    best_score = jnp.max(end, axis=0, keepdims=True)                # (1, B)
    cur = jnp.min(jnp.where(end == best_score, tag_ids, C), axis=0, keepdims=True)  # (1, B) i32
    score_ref[...] = best_score

    # In-kernel backtracking: backpointers never leave VMEM, path built in vregs, single store.
    def back_step(idx, carry):
        cur, path = carry
        t = L - 1 - idx
        valid = mask_ref[t] > 0.0                                   # (1, B)
        path = jnp.where(row_ids == t, jnp.where(valid, cur, 0), path)
        prev = jnp.sum(jnp.where(tag_ids == cur, bp_scr[t], 0), axis=0, keepdims=True)
        cur = jnp.where(valid, prev, cur)
        return cur, path

    cur, path = lax.fori_loop(0, L - 1, back_step, (cur, jnp.zeros((L, B), jnp.int32)))
    path_ref[...] = jnp.where(row_ids == 0, cur, path)


def viterbi_decode(em_lcb, mask_l1b, trans3, bos_col, eos_col, *, nb_labels):
    L, C, B = em_lcb.shape
    kernel = functools.partial(viterbi_kernel, nb_labels=nb_labels)
    return pl.pallas_call(
        kernel,
        out_shape=(jax.ShapeDtypeStruct((1, B), jnp.float32),
                   jax.ShapeDtypeStruct((L, B), jnp.int32)),
        grid=(1,),
        in_specs=[_full_spec((L, C, B)), _full_spec((L, 1, B)), _full_spec((C, C, 1)),
                  _full_spec((C, 1)), _full_spec((C, 1))],
        out_specs=(_full_spec((1, B)), _full_spec((L, B))),
        scratch_shapes=[pltpu.VMEM((C, B), jnp.float32),
                        pltpu.VMEM((L, C, B), jnp.int32)],
    )(em_lcb, mask_l1b, trans3, bos_col, eos_col)


# ------------------------------------------------------------------------- full forward
def transformer_crf_forward(params, x, before_ctx, after_ctx, mask,
                            *, nhead, bos_idx, eos_idx, pad_idx):
    B, L = x.shape
    D = params['tok_emb'].shape[1]
    C = params['transitions'].shape[0]
    T = before_ctx.shape[1]
    maskf = mask.astype(jnp.float32)

    # --- SequenceEncoder x2 + combine_ctx: one fused Pallas kernel ---
    def ctx_rows_emb(k, ids):
        # time-major rows (T*B, D): row = t*B + b
        return jnp.take(params['ctx_emb'][k], ids.T, axis=0).reshape(T * B, D)
    x_ctx = jnp.stack([ctx_rows_emb(0, before_ctx), ctx_rows_emb(1, after_ctx)])  # (2, T*B, D)
    ctx = lstm_ctx_encode(x_ctx, params['ctx_wih'], params['ctx_whh'], params['ctx_bias'],
                          params['ctx_w'], params['ctx_b'],
                          seq_len=T, batch=B, hidden=D)                           # (B, D)

    # --- Transformer -> emissions (time-major flattened rows, whole batch at once) ---
    R = L * B
    emb_rows = jnp.take(params['tok_emb'], x.T, axis=0).reshape(R, D)             # row = l*B + b
    pos_rows = jnp.repeat(sinusoidal_pe(L, D), B, axis=0)                          # pos[l] per row
    ctx_rows = jnp.tile(ctx, (L, 1))                                               # ctx[b] per row
    key_mask = jnp.transpose(maskf).reshape(R)
    rb = jnp.arange(R, dtype=jnp.int32) % B
    same_batch = rb[:, None] == rb[None, :]
    attn_bias = jnp.where(jnp.logical_and(same_batch, key_mask[None, :] > 0),
                          0.0, -1e9).astype(jnp.float32)                           # (R, R)
    em_rows = transformer_emissions(emb_rows, ctx_rows, pos_rows, attn_bias, params,
                                    nhead=nhead, nb_labels=C)                      # (R, C)

    # --- CRF Viterbi decode (forward recursion + backtracking in one kernel) ---
    em_lcb = em_rows.reshape(L, B, C).transpose(0, 2, 1)                           # (L, C, B)
    mask_l1b = jnp.transpose(maskf)[:, None, :]                                    # (L, 1, B)
    trans = params['transitions']
    score_1b, path_lb = viterbi_decode(em_lcb, mask_l1b,
                                       trans[:, :, None],                          # (prev, cur, 1)
                                       trans[bos_idx][:, None],                    # (C, 1)
                                       trans[:, eos_idx][:, None],                 # (C, 1)
                                       nb_labels=C)
    return score_1b.reshape(B), jnp.transpose(path_lb)


# ------------------------------------------------------------------------- parameters
def init_params(key, V, CV, D, F, C, bos_idx, eos_idx, pad_idx):
    ks = jax.random.split(key, 16)
    n = lambda k, s, sc=0.1: (jax.random.normal(k, s) * sc).astype(jnp.float32)
    bf = lambda k, s, sc=0.1: (jax.random.normal(k, s) * sc).astype(jnp.bfloat16)
    z = lambda s: jnp.zeros(s, jnp.float32)
    p = {
        'tok_emb': n(ks[0], (V, D)),
        'ctx_emb': n(ks[1], (2, CV, D)),                 # [before, after] embedding tables
        'ctx_wih': bf(ks[2], (2, D, 4 * D)),             # stacked LSTM input weights (bf16)
        'ctx_whh': bf(ks[3], (2, D, 4 * D)),             # stacked LSTM recurrent weights (bf16)
        'ctx_bias': z((2, 1, 4 * D)),
        'ctx_w': bf(ks[4], (2, D, D)),                   # split halves of Linear(2D, D) weight
        'ctx_b': z((1, D)),
        'wq': bf(ks[5], (D, D)), 'bq': z((1, D)),
        'wk': bf(ks[6], (D, D)), 'bk': z((1, D)),
        'wv': bf(ks[7], (D, D)), 'bv': z((1, D)),
        'wo': bf(ks[8], (D, D)), 'bo': z((1, D)),
        'ln1_g': jnp.ones((1, D), jnp.float32), 'ln1_b': z((1, D)),
        'ln2_g': jnp.ones((1, D), jnp.float32), 'ln2_b': z((1, D)),
        'w1': bf(ks[9], (D, F)), 'b1': z((1, F)),
        'w2': bf(ks[10], (F, D)), 'b2': z((1, D)),
        'wl': bf(ks[11], (D, C)), 'bl': z((1, C)),
    }
    # CRF transitions with BOS/EOS/PAD constraints (Treviso-style linear-chain CRF).
    trans = jax.random.uniform(ks[12], (C, C), minval=-0.1, maxval=0.1).astype(jnp.float32)
    trans = trans.at[:, bos_idx].set(-10000.0)
    trans = trans.at[eos_idx, :].set(-10000.0)
    trans = trans.at[pad_idx, :].set(-10000.0)
    trans = trans.at[:, pad_idx].set(-10000.0)
    trans = trans.at[pad_idx, eos_idx].set(0.0)
    trans = trans.at[pad_idx, pad_idx].set(0.0)
    p['transitions'] = trans
    return p


if __name__ == "__main__":
    B, L, T_CTX = 2, 8, 6
    D, F = 32, 64
    V, CV = 64, 32
    NB_LABELS = 6                     # 3 real tags + BOS + EOS + PAD
    BOS, EOS, PAD = 3, 4, 5
    NHEAD = 4

    key = jax.random.PRNGKey(0)
    kp, kx, kb, ka = jax.random.split(key, 4)
    params = init_params(kp, V, CV, D, F, NB_LABELS, BOS, EOS, PAD)

    x = jax.random.randint(kx, (B, L), 0, V, dtype=jnp.int32)
    before_ctx = jax.random.randint(kb, (B, T_CTX), 0, CV, dtype=jnp.int32)
    after_ctx = jax.random.randint(ka, (B, T_CTX), 0, CV, dtype=jnp.int32)
    mask = jnp.ones((B, L), jnp.float32)

    fwd = jax.jit(functools.partial(transformer_crf_forward,
                                    nhead=NHEAD, bos_idx=BOS, eos_idx=EOS, pad_idx=PAD))
    score, path = fwd(params, x, before_ctx, after_ctx, mask)
    score = jax.block_until_ready(score)
    path = jax.block_until_ready(path)
    assert score.shape == (B,) and path.shape == (B, L)
    assert path.dtype == jnp.int32
    assert bool(jnp.all(jnp.isfinite(score)))
    assert bool(jnp.all((path >= 0) & (path < NB_LABELS)))
    print("KERNEL_OK")
</pallas_src>

<mosaic_0001>
module attributes {stable_mosaic.version = 11 : i64} {
  func.func @lstm_ctx_kernel(%arg0: i32, %arg1: memref<2x12x32xf32, #tpu.memory_space<vmem>>, %arg2: memref<2x32x128xbf16, #tpu.memory_space<vmem>>, %arg3: memref<2x32x128xbf16, #tpu.memory_space<vmem>>, %arg4: memref<2x1x128xf32, #tpu.memory_space<vmem>>, %arg5: memref<2x32x32xbf16, #tpu.memory_space<vmem>>, %arg6: memref<1x32xf32, #tpu.memory_space<vmem>>, %arg7: memref<2x32xf32, #tpu.memory_space<vmem>>) attributes {dimension_semantics = [#tpu.dimension_semantics<arbitrary>], iteration_bounds = array<i64: 1>, scalar_prefetch = 0 : i64, scratch_operands = 0 : i64, tpu.core_type = #tpu.core_type<tc>, window_params = [{pipeline_mode = #tpu.pipeline_mode<synchronous>, transform_indices = @transform_0, window_bounds = array<i64: 2, 12, 32>}, {pipeline_mode = #tpu.pipeline_mode<synchronous>, transform_indices = @transform_1, window_bounds = array<i64: 2, 32, 128>}, {pipeline_mode = #tpu.pipeline_mode<synchronous>, transform_indices = @transform_2, window_bounds = array<i64: 2, 32, 128>}, {pipeline_mode = #tpu.pipeline_mode<synchronous>, transform_indices = @transform_3, window_bounds = array<i64: 2, 1, 128>}, {pipeline_mode = #tpu.pipeline_mode<synchronous>, transform_indices = @transform_4, window_bounds = array<i64: 2, 32, 32>}, {pipeline_mode = #tpu.pipeline_mode<synchronous>, transform_indices = @transform_5, window_bounds = array<i64: 1, 32>}, {pipeline_mode = #tpu.pipeline_mode<synchronous>, transform_indices = @transform_6, window_bounds = array<i64: 2, 32>}]} {
    %c0 = arith.constant 0 : index
    %c0_0 = arith.constant 0 : index
    %c0_1 = arith.constant 0 : index
    %0 = vector.load %arg1[%c0, %c0_0, %c0_1] : memref<2x12x32xf32, #tpu.memory_space<vmem>>, vector<1x12x32xf32>
    %1 = vector.shape_cast %0 : vector<1x12x32xf32> to vector<12x32xf32>
    %2 = arith.truncf %1 : vector<12x32xf32> to vector<12x32xbf16>
    %c0_2 = arith.constant 0 : index
    %c0_3 = arith.constant 0 : index
    %c0_4 = arith.constant 0 : index
    %3 = vector.load %arg2[%c0_2, %c0_3, %c0_4] : memref<2x32x128xbf16, #tpu.memory_space<vmem>>, vector<1x32x128xbf16>
    %4 = vector.shape_cast %3 : vector<1x32x128xbf16> to vector<32x128xbf16>
    %cst = arith.constant dense<0.000000e+00> : vector<12x128xf32>
    %5 = tpu.matmul %2, %4, %cst {dimension_numbers = #tpu.dot_dimension_numbers<[1], [0], [0], [1], [0, 0, 1, 1], [], []>} : vector<12x32xbf16>, vector<32x128xbf16>, vector<12x128xf32> -> vector<12x128xf32>
    %c1 = arith.constant 1 : index
    %c0_5 = arith.constant 0 : index
    %c0_6 = arith.constant 0 : index
    %6 = vector.load %arg1[%c1, %c0_5, %c0_6] : memref<2x12x32xf32, #tpu.memory_space<vmem>>, vector<1x12x32xf32>
    %7 = vector.shape_cast %6 : vector<1x12x32xf32> to vector<12x32xf32>
    %8 = arith.truncf %7 : vector<12x32xf32> to vector<12x32xbf16>
    %c1_7 = arith.constant 1 : index
    %c0_8 = arith.constant 0 : index
    %c0_9 = arith.constant 0 : index
    %9 = vector.load %arg2[%c1_7, %c0_8, %c0_9] : memref<2x32x128xbf16, #tpu.memory_space<vmem>>, vector<1x32x128xbf16>
    %10 = vector.shape_cast %9 : vector<1x32x128xbf16> to vector<32x128xbf16>
    %cst_10 = arith.constant dense<0.000000e+00> : vector<12x128xf32>
    %11 = tpu.matmul %8, %10, %cst_10 {dimension_numbers = #tpu.dot_dimension_numbers<[1], [0], [0], [1], [0, 0, 1, 1], [], []>} : vector<12x32xbf16>, vector<32x128xbf16>, vector<12x128xf32> -> vector<12x128xf32>
    %c0_11 = arith.constant 0 : index
    %c0_12 = arith.constant 0 : index
    %c0_13 = arith.constant 0 : index
    %12 = vector.load %arg3[%c0_11, %c0_12, %c0_13] : memref<2x32x128xbf16, #tpu.memory_space<vmem>>, vector<1x32x128xbf16>
    %13 = vector.shape_cast %12 : vector<1x32x128xbf16> to vector<32x128xbf16>
    %c1_14 = arith.constant 1 : index
    %c0_15 = arith.constant 0 : index
    %c0_16 = arith.constant 0 : index
    %14 = vector.load %arg3[%c1_14, %c0_15, %c0_16] : memref<2x32x128xbf16, #tpu.memory_space<vmem>>, vector<1x32x128xbf16>
    %15 = vector.shape_cast %14 : vector<1x32x128xbf16> to vector<32x128xbf16>
    %c0_17 = arith.constant 0 : index
    %c0_18 = arith.constant 0 : index
    %c0_19 = arith.constant 0 : index
    %16 = vector.load %arg4[%c0_17, %c0_18, %c0_19] : memref<2x1x128xf32, #tpu.memory_space<vmem>>, vector<1x1x128xf32>
    %17 = vector.shape_cast %16 : vector<1x1x128xf32> to vector<1x128xf32>
    %c1_20 = arith.constant 1 : index
    %c0_21 = arith.constant 0 : index
    %c0_22 = arith.constant 0 : index
    %18 = vector.load %arg4[%c1_20, %c0_21, %c0_22] : memref<2x1x128xf32, #tpu.memory_space<vmem>>, vector<1x1x128xf32>
    %19 = vector.shape_cast %18 : vector<1x1x128xf32> to vector<1x128xf32>
    %cst_23 = arith.constant 0.000000e+00 : f32
    %20 = vector.broadcast %cst_23 : f32 to vector<2x32xf32>
    %cst_24 = arith.constant 0.000000e+00 : f32
    %21 = vector.broadcast %cst_24 : f32 to vector<2x32xf32>
    %cst_25 = arith.constant 0.000000e+00 : f32
    %22 = vector.broadcast %cst_25 : f32 to vector<2x32xf32>
    %cst_26 = arith.constant 0.000000e+00 : f32
    %23 = vector.broadcast %cst_26 : f32 to vector<2x32xf32>
    %24 = arith.truncf %20 : vector<2x32xf32> to vector<2x32xbf16>
    %cst_27 = arith.constant dense<0.000000e+00> : vector<2x128xf32>
    %25 = tpu.matmul %24, %13, %cst_27 {dimension_numbers = #tpu.dot_dimension_numbers<[1], [0], [0], [1], [0, 0, 1, 1], [], []>} : vector<2x32xbf16>, vector<32x128xbf16>, vector<2x128xf32> -> vector<2x128xf32>
    %26 = vector.extract_strided_slice %5 {offsets = [0, 0], sizes = [2, 128], strides = [1, 1]} : vector<12x128xf32> to vector<2x128xf32>
    %27 = arith.addf %26, %25 : vector<2x128xf32>
    %28 = vector.broadcast %17 : vector<1x128xf32> to vector<2x128xf32>
    %29 = arith.addf %27, %28 : vector<2x128xf32>
    %30 = vector.extract_strided_slice %29 {offsets = [0, 0], sizes = [2, 32], strides = [1, 1]} : vector<2x128xf32> to vector<2x32xf32>
    %31 = arith.negf %30 : vector<2x32xf32>
    %32 = math.exp %31 : vector<2x32xf32>
    %cst_28 = arith.constant 1.000000e+00 : f32
    %33 = vector.broadcast %cst_28 : f32 to vector<2x32xf32>
    %34 = arith.addf %33, %32 : vector<2x32xf32>
    %35 = arith.divf %33, %34 : vector<2x32xf32>
    %36 = vector.extract_strided_slice %29 {offsets = [0, 32], sizes = [2, 32], strides = [1, 1]} : vector<2x128xf32> to vector<2x32xf32>
    %37 = arith.negf %36 : vector<2x32xf32>
    %38 = math.exp %37 : vector<2x32xf32>
    %cst_29 = arith.constant 1.000000e+00 : f32
    %39 = vector.broadcast %cst_29 : f32 to vector<2x32xf32>
    %40 = arith.addf %39, %38 : vector<2x32xf32>
    %41 = arith.divf %39, %40 : vector<2x32xf32>
    %42 = vector.extract_strided_slice %29 {offsets = [0, 64], sizes = [2, 32], strides = [1, 1]} : vector<2x128xf32> to vector<2x32xf32>
    %43 = math.tanh %42 : vector<2x32xf32>
    %44 = vector.extract_strided_slice %29 {offsets = [0, 96], sizes = [2, 32], strides = [1, 1]} : vector<2x128xf32> to vector<2x32xf32>
    %45 = arith.negf %44 : vector<2x32xf32>
    %46 = math.exp %45 : vector<2x32xf32>
    %cst_30 = arith.constant 1.000000e+00 : f32
    %47 = vector.broadcast %cst_30 : f32 to vector<2x32xf32>
    %48 = arith.addf %47, %46 : vector<2x32xf32>
    %49 = arith.divf %47, %48 : vector<2x32xf32>
    %50 = arith.mulf %41, %22 : vector<2x32xf32>
    %51 = arith.mulf %35, %43 : vector<2x32xf32>
    %52 = arith.addf %50, %51 : vector<2x32xf32>
    %53 = math.tanh %52 : vector<2x32xf32>
    %54 = arith.mulf %49, %53 : vector<2x32xf32>
    %55 = arith.truncf %21 : vector<2x32xf32> to vector<2x32xbf16>
    %cst_31 = arith.constant dense<0.000000e+00> : vector<2x128xf32>
    %56 = tpu.matmul %55, %15, %cst_31 {dimension_numbers = #tpu.dot_dimension_numbers<[1], [0], [0], [1], [0, 0, 1, 1], [], []>} : vector<2x32xbf16>, vector<32x128xbf16>, vector<2x128xf32> -> vector<2x128xf32>
    %57 = vector.extract_strided_slice %11 {offsets = [0, 0], sizes = [2, 128], strides = [1, 1]} : vector<12x128xf32> to vector<2x128xf32>
    %58 = arith.addf %57, %56 : vector<2x128xf32>
    %59 = vector.broadcast %19 : vector<1x128xf32> to vector<2x128xf32>
    %60 = arith.addf %58, %59 : vector<2x128xf32>
    %61 = vector.extract_strided_slice %60 {offsets = [0, 0], sizes = [2, 32], strides = [1, 1]} : vector<2x128xf32> to vector<2x32xf32>
    %62 = arith.negf %61 : vector<2x32xf32>
    %63 = math.exp %62 : vector<2x32xf32>
    %cst_32 = arith.constant 1.000000e+00 : f32
    %64 = vector.broadcast %cst_32 : f32 to vector<2x32xf32>
    %65 = arith.addf %64, %63 : vector<2x32xf32>
    %66 = arith.divf %64, %65 : vector<2x32xf32>
    %67 = vector.extract_strided_slice %60 {offsets = [0, 32], sizes = [2, 32], strides = [1, 1]} : vector<2x128xf32> to vector<2x32xf32>
    %68 = arith.negf %67 : vector<2x32xf32>
    %69 = math.exp %68 : vector<2x32xf32>
    %cst_33 = arith.constant 1.000000e+00 : f32
    %70 = vector.broadcast %cst_33 : f32 to vector<2x32xf32>
    %71 = arith.addf %70, %69 : vector<2x32xf32>
    %72 = arith.divf %70, %71 : vector<2x32xf32>
    %73 = vector.extract_strided_slice %60 {offsets = [0, 64], sizes = [2, 32], strides = [1, 1]} : vector<2x128xf32> to vector<2x32xf32>
    %74 = math.tanh %73 : vector<2x32xf32>
    %75 = vector.extract_strided_slice %60 {offsets = [0, 96], sizes = [2, 32], strides = [1, 1]} : vector<2x128xf32> to vector<2x32xf32>
    %76 = arith.negf %75 : vector<2x32xf32>
    %77 = math.exp %76 : vector<2x32xf32>
    %cst_34 = arith.constant 1.000000e+00 : f32
    %78 = vector.broadcast %cst_34 : f32 to vector<2x32xf32>
    %79 = arith.addf %78, %77 : vector<2x32xf32>
    %80 = arith.divf %78, %79 : vector<2x32xf32>
    %81 = arith.mulf %72, %23 : vector<2x32xf32>
    %82 = arith.mulf %66, %74 : vector<2x32xf32>
    %83 = arith.addf %81, %82 : vector<2x32xf32>
    %84 = math.tanh %83 : vector<2x32xf32>
    %85 = arith.mulf %80, %84 : vector<2x32xf32>
    %86 = arith.truncf %54 : vector<2x32xf32> to vector<2x32xbf16>
    %cst_35 = arith.constant dense<0.000000e+00> : vector<2x128xf32>
    %87 = tpu.matmul %86, %13, %cst_35 {dimension_numbers = #tpu.dot_dimension_numbers<[1], [0], [0], [1], [0, 0, 1, 1], [], []>} : vector<2x32xbf16>, vector<32x128xbf16>, vector<2x128xf32> -> vector<2x128xf32>
    %88 = vector.extract_strided_slice %5 {offsets = [2, 0], sizes = [2, 128], strides = [1, 1]} : vector<12x128xf32> to vector<2x128xf32>
    %89 = arith.addf %88, %87 : vector<2x128xf32>
    %90 = vector.broadcast %17 : vector<1x128xf32> to vector<2x128xf32>
    %91 = arith.addf %89, %90 : vector<2x128xf32>
    %92 = vector.extract_strided_slice %91 {offsets = [0, 0], sizes = [2, 32], strides = [1, 1]} : vector<2x128xf32> to vector<2x32xf32>
    %93 = arith.negf %92 : vector<2x32xf32>
    %94 = math.exp %93 : vector<2x32xf32>
    %cst_36 = arith.constant 1.000000e+00 : f32
    %95 = vector.broadcast %cst_36 : f32 to vector<2x32xf32>
    %96 = arith.addf %95, %94 : vector<2x32xf32>
    %97 = arith.divf %95, %96 : vector<2x32xf32>
    %98 = vector.extract_strided_slice %91 {offsets = [0, 32], sizes = [2, 32], strides = [1, 1]} : vector<2x128xf32> to vector<2x32xf32>
    %99 = arith.negf %98 : vector<2x32xf32>
    %100 = math.exp %99 : vector<2x32xf32>
    %cst_37 = arith.constant 1.000000e+00 : f32
    %101 = vector.broadcast %cst_37 : f32 to vector<2x32xf32>
    %102 = arith.addf %101, %100 : vector<2x32xf32>
    %103 = arith.divf %101, %102 : vector<2x32xf32>
    %104 = vector.extract_strided_slice %91 {offsets = [0, 64], sizes = [2, 32], strides = [1, 1]} : vector<2x128xf32> to vector<2x32xf32>
    %105 = math.tanh %104 : vector<2x32xf32>
    %106 = vector.extract_strided_slice %91 {offsets = [0, 96], sizes = [2, 32], strides = [1, 1]} : vector<2x128xf32> to vector<2x32xf32>
    %107 = arith.negf %106 : vector<2x32xf32>
    %108 = math.exp %107 : vector<2x32xf32>
    %cst_38 = arith.constant 1.000000e+00 : f32
    %109 = vector.broadcast %cst_38 : f32 to vector<2x32xf32>
    %110 = arith.addf %109, %108 : vector<2x32xf32>
    %111 = arith.divf %109, %110 : vector<2x32xf32>
    %112 = arith.mulf %103, %52 : vector<2x32xf32>
    %113 = arith.mulf %97, %105 : vector<2x32xf32>
    %114 = arith.addf %112, %113 : vector<2x32xf32>
    %115 = math.tanh %114 : vector<2x32xf32>
    %116 = arith.mulf %111, %115 : vector<2x32xf32>
    %117 = arith.truncf %85 : vector<2x32xf32> to vector<2x32xbf16>
    %cst_39 = arith.constant dense<0.000000e+00> : vector<2x128xf32>
    %118 = tpu.matmul %117, %15, %cst_39 {dimension_numbers = #tpu.dot_dimension_numbers<[1], [0], [0], [1], [0, 0, 1, 1], [], []>} : vector<2x32xbf16>, vector<32x128xbf16>, vector<2x128xf32> -> vector<2x128xf32>
    %119 = vector.extract_strided_slice %11 {offsets = [2, 0], sizes = [2, 128], strides = [1, 1]} : vector<12x128xf32> to vector<2x128xf32>
    %120 = arith.addf %119, %118 : vector<2x128xf32>
    %121 = vector.broadcast %19 : vector<1x128xf32> to vector<2x128xf32>
    %122 = arith.addf %120, %121 : vector<2x128xf32>
    %123 = vector.extract_strided_slice %122 {offsets = [0, 0], sizes = [2, 32], strides = [1, 1]} : vector<2x128xf32> to vector<2x32xf32>
    %124 = arith.negf %123 : vector<2x32xf32>
    %125 = math.exp %124 : vector<2x32xf32>
    %cst_40 = arith.constant 1.000000e+00 : f32
    %126 = vector.broadcast %cst_40 : f32 to vector<2x32xf32>
    %127 = arith.addf %126, %125 : vector<2x32xf32>
    %128 = arith.divf %126, %127 : vector<2x32xf32>
    %129 = vector.extract_strided_slice %122 {offsets = [0, 32], sizes = [2, 32], strides = [1, 1]} : vector<2x128xf32> to vector<2x32xf32>
    %130 = arith.negf %129 : vector<2x32xf32>
    %131 = math.exp %130 : vector<2x32xf32>
    %cst_41 = arith.constant 1.000000e+00 : f32
    %132 = vector.broadcast %cst_41 : f32 to vector<2x32xf32>
    %133 = arith.addf %132, %131 : vector<2x32xf32>
    %134 = arith.divf %132, %133 : vector<2x32xf32>
    %135 = vector.extract_strided_slice %122 {offsets = [0, 64], sizes = [2, 32], strides = [1, 1]} : vector<2x128xf32> to vector<2x32xf32>
    %136 = math.tanh %135 : vector<2x32xf32>
    %137 = vector.extract_strided_slice %122 {offsets = [0, 96], sizes = [2, 32], strides = [1, 1]} : vector<2x128xf32> to vector<2x32xf32>
    %138 = arith.negf %137 : vector<2x32xf32>
    %139 = math.exp %138 : vector<2x32xf32>
    %cst_42 = arith.constant 1.000000e+00 : f32
    %140 = vector.broadcast %cst_42 : f32 to vector<2x32xf32>
    %141 = arith.addf %140, %139 : vector<2x32xf32>
    %142 = arith.divf %140, %141 : vector<2x32xf32>
    %143 = arith.mulf %134, %83 : vector<2x32xf32>
    %144 = arith.mulf %128, %136 : vector<2x32xf32>
    %145 = arith.addf %143, %144 : vector<2x32xf32>
    %146 = math.tanh %145 : vector<2x32xf32>
    %147 = arith.mulf %142, %146 : vector<2x32xf32>
    %148 = arith.truncf %116 : vector<2x32xf32> to vector<2x32xbf16>
    %cst_43 = arith.constant dense<0.000000e+00> : vector<2x128xf32>
    %149 = tpu.matmul %148, %13, %cst_43 {dimension_numbers = #tpu.dot_dimension_numbers<[1], [0], [0], [1], [0, 0, 1, 1], [], []>} : vector<2x32xbf16>, vector<32x128xbf16>, vector<2x128xf32> -> vector<2x128xf32>
    %150 = vector.extract_strided_slice %5 {offsets = [4, 0], sizes = [2, 128], strides = [1, 1]} : vector<12x128xf32> to vector<2x128xf32>
    %151 = arith.addf %150, %149 : vector<2x128xf32>
    %152 = vector.broadcast %17 : vector<1x128xf32> to vector<2x128xf32>
    %153 = arith.addf %151, %152 : vector<2x128xf32>
    %154 = vector.extract_strided_slice %153 {offsets = [0, 0], sizes = [2, 32], strides = [1, 1]} : vector<2x128xf32> to vector<2x32xf32>
    %155 = arith.negf %154 : vector<2x32xf32>
    %156 = math.exp %155 : vector<2x32xf32>
    %cst_44 = arith.constant 1.000000e+00 : f32
    %157 = vector.broadcast %cst_44 : f32 to vector<2x32xf32>
    %158 = arith.addf %157, %156 : vector<2x32xf32>
    %159 = arith.divf %157, %158 : vector<2x32xf32>
    %160 = vector.extract_strided_slice %153 {offsets = [0, 32], sizes = [2, 32], strides = [1, 1]} : vector<2x128xf32> to vector<2x32xf32>
    %161 = arith.negf %160 : vector<2x32xf32>
    %162 = math.exp %161 : vector<2x32xf32>
    %cst_45 = arith.constant 1.000000e+00 : f32
    %163 = vector.broadcast %cst_45 : f32 to vector<2x32xf32>
    %164 = arith.addf %163, %162 : vector<2x32xf32>
    %165 = arith.divf %163, %164 : vector<2x32xf32>
    %166 = vector.extract_strided_slice %153 {offsets = [0, 64], sizes = [2, 32], strides = [1, 1]} : vector<2x128xf32> to vector<2x32xf32>
    %167 = math.tanh %166 : vector<2x32xf32>
    %168 = vector.extract_strided_slice %153 {offsets = [0, 96], sizes = [2, 32], strides = [1, 1]} : vector<2x128xf32> to vector<2x32xf32>
    %169 = arith.negf %168 : vector<2x32xf32>
    %170 = math.exp %169 : vector<2x32xf32>
    %cst_46 = arith.constant 1.000000e+00 : f32
    %171 = vector.broadcast %cst_46 : f32 to vector<2x32xf32>
    %172 = arith.addf %171, %170 : vector<2x32xf32>
    %173 = arith.divf %171, %172 : vector<2x32xf32>
    %174 = arith.mulf %165, %114 : vector<2x32xf32>
    %175 = arith.mulf %159, %167 : vector<2x32xf32>
    %176 = arith.addf %174, %175 : vector<2x32xf32>
    %177 = math.tanh %176 : vector<2x32xf32>
    %178 = arith.mulf %173, %177 : vector<2x32xf32>
    %179 = arith.truncf %147 : vector<2x32xf32> to vector<2x32xbf16>
    %cst_47 = arith.constant dense<0.000000e+00> : vector<2x128xf32>
    %180 = tpu.matmul %179, %15, %cst_47 {dimension_numbers = #tpu.dot_dimension_numbers<[1], [0], [0], [1], [0, 0, 1, 1], [], []>} : vector<2x32xbf16>, vector<32x128xbf16>, vector<2x128xf32> -> vector<2x128xf32>
    %181 = vector.extract_strided_slice %11 {offsets = [4, 0], sizes = [2, 128], strides = [1, 1]} : vector<12x128xf32> to vector<2x128xf32>
    %182 = arith.addf %181, %180 : vector<2x128xf32>
    %183 = vector.broadcast %19 : vector<1x128xf32> to vector<2x128xf32>
    %184 = arith.addf %182, %183 : vector<2x128xf32>
    %185 = vector.extract_strided_slice %184 {offsets = [0, 0], sizes = [2, 32], strides = [1, 1]} : vector<2x128xf32> to vector<2x32xf32>
    %186 = arith.negf %185 : vector<2x32xf32>
    %187 = math.exp %186 : vector<2x32xf32>
    %cst_48 = arith.constant 1.000000e+00 : f32
    %188 = vector.broadcast %cst_48 : f32 to vector<2x32xf32>
    %189 = arith.addf %188, %187 : vector<2x32xf32>
    %190 = arith.divf %188, %189 : vector<2x32xf32>
    %191 = vector.extract_strided_slice %184 {offsets = [0, 32], sizes = [2, 32], strides = [1, 1]} : vector<2x128xf32> to vector<2x32xf32>
    %192 = arith.negf %191 : vector<2x32xf32>
    %193 = math.exp %192 : vector<2x32xf32>
    %cst_49 = arith.constant 1.000000e+00 : f32
    %194 = vector.broadcast %cst_49 : f32 to vector<2x32xf32>
    %195 = arith.addf %194, %193 : vector<2x32xf32>
    %196 = arith.divf %194, %195 : vector<2x32xf32>
    %197 = vector.extract_strided_slice %184 {offsets = [0, 64], sizes = [2, 32], strides = [1, 1]} : vector<2x128xf32> to vector<2x32xf32>
    %198 = math.tanh %197 : vector<2x32xf32>
    %199 = vector.extract_strided_slice %184 {offsets = [0, 96], sizes = [2, 32], strides = [1, 1]} : vector<2x128xf32> to vector<2x32xf32>
    %200 = arith.negf %199 : vector<2x32xf32>
    %201 = math.exp %200 : vector<2x32xf32>
    %cst_50 = arith.constant 1.000000e+00 : f32
    %202 = vector.broadcast %cst_50 : f32 to vector<2x32xf32>
    %203 = arith.addf %202, %201 : vector<2x32xf32>
    %204 = arith.divf %202, %203 : vector<2x32xf32>
    %205 = arith.mulf %196, %145 : vector<2x32xf32>
    %206 = arith.mulf %190, %198 : vector<2x32xf32>
    %207 = arith.addf %205, %206 : vector<2x32xf32>
    %208 = math.tanh %207 : vector<2x32xf32>
    %209 = arith.mulf %204, %208 : vector<2x32xf32>
    %210 = arith.truncf %178 : vector<2x32xf32> to vector<2x32xbf16>
    %cst_51 = arith.constant dense<0.000000e+00> : vector<2x128xf32>
    %211 = tpu.matmul %210, %13, %cst_51 {dimension_numbers = #tpu.dot_dimension_numbers<[1], [0], [0], [1], [0, 0, 1, 1], [], []>} : vector<2x32xbf16>, vector<32x128xbf16>, vector<2x128xf32> -> vector<2x128xf32>
    %212 = vector.extract_strided_slice %5 {offsets = [6, 0], sizes = [2, 128], strides = [1, 1]} : vector<12x128xf32> to vector<2x128xf32>
    %213 = arith.addf %212, %211 : vector<2x128xf32>
    %214 = vector.broadcast %17 : vector<1x128xf32> to vector<2x128xf32>
    %215 = arith.addf %213, %214 : vector<2x128xf32>
    %216 = vector.extract_strided_slice %215 {offsets = [0, 0], sizes = [2, 32], strides = [1, 1]} : vector<2x128xf32> to vector<2x32xf32>
    %217 = arith.negf %216 : vector<2x32xf32>
    %218 = math.exp %217 : vector<2x32xf32>
    %cst_52 = arith.constant 1.000000e+00 : f32
    %219 = vector.broadcast %cst_52 : f32 to vector<2x32xf32>
    %220 = arith.addf %219, %218 : vector<2x32xf32>
    %221 = arith.divf %219, %220 : vector<2x32xf32>
    %222 = vector.extract_strided_slice %215 {offsets = [0, 32], sizes = [2, 32], strides = [1, 1]} : vector<2x128xf32> to vector<2x32xf32>
    %223 = arith.negf %222 : vector<2x32xf32>
    %224 = math.exp %223 : vector<2x32xf32>
    %cst_53 = arith.constant 1.000000e+00 : f32
    %225 = vector.broadcast %cst_53 : f32 to vector<2x32xf32>
    %226 = arith.addf %225, %224 : vector<2x32xf32>
    %227 = arith.divf %225, %226 : vector<2x32xf32>
    %228 = vector.extract_strided_slice %215 {offsets = [0, 64], sizes = [2, 32], strides = [1, 1]} : vector<2x128xf32> to vector<2x32xf32>
    %229 = math.tanh %228 : vector<2x32xf32>
    %230 = vector.extract_strided_slice %215 {offsets = [0, 96], sizes = [2, 32], strides = [1, 1]} : vector<2x128xf32> to vector<2x32xf32>
    %231 = arith.negf %230 : vector<2x32xf32>
    %232 = math.exp %231 : vector<2x32xf32>
    %cst_54 = arith.constant 1.000000e+00 : f32
    %233 = vector.broadcast %cst_54 : f32 to vector<2x32xf32>
    %234 = arith.addf %233, %232 : vector<2x32xf32>
    %235 = arith.divf %233, %234 : vector<2x32xf32>
    %236 = arith.mulf %227, %176 : vector<2x32xf32>
    %237 = arith.mulf %221, %229 : vector<2x32xf32>
    %238 = arith.addf %236, %237 : vector<2x32xf32>
    %239 = math.tanh %238 : vector<2x32xf32>
    %240 = arith.mulf %235, %239 : vector<2x32xf32>
    %241 = arith.truncf %209 : vector<2x32xf32> to vector<2x32xbf16>
    %cst_55 = arith.constant dense<0.000000e+00> : vector<2x128xf32>
    %242 = tpu.matmul %241, %15, %cst_55 {dimension_numbers = #tpu.dot_dimension_numbers<[1], [0], [0], [1], [0, 0, 1, 1], [], []>} : vector<2x32xbf16>, vector<32x128xbf16>, vector<2x128xf32> -> vector<2x128xf32>
    %243 = vector.extract_strided_slice %11 {offsets = [6, 0], sizes = [2, 128], strides = [1, 1]} : vector<12x128xf32> to vector<2x128xf32>
    %244 = arith.addf %243, %242 : vector<2x128xf32>
    %245 = vector.broadcast %19 : vector<1x128xf32> to vector<2x128xf32>
    %246 = arith.addf %244, %245 : vector<2x128xf32>
    %247 = vector.extract_strided_slice %246 {offsets = [0, 0], sizes = [2, 32], strides = [1, 1]} : vector<2x128xf32> to vector<2x32xf32>
    %248 = arith.negf %247 : vector<2x32xf32>
    %249 = math.exp %248 : vector<2x32xf32>
    %cst_56 = arith.constant 1.000000e+00 : f32
    %250 = vector.broadcast %cst_56 : f32 to vector<2x32xf32>
    %251 = arith.addf %250, %249 : vector<2x32xf32>
    %252 = arith.divf %250, %251 : vector<2x32xf32>
    %253 = vector.extract_strided_slice %246 {offsets = [0, 32], sizes = [2, 32], strides = [1, 1]} : vector<2x128xf32> to vector<2x32xf32>
    %254 = arith.negf %253 : vector<2x32xf32>
    %255 = math.exp %254 : vector<2x32xf32>
    %cst_57 = arith.constant 1.000000e+00 : f32
    %256 = vector.broadcast %cst_57 : f32 to vector<2x32xf32>
    %257 = arith.addf %256, %255 : vector<2x32xf32>
    %258 = arith.divf %256, %257 : vector<2x32xf32>
    %259 = vector.extract_strided_slice %246 {offsets = [0, 64], sizes = [2, 32], strides = [1, 1]} : vector<2x128xf32> to vector<2x32xf32>
    %260 = math.tanh %259 : vector<2x32xf32>
    %261 = vector.extract_strided_slice %246 {offsets = [0, 96], sizes = [2, 32], strides = [1, 1]} : vector<2x128xf32> to vector<2x32xf32>
    %262 = arith.negf %261 : vector<2x32xf32>
    %263 = math.exp %262 : vector<2x32xf32>
    %cst_58 = arith.constant 1.000000e+00 : f32
    %264 = vector.broadcast %cst_58 : f32 to vector<2x32xf32>
    %265 = arith.addf %264, %263 : vector<2x32xf32>
    %266 = arith.divf %264, %265 : vector<2x32xf32>
    %267 = arith.mulf %258, %207 : vector<2x32xf32>
    %268 = arith.mulf %252, %260 : vector<2x32xf32>
    %269 = arith.addf %267, %268 : vector<2x32xf32>
    %270 = math.tanh %269 : vector<2x32xf32>
    %271 = arith.mulf %266, %270 : vector<2x32xf32>
    %272 = arith.truncf %240 : vector<2x32xf32> to vector<2x32xbf16>
    %cst_59 = arith.constant dense<0.000000e+00> : vector<2x128xf32>
    %273 = tpu.matmul %272, %13, %cst_59 {dimension_numbers = #tpu.dot_dimension_numbers<[1], [0], [0], [1], [0, 0, 1, 1], [], []>} : vector<2x32xbf16>, vector<32x128xbf16>, vector<2x128xf32> -> vector<2x128xf32>
    %274 = vector.extract_strided_slice %5 {offsets = [8, 0], sizes = [2, 128], strides = [1, 1]} : vector<12x128xf32> to vector<2x128xf32>
    %275 = arith.addf %274, %273 : vector<2x128xf32>
    %276 = vector.broadcast %17 : vector<1x128xf32> to vector<2x128xf32>
    %277 = arith.addf %275, %276 : vector<2x128xf32>
    %278 = vector.extract_strided_slice %277 {offsets = [0, 0], sizes = [2, 32], strides = [1, 1]} : vector<2x128xf32> to vector<2x32xf32>
    %279 = arith.negf %278 : vector<2x32xf32>
    %280 = math.exp %279 : vector<2x32xf32>
    %cst_60 = arith.constant 1.000000e+00 : f32
    %281 = vector.broadcast %cst_60 : f32 to vector<2x32xf32>
    %282 = arith.addf %281, %280 : vector<2x32xf32>
    %283 = arith.divf %281, %282 : vector<2x32xf32>
    %284 = vector.extract_strided_slice %277 {offsets = [0, 32], sizes = [2, 32], strides = [1, 1]} : vector<2x128xf32> to vector<2x32xf32>
    %285 = arith.negf %284 : vector<2x32xf32>
    %286 = math.exp %285 : vector<2x32xf32>
    %cst_61 = arith.constant 1.000000e+00 : f32
    %287 = vector.broadcast %cst_61 : f32 to vector<2x32xf32>
    %288 = arith.addf %287, %286 : vector<2x32xf32>
    %289 = arith.divf %287, %288 : vector<2x32xf32>
    %290 = vector.extract_strided_slice %277 {offsets = [0, 64], sizes = [2, 32], strides = [1, 1]} : vector<2x128xf32> to vector<2x32xf32>
    %291 = math.tanh %290 : vector<2x32xf32>
    %292 = vector.extract_strided_slice %277 {offsets = [0, 96], sizes = [2, 32], strides = [1, 1]} : vector<2x128xf32> to vector<2x32xf32>
    %293 = arith.negf %292 : vector<2x32xf32>
    %294 = math.exp %293 : vector<2x32xf32>
    %cst_62 = arith.constant 1.000000e+00 : f32
    %295 = vector.broadcast %cst_62 : f32 to vector<2x32xf32>
    %296 = arith.addf %295, %294 : vector<2x32xf32>
    %297 = arith.divf %295, %296 : vector<2x32xf32>
    %298 = arith.mulf %289, %238 : vector<2x32xf32>
    %299 = arith.mulf %283, %291 : vector<2x32xf32>
    %300 = arith.addf %298, %299 : vector<2x32xf32>
    %301 = math.tanh %300 : vector<2x32xf32>
    %302 = arith.mulf %297, %301 : vector<2x32xf32>
    %303 = arith.truncf %271 : vector<2x32xf32> to vector<2x32xbf16>
    %cst_63 = arith.constant dense<0.000000e+00> : vector<2x128xf32>
    %304 = tpu.matmul %303, %15, %cst_63 {dimension_numbers = #tpu.dot_dimension_numbers<[1], [0], [0], [1], [0, 0, 1, 1], [], []>} : vector<2x32xbf16>, vector<32x128xbf16>, vector<2x128xf32> -> vector<2x128xf32>
    %305 = vector.extract_strided_slice %11 {offsets = [8, 0], sizes = [2, 128], strides = [1, 1]} : vector<12x128xf32> to vector<2x128xf32>
    %306 = arith.addf %305, %304 : vector<2x128xf32>
    %307 = vector.broadcast %19 : vector<1x128xf32> to vector<2x128xf32>
    %308 = arith.addf %306, %307 : vector<2x128xf32>
    %309 = vector.extract_strided_slice %308 {offsets = [0, 0], sizes = [2, 32], strides = [1, 1]} : vector<2x128xf32> to vector<2x32xf32>
    %310 = arith.negf %309 : vector<2x32xf32>
    %311 = math.exp %310 : vector<2x32xf32>
    %cst_64 = arith.constant 1.000000e+00 : f32
    %312 = vector.broadcast %cst_64 : f32 to vector<2x32xf32>
    %313 = arith.addf %312, %311 : vector<2x32xf32>
    %314 = arith.divf %312, %313 : vector<2x32xf32>
    %315 = vector.extract_strided_slice %308 {offsets = [0, 32], sizes = [2, 32], strides = [1, 1]} : vector<2x128xf32> to vector<2x32xf32>
    %316 = arith.negf %315 : vector<2x32xf32>
    %317 = math.exp %316 : vector<2x32xf32>
    %cst_65 = arith.constant 1.000000e+00 : f32
    %318 = vector.broadcast %cst_65 : f32 to vector<2x32xf32>
    %319 = arith.addf %318, %317 : vector<2x32xf32>
    %320 = arith.divf %318, %319 : vector<2x32xf32>
    %321 = vector.extract_strided_slice %308 {offsets = [0, 64], sizes = [2, 32], strides = [1, 1]} : vector<2x128xf32> to vector<2x32xf32>
    %322 = math.tanh %321 : vector<2x32xf32>
    %323 = vector.extract_strided_slice %308 {offsets = [0, 96], sizes = [2, 32], strides = [1, 1]} : vector<2x128xf32> to vector<2x32xf32>
    %324 = arith.negf %323 : vector<2x32xf32>
    %325 = math.exp %324 : vector<2x32xf32>
    %cst_66 = arith.constant 1.000000e+00 : f32
    %326 = vector.broadcast %cst_66 : f32 to vector<2x32xf32>
    %327 = arith.addf %326, %325 : vector<2x32xf32>
    %328 = arith.divf %326, %327 : vector<2x32xf32>
    %329 = arith.mulf %320, %269 : vector<2x32xf32>
    %330 = arith.mulf %314, %322 : vector<2x32xf32>
    %331 = arith.addf %329, %330 : vector<2x32xf32>
    %332 = math.tanh %331 : vector<2x32xf32>
    %333 = arith.mulf %328, %332 : vector<2x32xf32>
    %334 = arith.truncf %302 : vector<2x32xf32> to vector<2x32xbf16>
    %cst_67 = arith.constant dense<0.000000e+00> : vector<2x128xf32>
    %335 = tpu.matmul %334, %13, %cst_67 {dimension_numbers = #tpu.dot_dimension_numbers<[1], [0], [0], [1], [0, 0, 1, 1], [], []>} : vector<2x32xbf16>, vector<32x128xbf16>, vector<2x128xf32> -> vector<2x128xf32>
    %336 = vector.extract_strided_slice %5 {offsets = [10, 0], sizes = [2, 128], strides = [1, 1]} : vector<12x128xf32> to vector<2x128xf32>
    %337 = arith.addf %336, %335 : vector<2x128xf32>
    %338 = vector.broadcast %17 : vector<1x128xf32> to vector<2x128xf32>
    %339 = arith.addf %337, %338 : vector<2x128xf32>
    %340 = vector.extract_strided_slice %339 {offsets = [0, 0], sizes = [2, 32], strides = [1, 1]} : vector<2x128xf32> to vector<2x32xf32>
    %341 = arith.negf %340 : vector<2x32xf32>
    %342 = math.exp %341 : vector<2x32xf32>
    %cst_68 = arith.constant 1.000000e+00 : f32
    %343 = vector.broadcast %cst_68 : f32 to vector<2x32xf32>
    %344 = arith.addf %343, %342 : vector<2x32xf32>
    %345 = arith.divf %343, %344 : vector<2x32xf32>
    %346 = vector.extract_strided_slice %339 {offsets = [0, 32], sizes = [2, 32], strides = [1, 1]} : vector<2x128xf32> to vector<2x32xf32>
    %347 = arith.negf %346 : vector<2x32xf32>
    %348 = math.exp %347 : vector<2x32xf32>
    %cst_69 = arith.constant 1.000000e+00 : f32
    %349 = vector.broadcast %cst_69 : f32 to vector<2x32xf32>
    %350 = arith.addf %349, %348 : vector<2x32xf32>
    %351 = arith.divf %349, %350 : vector<2x32xf32>
    %352 = vector.extract_strided_slice %339 {offsets = [0, 64], sizes = [2, 32], strides = [1, 1]} : vector<2x128xf32> to vector<2x32xf32>
    %353 = math.tanh %352 : vector<2x32xf32>
    %354 = vector.extract_strided_slice %339 {offsets = [0, 96], sizes = [2, 32], strides = [1, 1]} : vector<2x128xf32> to vector<2x32xf32>
    %355 = arith.negf %354 : vector<2x32xf32>
    %356 = math.exp %355 : vector<2x32xf32>
    %cst_70 = arith.constant 1.000000e+00 : f32
    %357 = vector.broadcast %cst_70 : f32 to vector<2x32xf32>
    %358 = arith.addf %357, %356 : vector<2x32xf32>
    %359 = arith.divf %357, %358 : vector<2x32xf32>
    %360 = arith.mulf %351, %300 : vector<2x32xf32>
    %361 = arith.mulf %345, %353 : vector<2x32xf32>
    %362 = arith.addf %360, %361 : vector<2x32xf32>
    %363 = math.tanh %362 : vector<2x32xf32>
    %364 = arith.mulf %359, %363 : vector<2x32xf32>
    %365 = arith.truncf %333 : vector<2x32xf32> to vector<2x32xbf16>
    %cst_71 = arith.constant dense<0.000000e+00> : vector<2x128xf32>
    %366 = tpu.matmul %365, %15, %cst_71 {dimension_numbers = #tpu.dot_dimension_numbers<[1], [0], [0], [1], [0, 0, 1, 1], [], []>} : vector<2x32xbf16>, vector<32x128xbf16>, vector<2x128xf32> -> vector<2x128xf32>
    %367 = vector.extract_strided_slice %11 {offsets = [10, 0], sizes = [2, 128], strides = [1, 1]} : vector<12x128xf32> to vector<2x128xf32>
    %368 = arith.addf %367, %366 : vector<2x128xf32>
    %369 = vector.broadcast %19 : vector<1x128xf32> to vector<2x128xf32>
    %370 = arith.addf %368, %369 : vector<2x128xf32>
    %371 = vector.extract_strided_slice %370 {offsets = [0, 0], sizes = [2, 32], strides = [1, 1]} : vector<2x128xf32> to vector<2x32xf32>
    %372 = arith.negf %371 : vector<2x32xf32>
    %373 = math.exp %372 : vector<2x32xf32>
    %cst_72 = arith.constant 1.000000e+00 : f32
    %374 = vector.broadcast %cst_72 : f32 to vector<2x32xf32>
    %375 = arith.addf %374, %373 : vector<2x32xf32>
    %376 = arith.divf %374, %375 : vector<2x32xf32>
    %377 = vector.extract_strided_slice %370 {offsets = [0, 32], sizes = [2, 32], strides = [1, 1]} : vector<2x128xf32> to vector<2x32xf32>
    %378 = arith.negf %377 : vector<2x32xf32>
    %379 = math.exp %378 : vector<2x32xf32>
    %cst_73 = arith.constant 1.000000e+00 : f32
    %380 = vector.broadcast %cst_73 : f32 to vector<2x32xf32>
    %381 = arith.addf %380, %379 : vector<2x32xf32>
    %382 = arith.divf %380, %381 : vector<2x32xf32>
    %383 = vector.extract_strided_slice %370 {offsets = [0, 64], sizes = [2, 32], strides = [1, 1]} : vector<2x128xf32> to vector<2x32xf32>
    %384 = math.tanh %383 : vector<2x32xf32>
    %385 = vector.extract_strided_slice %370 {offsets = [0, 96], sizes = [2, 32], strides = [1, 1]} : vector<2x128xf32> to vector<2x32xf32>
    %386 = arith.negf %385 : vector<2x32xf32>
    %387 = math.exp %386 : vector<2x32xf32>
    %cst_74 = arith.constant 1.000000e+00 : f32
    %388 = vector.broadcast %cst_74 : f32 to vector<2x32xf32>
    %389 = arith.addf %388, %387 : vector<2x32xf32>
    %390 = arith.divf %388, %389 : vector<2x32xf32>
    %391 = arith.mulf %382, %331 : vector<2x32xf32>
    %392 = arith.mulf %376, %384 : vector<2x32xf32>
    %393 = arith.addf %391, %392 : vector<2x32xf32>
    %394 = math.tanh %393 : vector<2x32xf32>
    %395 = arith.mulf %390, %394 : vector<2x32xf32>
    %396 = arith.truncf %364 : vector<2x32xf32> to vector<2x32xbf16>
    %c0_75 = arith.constant 0 : index
    %c0_76 = arith.constant 0 : index
    %c0_77 = arith.constant 0 : index
    %397 = vector.load %arg5[%c0_75, %c0_76, %c0_77] : memref<2x32x32xbf16, #tpu.memory_space<vmem>>, vector<1x32x32xbf16>
    %398 = vector.shape_cast %397 : vector<1x32x32xbf16> to vector<32x32xbf16>
    %cst_78 = arith.constant dense<0.000000e+00> : vector<2x32xf32>
    %399 = tpu.matmul %396, %398, %cst_78 {dimension_numbers = #tpu.dot_dimension_numbers<[1], [0], [0], [1], [0, 0, 1, 1], [], []>} : vector<2x32xbf16>, vector<32x32xbf16>, vector<2x32xf32> -> vector<2x32xf32>
    %400 = arith.truncf %395 : vector<2x32xf32> to vector<2x32xbf16>
    %c1_79 = arith.constant 1 : index
    %c0_80 = arith.constant 0 : index
    %c0_81 = arith.constant 0 : index
    %401 = vector.load %arg5[%c1_79, %c0_80, %c0_81] : memref<2x32x32xbf16, #tpu.memory_space<vmem>>, vector<1x32x32xbf16>
    %402 = vector.shape_cast %401 : vector<1x32x32xbf16> to vector<32x32xbf16>
    %cst_82 = arith.constant dense<0.000000e+00> : vector<2x32xf32>
    %403 = tpu.matmul %400, %402, %cst_82 {dimension_numbers = #tpu.dot_dimension_numbers<[1], [0], [0], [1], [0, 0, 1, 1], [], []>} : vector<2x32xbf16>, vector<32x32xbf16>, vector<2x32xf32> -> vector<2x32xf32>
    %404 = arith.addf %399, %403 : vector<2x32xf32>
    %c0_83 = arith.constant 0 : index
    %c0_84 = arith.constant 0 : index
    %405 = vector.load %arg6[%c0_83, %c0_84] : memref<1x32xf32, #tpu.memory_space<vmem>>, vector<1x32xf32>
    %406 = vector.broadcast %405 : vector<1x32xf32> to vector<2x32xf32>
    %407 = arith.addf %404, %406 : vector<2x32xf32>
    %408 = math.tanh %407 : vector<2x32xf32>
    %c0_85 = arith.constant 0 : index
    %c0_86 = arith.constant 0 : index
    %409 = vector.load %arg7[%c0_85, %c0_86] : memref<2x32xf32, #tpu.memory_space<vmem>>, vector<2x32xf32>
    tpu.vector_store %arg7[%c0_85, %c0_86], %408 {strides = array<i32>} : memref<2x32xf32, #tpu.memory_space<vmem>>, vector<2x32xf32>,
    return
  }
  func.func @transform_0(%arg0: i32) -> (i32, i32, i32) {
    %c0_i32 = arith.constant 0 : i32
    %c0_i32_0 = arith.constant 0 : i32
    %c0_i32_1 = arith.constant 0 : i32
    %c0_i32_2 = arith.constant 0 : i32
    return %c0_i32, %c0_i32_0, %c0_i32_1 : i32, i32, i32
  }
  func.func @transform_1(%arg0: i32) -> (i32, i32, i32) {
    %c0_i32 = arith.constant 0 : i32
    %c0_i32_0 = arith.constant 0 : i32
    %c0_i32_1 = arith.constant 0 : i32
    %c0_i32_2 = arith.constant 0 : i32
    return %c0_i32, %c0_i32_0, %c0_i32_1 : i32, i32, i32
  }
  func.func @transform_2(%arg0: i32) -> (i32, i32, i32) {
    %c0_i32 = arith.constant 0 : i32
    %c0_i32_0 = arith.constant 0 : i32
    %c0_i32_1 = arith.constant 0 : i32
    %c0_i32_2 = arith.constant 0 : i32
    return %c0_i32, %c0_i32_0, %c0_i32_1 : i32, i32, i32
  }
  func.func @transform_3(%arg0: i32) -> (i32, i32, i32) {
    %c0_i32 = arith.constant 0 : i32
    %c0_i32_0 = arith.constant 0 : i32
    %c0_i32_1 = arith.constant 0 : i32
    %c0_i32_2 = arith.constant 0 : i32
    return %c0_i32, %c0_i32_0, %c0_i32_1 : i32, i32, i32
  }
  func.func @transform_4(%arg0: i32) -> (i32, i32, i32) {
    %c0_i32 = arith.constant 0 : i32
    %c0_i32_0 = arith.constant 0 : i32
    %c0_i32_1 = arith.constant 0 : i32
    %c0_i32_2 = arith.constant 0 : i32
    return %c0_i32, %c0_i32_0, %c0_i32_1 : i32, i32, i32
  }
  func.func @transform_5(%arg0: i32) -> (i32, i32) {
    %c0_i32 = arith.constant 0 : i32
    %c0_i32_0 = arith.constant 0 : i32
    %c0_i32_1 = arith.constant 0 : i32
    return %c0_i32, %c0_i32_0 : i32, i32
  }
  func.func @transform_6(%arg0: i32) -> (i32, i32) {
    %c0_i32 = arith.constant 0 : i32
    %c0_i32_0 = arith.constant 0 : i32
    %c0_i32_1 = arith.constant 0 : i32
    return %c0_i32, %c0_i32_0 : i32, i32
  }
}

module attributes {stable_mosaic.version = 11 : i64} {
  func.func @transformer_kernel(%arg0: i32, %arg1: memref<16x32xf32, #tpu.memory_space<vmem>>, %arg2: memref<16x32xf32, #tpu.memory_space<vmem>>, %arg3: memref<16x32xf32, #tpu.memory_space<vmem>>, %arg4: memref<16x16xf32, #tpu.memory_space<vmem>>, %arg5: memref<32x32xbf16, #tpu.memory_space<vmem>>, %arg6: memref<1x32xf32, #tpu.memory_space<vmem>>, %arg7: memref<32x32xbf16, #tpu.memory_space<vmem>>, %arg8: memref<1x32xf32, #tpu.memory_space<vmem>>, %arg9: memref<32x32xbf16, #tpu.memory_space<vmem>>, %arg10: memref<1x32xf32, #tpu.memory_space<vmem>>, %arg11: memref<32x32xbf16, #tpu.memory_space<vmem>>, %arg12: memref<1x32xf32, #tpu.memory_space<vmem>>, %arg13: memref<1x32xf32, #tpu.memory_space<vmem>>, %arg14: memref<1x32xf32, #tpu.memory_space<vmem>>, %arg15: memref<1x32xf32, #tpu.memory_space<vmem>>, %arg16: memref<1x32xf32, #tpu.memory_space<vmem>>, %arg17: memref<32x64xbf16, #tpu.memory_space<vmem>>, %arg18: memref<1x64xf32, #tpu.memory_space<vmem>>, %arg19: memref<64x32xbf16, #tpu.memory_space<vmem>>, %arg20: memref<1x32xf32, #tpu.memory_space<vmem>>, %arg21: memref<32x6xbf16, #tpu.memory_space<vmem>>, %arg22: memref<1x6xf32, #tpu.memory_space<vmem>>, %arg23: memref<16x6xf32, #tpu.memory_space<vmem>>) attributes {dimension_semantics = [#tpu.dimension_semantics<arbitrary>], iteration_bounds = array<i64: 1>, scalar_prefetch = 0 : i64, scratch_operands = 0 : i64, tpu.core_type = #tpu.core_type<tc>, window_params = [{pipeline_mode = #tpu.pipeline_mode<synchronous>, transform_indices = @transform_0, window_bounds = array<i64: 16, 32>}, {pipeline_mode = #tpu.pipeline_mode<synchronous>, transform_indices = @transform_1, window_bounds = array<i64: 16, 32>}, {pipeline_mode = #tpu.pipeline_mode<synchronous>, transform_indices = @transform_2, window_bounds = array<i64: 16, 32>}, {pipeline_mode = #tpu.pipeline_mode<synchronous>, transform_indices = @transform_3, window_bounds = array<i64: 16, 16>}, {pipeline_mode = #tpu.pipeline_mode<synchronous>, transform_indices = @transform_4, window_bounds = array<i64: 32, 32>}, {pipeline_mode = #tpu.pipeline_mode<synchronous>, transform_indices = @transform_5, window_bounds = array<i64: 1, 32>}, {pipeline_mode = #tpu.pipeline_mode<synchronous>, transform_indices = @transform_6, window_bounds = array<i64: 32, 32>}, {pipeline_mode = #tpu.pipeline_mode<synchronous>, transform_indices = @transform_7, window_bounds = array<i64: 1, 32>}, {pipeline_mode = #tpu.pipeline_mode<synchronous>, transform_indices = @transform_8, window_bounds = array<i64: 32, 32>}, {pipeline_mode = #tpu.pipeline_mode<synchronous>, transform_indices = @transform_9, window_bounds = array<i64: 1, 32>}, {pipeline_mode = #tpu.pipeline_mode<synchronous>, transform_indices = @transform_10, window_bounds = array<i64: 32, 32>}, {pipeline_mode = #tpu.pipeline_mode<synchronous>, transform_indices = @transform_11, window_bounds = array<i64: 1, 32>}, {pipeline_mode = #tpu.pipeline_mode<synchronous>, transform_indices = @transform_12, window_bounds = array<i64: 1, 32>}, {pipeline_mode = #tpu.pipeline_mode<synchronous>, transform_indices = @transform_13, window_bounds = array<i64: 1, 32>}, {pipeline_mode = #tpu.pipeline_mode<synchronous>, transform_indices = @transform_14, window_bounds = array<i64: 1, 32>}, {pipeline_mode = #tpu.pipeline_mode<synchronous>, transform_indices = @transform_15, window_bounds = array<i64: 1, 32>}, {pipeline_mode = #tpu.pipeline_mode<synchronous>, transform_indices = @transform_16, window_bounds = array<i64: 32, 64>}, {pipeline_mode = #tpu.pipeline_mode<synchronous>, transform_indices = @transform_17, window_bounds = array<i64: 1, 64>}, {pipeline_mode = #tpu.pipeline_mode<synchronous>, transform_indices = @transform_18, window_bounds = array<i64: 64, 32>}, {pipeline_mode = #tpu.pipeline_mode<synchronous>, transform_indices = @transform_19, window_bounds = array<i64: 1, 32>}, {pipeline_mode = #tpu.pipeline_mode<synchronous>, transform_indices = @transform_20, window_bounds = array<i64: 32, 6>}, {pipeline_mode = #tpu.pipeline_mode<synchronous>, transform_indices = @transform_21, window_bounds = array<i64: 1, 6>}, {pipeline_mode = #tpu.pipeline_mode<synchronous>, transform_indices = @transform_22, window_bounds = array<i64: 16, 6>}]} {
    %c0 = arith.constant 0 : index
    %c0_0 = arith.constant 0 : index
    %0 = vector.load %arg1[%c0, %c0_0] : memref<16x32xf32, #tpu.memory_space<vmem>>, vector<16x32xf32>
    %cst = arith.constant 5.65685415 : f32
    %1 = vector.broadcast %cst : f32 to vector<16x32xf32>
    %2 = arith.mulf %0, %1 : vector<16x32xf32>
    %c0_1 = arith.constant 0 : index
    %c0_2 = arith.constant 0 : index
    %3 = vector.load %arg2[%c0_1, %c0_2] : memref<16x32xf32, #tpu.memory_space<vmem>>, vector<16x32xf32>
    %4 = arith.addf %2, %3 : vector<16x32xf32>
    %c0_3 = arith.constant 0 : index
    %c0_4 = arith.constant 0 : index
    %5 = vector.load %arg3[%c0_3, %c0_4] : memref<16x32xf32, #tpu.memory_space<vmem>>, vector<16x32xf32>
    %6 = arith.addf %4, %5 : vector<16x32xf32>
    %7 = arith.truncf %6 : vector<16x32xf32> to vector<16x32xbf16>
    %c0_5 = arith.constant 0 : index
    %c0_6 = arith.constant 0 : index
    %8 = vector.load %arg5[%c0_5, %c0_6] : memref<32x32xbf16, #tpu.memory_space<vmem>>, vector<32x32xbf16>
    %cst_7 = arith.constant dense<0.000000e+00> : vector<16x32xf32>
    %9 = tpu.matmul %7, %8, %cst_7 {dimension_numbers = #tpu.dot_dimension_numbers<[1], [0], [0], [1], [0, 0, 1, 1], [], []>} : vector<16x32xbf16>, vector<32x32xbf16>, vector<16x32xf32> -> vector<16x32xf32>
    %c0_8 = arith.constant 0 : index
    %c0_9 = arith.constant 0 : index
    %10 = vector.load %arg6[%c0_8, %c0_9] : memref<1x32xf32, #tpu.memory_space<vmem>>, vector<1x32xf32>
    %11 = vector.broadcast %10 : vector<1x32xf32> to vector<16x32xf32>
    %12 = arith.addf %9, %11 : vector<16x32xf32>
    %13 = arith.truncf %6 : vector<16x32xf32> to vector<16x32xbf16>
    %c0_10 = arith.constant 0 : index
    %c0_11 = arith.constant 0 : index
    %14 = vector.load %arg7[%c0_10, %c0_11] : memref<32x32xbf16, #tpu.memory_space<vmem>>, vector<32x32xbf16>
    %cst_12 = arith.constant dense<0.000000e+00> : vector<16x32xf32>
    %15 = tpu.matmul %13, %14, %cst_12 {dimension_numbers = #tpu.dot_dimension_numbers<[1], [0], [0], [1], [0, 0, 1, 1], [], []>} : vector<16x32xbf16>, vector<32x32xbf16>, vector<16x32xf32> -> vector<16x32xf32>
    %c0_13 = arith.constant 0 : index
    %c0_14 = arith.constant 0 : index
    %16 = vector.load %arg8[%c0_13, %c0_14] : memref<1x32xf32, #tpu.memory_space<vmem>>, vector<1x32xf32>
    %17 = vector.broadcast %16 : vector<1x32xf32> to vector<16x32xf32>
    %18 = arith.addf %15, %17 : vector<16x32xf32>
    %19 = arith.truncf %6 : vector<16x32xf32> to vector<16x32xbf16>
    %c0_15 = arith.constant 0 : index
    %c0_16 = arith.constant 0 : index
    %20 = vector.load %arg9[%c0_15, %c0_16] : memref<32x32xbf16, #tpu.memory_space<vmem>>, vector<32x32xbf16>
    %cst_17 = arith.constant dense<0.000000e+00> : vector<16x32xf32>
    %21 = tpu.matmul %19, %20, %cst_17 {dimension_numbers = #tpu.dot_dimension_numbers<[1], [0], [0], [1], [0, 0, 1, 1], [], []>} : vector<16x32xbf16>, vector<32x32xbf16>, vector<16x32xf32> -> vector<16x32xf32>
    %c0_18 = arith.constant 0 : index
    %c0_19 = arith.constant 0 : index
    %22 = vector.load %arg10[%c0_18, %c0_19] : memref<1x32xf32, #tpu.memory_space<vmem>>, vector<1x32xf32>
    %23 = vector.broadcast %22 : vector<1x32xf32> to vector<16x32xf32>
    %24 = arith.addf %21, %23 : vector<16x32xf32>
    %25 = arith.truncf %12 : vector<16x32xf32> to vector<16x32xbf16>
    %26 = arith.truncf %18 : vector<16x32xf32> to vector<16x32xbf16>
    %27 = arith.truncf %24 : vector<16x32xf32> to vector<16x32xbf16>
    %c0_20 = arith.constant 0 : index
    %c0_21 = arith.constant 0 : index
    %28 = vector.load %arg4[%c0_20, %c0_21] : memref<16x16xf32, #tpu.memory_space<vmem>>, vector<16x16xf32>
    %c0_22 = arith.constant 0 : index
    %c0_23 = arith.constant 0 : index
    %29 = vector.load %arg11[%c0_22, %c0_23] : memref<32x32xbf16, #tpu.memory_space<vmem>>, vector<32x32xbf16>
    %cst_24 = arith.constant 0.000000e+00 : f32
    %30 = vector.broadcast %cst_24 : f32 to vector<16x32xf32>
    %31 = vector.extract_strided_slice %25 {offsets = [0, 0], sizes = [16, 8], strides = [1, 1]} : vector<16x32xbf16> to vector<16x8xbf16>
    %32 = vector.extract_strided_slice %26 {offsets = [0, 0], sizes = [16, 8], strides = [1, 1]} : vector<16x32xbf16> to vector<16x8xbf16>
    %cst_25 = arith.constant dense<0.000000e+00> : vector<16x16xf32>
    %33 = tpu.matmul %31, %32, %cst_25 {dimension_numbers = #tpu.dot_dimension_numbers<[1], [1], [0], [0], [0, 0, 1, 0], [], []>} : vector<16x8xbf16>, vector<16x8xbf16>, vector<16x16xf32> -> vector<16x16xf32>
    %cst_26 = arith.constant 0.353553385 : f32
    %34 = vector.broadcast %cst_26 : f32 to vector<16x16xf32>
    %35 = arith.mulf %33, %34 : vector<16x16xf32>
    %36 = arith.addf %35, %28 : vector<16x16xf32>
    %cst_27 = arith.constant dense<0xFF800000> : vector<16xf32>
    %37 = vector.multi_reduction <maximumf>, %36, %cst_27 [1] : vector<16x16xf32> to vector<16xf32>
    %38 = vector.shape_cast %37 : vector<16xf32> to vector<16x1xf32>
    %39 = vector.broadcast %38 : vector<16x1xf32> to vector<16x16xf32>
    %40 = arith.subf %36, %39 : vector<16x16xf32>
    %41 = math.exp %40 : vector<16x16xf32>
    %cst_28 = arith.constant dense<0.000000e+00> : vector<16xf32>
    %42 = vector.multi_reduction <add>, %41, %cst_28 [1] : vector<16x16xf32> to vector<16xf32>
    %43 = vector.shape_cast %42 : vector<16xf32> to vector<16x1xf32>
    %44 = tpu.reciprocal %43 {approx = true} : vector<16x1xf32> -> vector<16x1xf32>
    %45 = vector.broadcast %44 : vector<16x1xf32> to vector<16x16xf32>
    %46 = arith.mulf %41, %45 : vector<16x16xf32>
    %47 = arith.truncf %46 : vector<16x16xf32> to vector<16x16xbf16>
    %48 = vector.extract_strided_slice %27 {offsets = [0, 0], sizes = [16, 8], strides = [1, 1]} : vector<16x32xbf16> to vector<16x8xbf16>
    %cst_29 = arith.constant dense<0.000000e+00> : vector<16x8xf32>
    %49 = tpu.matmul %47, %48, %cst_29 {dimension_numbers = #tpu.dot_dimension_numbers<[1], [0], [0], [1], [0, 0, 1, 1], [], []>} : vector<16x16xbf16>, vector<16x8xbf16>, vector<16x8xf32> -> vector<16x8xf32>
    %50 = arith.truncf %49 : vector<16x8xf32> to vector<16x8xbf16>
    %51 = vector.extract_strided_slice %29 {offsets = [0, 0], sizes = [8, 32], strides = [1, 1]} : vector<32x32xbf16> to vector<8x32xbf16>
    %cst_30 = arith.constant dense<0.000000e+00> : vector<16x32xf32>
    %52 = tpu.matmul %50, %51, %cst_30 {dimension_numbers = #tpu.dot_dimension_numbers<[1], [0], [0], [1], [0, 0, 1, 1], [], []>} : vector<16x8xbf16>, vector<8x32xbf16>, vector<16x32xf32> -> vector<16x32xf32>
    %53 = arith.addf %30, %52 : vector<16x32xf32>
    %54 = vector.extract_strided_slice %25 {offsets = [0, 8], sizes = [16, 8], strides = [1, 1]} : vector<16x32xbf16> to vector<16x8xbf16>
    %55 = vector.extract_strided_slice %26 {offsets = [0, 8], sizes = [16, 8], strides = [1, 1]} : vector<16x32xbf16> to vector<16x8xbf16>
    %cst_31 = arith.constant dense<0.000000e+00> : vector<16x16xf32>
    %56 = tpu.matmul %54, %55, %cst_31 {dimension_numbers = #tpu.dot_dimension_numbers<[1], [1], [0], [0], [0, 0, 1, 0], [], []>} : vector<16x8xbf16>, vector<16x8xbf16>, vector<16x16xf32> -> vector<16x16xf32>
    %cst_32 = arith.constant 0.353553385 : f32
    %57 = vector.broadcast %cst_32 : f32 to vector<16x16xf32>
    %58 = arith.mulf %56, %57 : vector<16x16xf32>
    %59 = arith.addf %58, %28 : vector<16x16xf32>
    %cst_33 = arith.constant dense<0xFF800000> : vector<16xf32>
    %60 = vector.multi_reduction <maximumf>, %59, %cst_33 [1] : vector<16x16xf32> to vector<16xf32>
    %61 = vector.shape_cast %60 : vector<16xf32> to vector<16x1xf32>
    %62 = vector.broadcast %61 : vector<16x1xf32> to vector<16x16xf32>
    %63 = arith.subf %59, %62 : vector<16x16xf32>
    %64 = math.exp %63 : vector<16x16xf32>
    %cst_34 = arith.constant dense<0.000000e+00> : vector<16xf32>
    %65 = vector.multi_reduction <add>, %64, %cst_34 [1] : vector<16x16xf32> to vector<16xf32>
    %66 = vector.shape_cast %65 : vector<16xf32> to vector<16x1xf32>
    %67 = tpu.reciprocal %66 {approx = true} : vector<16x1xf32> -> vector<16x1xf32>
    %68 = vector.broadcast %67 : vector<16x1xf32> to vector<16x16xf32>
    %69 = arith.mulf %64, %68 : vector<16x16xf32>
    %70 = arith.truncf %69 : vector<16x16xf32> to vector<16x16xbf16>
    %71 = vector.extract_strided_slice %27 {offsets = [0, 8], sizes = [16, 8], strides = [1, 1]} : vector<16x32xbf16> to vector<16x8xbf16>
    %cst_35 = arith.constant dense<0.000000e+00> : vector<16x8xf32>
    %72 = tpu.matmul %70, %71, %cst_35 {dimension_numbers = #tpu.dot_dimension_numbers<[1], [0], [0], [1], [0, 0, 1, 1], [], []>} : vector<16x16xbf16>, vector<16x8xbf16>, vector<16x8xf32> -> vector<16x8xf32>
    %73 = arith.truncf %72 : vector<16x8xf32> to vector<16x8xbf16>
    %74 = vector.extract_strided_slice %29 {offsets = [8, 0], sizes = [8, 32], strides = [1, 1]} : vector<32x32xbf16> to vector<8x32xbf16>
    %cst_36 = arith.constant dense<0.000000e+00> : vector<16x32xf32>
    %75 = tpu.matmul %73, %74, %cst_36 {dimension_numbers = #tpu.dot_dimension_numbers<[1], [0], [0], [1], [0, 0, 1, 1], [], []>} : vector<16x8xbf16>, vector<8x32xbf16>, vector<16x32xf32> -> vector<16x32xf32>
    %76 = arith.addf %53, %75 : vector<16x32xf32>
    %77 = vector.extract_strided_slice %25 {offsets = [0, 16], sizes = [16, 8], strides = [1, 1]} : vector<16x32xbf16> to vector<16x8xbf16>
    %78 = vector.extract_strided_slice %26 {offsets = [0, 16], sizes = [16, 8], strides = [1, 1]} : vector<16x32xbf16> to vector<16x8xbf16>
    %cst_37 = arith.constant dense<0.000000e+00> : vector<16x16xf32>
    %79 = tpu.matmul %77, %78, %cst_37 {dimension_numbers = #tpu.dot_dimension_numbers<[1], [1], [0], [0], [0, 0, 1, 0], [], []>} : vector<16x8xbf16>, vector<16x8xbf16>, vector<16x16xf32> -> vector<16x16xf32>
    %cst_38 = arith.constant 0.353553385 : f32
    %80 = vector.broadcast %cst_38 : f32 to vector<16x16xf32>
    %81 = arith.mulf %79, %80 : vector<16x16xf32>
    %82 = arith.addf %81, %28 : vector<16x16xf32>
    %cst_39 = arith.constant dense<0xFF800000> : vector<16xf32>
    %83 = vector.multi_reduction <maximumf>, %82, %cst_39 [1] : vector<16x16xf32> to vector<16xf32>
    %84 = vector.shape_cast %83 : vector<16xf32> to vector<16x1xf32>
    %85 = vector.broadcast %84 : vector<16x1xf32> to vector<16x16xf32>
    %86 = arith.subf %82, %85 : vector<16x16xf32>
    %87 = math.exp %86 : vector<16x16xf32>
    %cst_40 = arith.constant dense<0.000000e+00> : vector<16xf32>
    %88 = vector.multi_reduction <add>, %87, %cst_40 [1] : vector<16x16xf32> to vector<16xf32>
    %89 = vector.shape_cast %88 : vector<16xf32> to vector<16x1xf32>
    %90 = tpu.reciprocal %89 {approx = true} : vector<16x1xf32> -> vector<16x1xf32>
    %91 = vector.broadcast %90 : vector<16x1xf32> to vector<16x16xf32>
    %92 = arith.mulf %87, %91 : vector<16x16xf32>
    %93 = arith.truncf %92 : vector<16x16xf32> to vector<16x16xbf16>
    %94 = vector.extract_strided_slice %27 {offsets = [0, 16], sizes = [16, 8], strides = [1, 1]} : vector<16x32xbf16> to vector<16x8xbf16>
    %cst_41 = arith.constant dense<0.000000e+00> : vector<16x8xf32>
    %95 = tpu.matmul %93, %94, %cst_41 {dimension_numbers = #tpu.dot_dimension_numbers<[1], [0], [0], [1], [0, 0, 1, 1], [], []>} : vector<16x16xbf16>, vector<16x8xbf16>, vector<16x8xf32> -> vector<16x8xf32>
    %96 = arith.truncf %95 : vector<16x8xf32> to vector<16x8xbf16>
    %97 = vector.extract_strided_slice %29 {offsets = [16, 0], sizes = [8, 32], strides = [1, 1]} : vector<32x32xbf16> to vector<8x32xbf16>
    %cst_42 = arith.constant dense<0.000000e+00> : vector<16x32xf32>
    %98 = tpu.matmul %96, %97, %cst_42 {dimension_numbers = #tpu.dot_dimension_numbers<[1], [0], [0], [1], [0, 0, 1, 1], [], []>} : vector<16x8xbf16>, vector<8x32xbf16>, vector<16x32xf32> -> vector<16x32xf32>
    %99 = arith.addf %76, %98 : vector<16x32xf32>
    %100 = vector.extract_strided_slice %25 {offsets = [0, 24], sizes = [16, 8], strides = [1, 1]} : vector<16x32xbf16> to vector<16x8xbf16>
    %101 = vector.extract_strided_slice %26 {offsets = [0, 24], sizes = [16, 8], strides = [1, 1]} : vector<16x32xbf16> to vector<16x8xbf16>
    %cst_43 = arith.constant dense<0.000000e+00> : vector<16x16xf32>
    %102 = tpu.matmul %100, %101, %cst_43 {dimension_numbers = #tpu.dot_dimension_numbers<[1], [1], [0], [0], [0, 0, 1, 0], [], []>} : vector<16x8xbf16>, vector<16x8xbf16>, vector<16x16xf32> -> vector<16x16xf32>
    %cst_44 = arith.constant 0.353553385 : f32
    %103 = vector.broadcast %cst_44 : f32 to vector<16x16xf32>
    %104 = arith.mulf %102, %103 : vector<16x16xf32>
    %105 = arith.addf %104, %28 : vector<16x16xf32>
    %cst_45 = arith.constant dense<0xFF800000> : vector<16xf32>
    %106 = vector.multi_reduction <maximumf>, %105, %cst_45 [1] : vector<16x16xf32> to vector<16xf32>
    %107 = vector.shape_cast %106 : vector<16xf32> to vector<16x1xf32>
    %108 = vector.broadcast %107 : vector<16x1xf32> to vector<16x16xf32>
    %109 = arith.subf %105, %108 : vector<16x16xf32>
    %110 = math.exp %109 : vector<16x16xf32>
    %cst_46 = arith.constant dense<0.000000e+00> : vector<16xf32>
    %111 = vector.multi_reduction <add>, %110, %cst_46 [1] : vector<16x16xf32> to vector<16xf32>
    %112 = vector.shape_cast %111 : vector<16xf32> to vector<16x1xf32>
    %113 = tpu.reciprocal %112 {approx = true} : vector<16x1xf32> -> vector<16x1xf32>
    %114 = vector.broadcast %113 : vector<16x1xf32> to vector<16x16xf32>
    %115 = arith.mulf %110, %114 : vector<16x16xf32>
    %116 = arith.truncf %115 : vector<16x16xf32> to vector<16x16xbf16>
    %117 = vector.extract_strided_slice %27 {offsets = [0, 24], sizes = [16, 8], strides = [1, 1]} : vector<16x32xbf16> to vector<16x8xbf16>
    %cst_47 = arith.constant dense<0.000000e+00> : vector<16x8xf32>
    %118 = tpu.matmul %116, %117, %cst_47 {dimension_numbers = #tpu.dot_dimension_numbers<[1], [0], [0], [1], [0, 0, 1, 1], [], []>} : vector<16x16xbf16>, vector<16x8xbf16>, vector<16x8xf32> -> vector<16x8xf32>
    %119 = arith.truncf %118 : vector<16x8xf32> to vector<16x8xbf16>
    %120 = vector.extract_strided_slice %29 {offsets = [24, 0], sizes = [8, 32], strides = [1, 1]} : vector<32x32xbf16> to vector<8x32xbf16>
    %cst_48 = arith.constant dense<0.000000e+00> : vector<16x32xf32>
    %121 = tpu.matmul %119, %120, %cst_48 {dimension_numbers = #tpu.dot_dimension_numbers<[1], [0], [0], [1], [0, 0, 1, 1], [], []>} : vector<16x8xbf16>, vector<8x32xbf16>, vector<16x32xf32> -> vector<16x32xf32>
    %122 = arith.addf %99, %121 : vector<16x32xf32>
    %c0_49 = arith.constant 0 : index
    %c0_50 = arith.constant 0 : index
    %123 = vector.load %arg12[%c0_49, %c0_50] : memref<1x32xf32, #tpu.memory_space<vmem>>, vector<1x32xf32>
    %124 = vector.broadcast %123 : vector<1x32xf32> to vector<16x32xf32>
    %125 = arith.addf %122, %124 : vector<16x32xf32>
    %126 = arith.addf %6, %125 : vector<16x32xf32>
    %c0_51 = arith.constant 0 : index
    %c0_52 = arith.constant 0 : index
    %127 = vector.load %arg13[%c0_51, %c0_52] : memref<1x32xf32, #tpu.memory_space<vmem>>, vector<1x32xf32>
    %c0_53 = arith.constant 0 : index
    %c0_54 = arith.constant 0 : index
    %128 = vector.load %arg14[%c0_53, %c0_54] : memref<1x32xf32, #tpu.memory_space<vmem>>, vector<1x32xf32>
    %cst_55 = arith.constant dense<0.000000e+00> : vector<16xf32>
    %129 = vector.multi_reduction <add>, %126, %cst_55 [1] : vector<16x32xf32> to vector<16xf32>
    %130 = vector.shape_cast %129 : vector<16xf32> to vector<16x1xf32>
    %cst_56 = arith.constant 3.200000e+01 : f32
    %131 = vector.broadcast %cst_56 : f32 to vector<16x1xf32>
    %132 = arith.divf %130, %131 : vector<16x1xf32>
    %133 = vector.broadcast %132 : vector<16x1xf32> to vector<16x32xf32>
    %134 = arith.subf %126, %133 : vector<16x32xf32>
    %135 = arith.mulf %134, %134 : vector<16x32xf32>
    %cst_57 = arith.constant dense<0.000000e+00> : vector<16xf32>
    %136 = vector.multi_reduction <add>, %135, %cst_57 [1] : vector<16x32xf32> to vector<16xf32>
    %137 = vector.shape_cast %136 : vector<16xf32> to vector<16x1xf32>
    %cst_58 = arith.constant 3.200000e+01 : f32
    %138 = vector.broadcast %cst_58 : f32 to vector<16x1xf32>
    %139 = arith.divf %137, %138 : vector<16x1xf32>
    %140 = vector.broadcast %132 : vector<16x1xf32> to vector<16x32xf32>
    %141 = arith.subf %126, %140 : vector<16x32xf32>
    %cst_59 = arith.constant 9.99999974E-6 : f32
    %142 = vector.broadcast %cst_59 : f32 to vector<16x1xf32>
    %143 = arith.addf %139, %142 : vector<16x1xf32>
    %144 = math.rsqrt %143 : vector<16x1xf32>
    %145 = vector.broadcast %144 : vector<16x1xf32> to vector<16x32xf32>
    %146 = arith.mulf %141, %145 : vector<16x32xf32>
    %147 = vector.broadcast %127 : vector<1x32xf32> to vector<16x32xf32>
    %148 = arith.mulf %146, %147 : vector<16x32xf32>
    %149 = vector.broadcast %128 : vector<1x32xf32> to vector<16x32xf32>
    %150 = arith.addf %148, %149 : vector<16x32xf32>
    %151 = arith.truncf %150 : vector<16x32xf32> to vector<16x32xbf16>
    %c0_60 = arith.constant 0 : index
    %c0_61 = arith.constant 0 : index
    %152 = vector.load %arg17[%c0_60, %c0_61] : memref<32x64xbf16, #tpu.memory_space<vmem>>, vector<32x64xbf16>
    %cst_62 = arith.constant dense<0.000000e+00> : vector<16x64xf32>
    %153 = tpu.matmul %151, %152, %cst_62 {dimension_numbers = #tpu.dot_dimension_numbers<[1], [0], [0], [1], [0, 0, 1, 1], [], []>} : vector<16x32xbf16>, vector<32x64xbf16>, vector<16x64xf32> -> vector<16x64xf32>
    %c0_63 = arith.constant 0 : index
    %c0_64 = arith.constant 0 : index
    %154 = vector.load %arg18[%c0_63, %c0_64] : memref<1x64xf32, #tpu.memory_space<vmem>>, vector<1x64xf32>
    %155 = vector.broadcast %154 : vector<1x64xf32> to vector<16x64xf32>
    %156 = arith.addf %153, %155 : vector<16x64xf32>
    %cst_65 = arith.constant 0.000000e+00 : f32
    %157 = vector.broadcast %cst_65 : f32 to vector<16x64xf32>
    %158 = arith.maximumf %156, %157 : vector<16x64xf32>
    %159 = arith.truncf %158 : vector<16x64xf32> to vector<16x64xbf16>
    %c0_66 = arith.constant 0 : index
    %c0_67 = arith.constant 0 : index
    %160 = vector.load %arg19[%c0_66, %c0_67] : memref<64x32xbf16, #tpu.memory_space<vmem>>, vector<64x32xbf16>
    %cst_68 = arith.constant dense<0.000000e+00> : vector<16x32xf32>
    %161 = tpu.matmul %159, %160, %cst_68 {dimension_numbers = #tpu.dot_dimension_numbers<[1], [0], [0], [1], [0, 0, 1, 1], [], []>} : vector<16x64xbf16>, vector<64x32xbf16>, vector<16x32xf32> -> vector<16x32xf32>
    %c0_69 = arith.constant 0 : index
    %c0_70 = arith.constant 0 : index
    %162 = vector.load %arg20[%c0_69, %c0_70] : memref<1x32xf32, #tpu.memory_space<vmem>>, vector<1x32xf32>
    %163 = vector.broadcast %162 : vector<1x32xf32> to vector<16x32xf32>
    %164 = arith.addf %161, %163 : vector<16x32xf32>
    %165 = arith.addf %150, %164 : vector<16x32xf32>
    %c0_71 = arith.constant 0 : index
    %c0_72 = arith.constant 0 : index
    %166 = vector.load %arg15[%c0_71, %c0_72] : memref<1x32xf32, #tpu.memory_space<vmem>>, vector<1x32xf32>
    %c0_73 = arith.constant 0 : index
    %c0_74 = arith.constant 0 : index
    %167 = vector.load %arg16[%c0_73, %c0_74] : memref<1x32xf32, #tpu.memory_space<vmem>>, vector<1x32xf32>
    %cst_75 = arith.constant dense<0.000000e+00> : vector<16xf32>
    %168 = vector.multi_reduction <add>, %165, %cst_75 [1] : vector<16x32xf32> to vector<16xf32>
    %169 = vector.shape_cast %168 : vector<16xf32> to vector<16x1xf32>
    %cst_76 = arith.constant 3.200000e+01 : f32
    %170 = vector.broadcast %cst_76 : f32 to vector<16x1xf32>
    %171 = arith.divf %169, %170 : vector<16x1xf32>
    %172 = vector.broadcast %171 : vector<16x1xf32> to vector<16x32xf32>
    %173 = arith.subf %165, %172 : vector<16x32xf32>
    %174 = arith.mulf %173, %173 : vector<16x32xf32>
    %cst_77 = arith.constant dense<0.000000e+00> : vector<16xf32>
    %175 = vector.multi_reduction <add>, %174, %cst_77 [1] : vector<16x32xf32> to vector<16xf32>
    %176 = vector.shape_cast %175 : vector<16xf32> to vector<16x1xf32>
    %cst_78 = arith.constant 3.200000e+01 : f32
    %177 = vector.broadcast %cst_78 : f32 to vector<16x1xf32>
    %178 = arith.divf %176, %177 : vector<16x1xf32>
    %179 = vector.broadcast %171 : vector<16x1xf32> to vector<16x32xf32>
    %180 = arith.subf %165, %179 : vector<16x32xf32>
    %cst_79 = arith.constant 9.99999974E-6 : f32
    %181 = vector.broadcast %cst_79 : f32 to vector<16x1xf32>
    %182 = arith.addf %178, %181 : vector<16x1xf32>
    %183 = math.rsqrt %182 : vector<16x1xf32>
    %184 = vector.broadcast %183 : vector<16x1xf32> to vector<16x32xf32>
    %185 = arith.mulf %180, %184 : vector<16x32xf32>
    %186 = vector.broadcast %166 : vector<1x32xf32> to vector<16x32xf32>
    %187 = arith.mulf %185, %186 : vector<16x32xf32>
    %188 = vector.broadcast %167 : vector<1x32xf32> to vector<16x32xf32>
    %189 = arith.addf %187, %188 : vector<16x32xf32>
    %190 = arith.truncf %189 : vector<16x32xf32> to vector<16x32xbf16>
    %c0_80 = arith.constant 0 : index
    %c0_81 = arith.constant 0 : index
    %191 = vector.load %arg21[%c0_80, %c0_81] : memref<32x6xbf16, #tpu.memory_space<vmem>>, vector<32x6xbf16>
    %cst_82 = arith.constant dense<0.000000e+00> : vector<16x6xf32>
    %192 = tpu.matmul %190, %191, %cst_82 {dimension_numbers = #tpu.dot_dimension_numbers<[1], [0], [0], [1], [0, 0, 1, 1], [], []>} : vector<16x32xbf16>, vector<32x6xbf16>, vector<16x6xf32> -> vector<16x6xf32>
    %c0_83 = arith.constant 0 : index
    %c0_84 = arith.constant 0 : index
    %193 = vector.load %arg22[%c0_83, %c0_84] : memref<1x6xf32, #tpu.memory_space<vmem>>, vector<1x6xf32>
    %194 = vector.broadcast %193 : vector<1x6xf32> to vector<16x6xf32>
    %195 = arith.addf %192, %194 : vector<16x6xf32>
    %c0_85 = arith.constant 0 : index
    %c0_86 = arith.constant 0 : index
    %196 = vector.load %arg23[%c0_85, %c0_86] : memref<16x6xf32, #tpu.memory_space<vmem>>, vector<16x6xf32>
    tpu.vector_store %arg23[%c0_85, %c0_86], %195 {strides = array<i32>} : memref<16x6xf32, #tpu.memory_space<vmem>>, vector<16x6xf32>,
    return
  }
  func.func @transform_0(%arg0: i32) -> (i32, i32) {
    %c0_i32 = arith.constant 0 : i32
    %c0_i32_0 = arith.constant 0 : i32
    %c0_i32_1 = arith.constant 0 : i32
    return %c0_i32, %c0_i32_0 : i32, i32
  }
  func.func @transform_1(%arg0: i32) -> (i32, i32) {
    %c0_i32 = arith.constant 0 : i32
    %c0_i32_0 = arith.constant 0 : i32
    %c0_i32_1 = arith.constant 0 : i32
    return %c0_i32, %c0_i32_0 : i32, i32
  }
  func.func @transform_2(%arg0: i32) -> (i32, i32) {
    %c0_i32 = arith.constant 0 : i32
    %c0_i32_0 = arith.constant 0 : i32
    %c0_i32_1 = arith.constant 0 : i32
    return %c0_i32, %c0_i32_0 : i32, i32
  }
  func.func @transform_3(%arg0: i32) -> (i32, i32) {
    %c0_i32 = arith.constant 0 : i32
    %c0_i32_0 = arith.constant 0 : i32
    %c0_i32_1 = arith.constant 0 : i32
    return %c0_i32, %c0_i32_0 : i32, i32
  }
  func.func @transform_4(%arg0: i32) -> (i32, i32) {
    %c0_i32 = arith.constant 0 : i32
    %c0_i32_0 = arith.constant 0 : i32
    %c0_i32_1 = arith.constant 0 : i32
    return %c0_i32, %c0_i32_0 : i32, i32
  }
  func.func @transform_5(%arg0: i32) -> (i32, i32) {
    %c0_i32 = arith.constant 0 : i32
    %c0_i32_0 = arith.constant 0 : i32
    %c0_i32_1 = arith.constant 0 : i32
    return %c0_i32, %c0_i32_0 : i32, i32
  }
  func.func @transform_6(%arg0: i32) -> (i32, i32) {
    %c0_i32 = arith.constant 0 : i32
    %c0_i32_0 = arith.constant 0 : i32
    %c0_i32_1 = arith.constant 0 : i32
    return %c0_i32, %c0_i32_0 : i32, i32
  }
  func.func @transform_7(%arg0: i32) -> (i32, i32) {
    %c0_i32 = arith.constant 0 : i32
    %c0_i32_0 = arith.constant 0 : i32
    %c0_i32_1 = arith.constant 0 : i32
    return %c0_i32, %c0_i32_0 : i32, i32
  }
  func.func @transform_8(%arg0: i32) -> (i32, i32) {
    %c0_i32 = arith.constant 0 : i32
    %c0_i32_0 = arith.constant 0 : i32
    %c0_i32_1 = arith.constant 0 : i32
    return %c0_i32, %c0_i32_0 : i32, i32
  }
  func.func @transform_9(%arg0: i32) -> (i32, i32) {
    %c0_i32 = arith.constant 0 : i32
    %c0_i32_0 = arith.constant 0 : i32
    %c0_i32_1 = arith.constant 0 : i32
    return %c0_i32, %c0_i32_0 : i32, i32
  }
  func.func @transform_10(%arg0: i32) -> (i32, i32) {
    %c0_i32 = arith.constant 0 : i32
    %c0_i32_0 = arith.constant 0 : i32
    %c0_i32_1 = arith.constant 0 : i32
    return %c0_i32, %c0_i32_0 : i32, i32
  }
  func.func @transform_11(%arg0: i32) -> (i32, i32) {
    %c0_i32 = arith.constant 0 : i32
    %c0_i32_0 = arith.constant 0 : i32
    %c0_i32_1 = arith.constant 0 : i32
    return %c0_i32, %c0_i32_0 : i32, i32
  }
  func.func @transform_12(%arg0: i32) -> (i32, i32) {
    %c0_i32 = arith.constant 0 : i32
    %c0_i32_0 = arith.constant 0 : i32
    %c0_i32_1 = arith.constant 0 : i32
    return %c0_i32, %c0_i32_0 : i32, i32
  }
  func.func @transform_13(%arg0: i32) -> (i32, i32) {
    %c0_i32 = arith.constant 0 : i32
    %c0_i32_0 = arith.constant 0 : i32
    %c0_i32_1 = arith.constant 0 : i32
    return %c0_i32, %c0_i32_0 : i32, i32
  }
  func.func @transform_14(%arg0: i32) -> (i32, i32) {
    %c0_i32 = arith.constant 0 : i32
    %c0_i32_0 = arith.constant 0 : i32
    %c0_i32_1 = arith.constant 0 : i32
    return %c0_i32, %c0_i32_0 : i32, i32
  }
  func.func @transform_15(%arg0: i32) -> (i32, i32) {
    %c0_i32 = arith.constant 0 : i32
    %c0_i32_0 = arith.constant 0 : i32
    %c0_i32_1 = arith.constant 0 : i32
    return %c0_i32, %c0_i32_0 : i32, i32
  }
  func.func @transform_16(%arg0: i32) -> (i32, i32) {
    %c0_i32 = arith.constant 0 : i32
    %c0_i32_0 = arith.constant 0 : i32
    %c0_i32_1 = arith.constant 0 : i32
    return %c0_i32, %c0_i32_0 : i32, i32
  }
  func.func @transform_17(%arg0: i32) -> (i32, i32) {
    %c0_i32 = arith.constant 0 : i32
    %c0_i32_0 = arith.constant 0 : i32
    %c0_i32_1 = arith.constant 0 : i32
    return %c0_i32, %c0_i32_0 : i32, i32
  }
  func.func @transform_18(%arg0: i32) -> (i32, i32) {
    %c0_i32 = arith.constant 0 : i32
    %c0_i32_0 = arith.constant 0 : i32
    %c0_i32_1 = arith.constant 0 : i32
    return %c0_i32, %c0_i32_0 : i32, i32
  }
  func.func @transform_19(%arg0: i32) -> (i32, i32) {
    %c0_i32 = arith.constant 0 : i32
    %c0_i32_0 = arith.constant 0 : i32
    %c0_i32_1 = arith.constant 0 : i32
    return %c0_i32, %c0_i32_0 : i32, i32
  }
  func.func @transform_20(%arg0: i32) -> (i32, i32) {
    %c0_i32 = arith.constant 0 : i32
    %c0_i32_0 = arith.constant 0 : i32
    %c0_i32_1 = arith.constant 0 : i32
    return %c0_i32, %c0_i32_0 : i32, i32
  }
  func.func @transform_21(%arg0: i32) -> (i32, i32) {
    %c0_i32 = arith.constant 0 : i32
    %c0_i32_0 = arith.constant 0 : i32
    %c0_i32_1 = arith.constant 0 : i32
    return %c0_i32, %c0_i32_0 : i32, i32
  }
  func.func @transform_22(%arg0: i32) -> (i32, i32) {
    %c0_i32 = arith.constant 0 : i32
    %c0_i32_0 = arith.constant 0 : i32
    %c0_i32_1 = arith.constant 0 : i32
    return %c0_i32, %c0_i32_0 : i32, i32
  }
}

module attributes {stable_mosaic.version = 11 : i64} {
  func.func @viterbi_kernel(%arg0: i32, %arg1: memref<8x6x2xf32, #tpu.memory_space<vmem>>, %arg2: memref<8x1x2xf32, #tpu.memory_space<vmem>>, %arg3: memref<6x6x1xf32, #tpu.memory_space<vmem>>, %arg4: memref<6x1xf32, #tpu.memory_space<vmem>>, %arg5: memref<6x1xf32, #tpu.memory_space<vmem>>, %arg6: memref<1x2xf32, #tpu.memory_space<vmem>>, %arg7: memref<8x2xi32, #tpu.memory_space<vmem>>, %arg8: memref<6x2xf32, #tpu.memory_space<vmem>>, %arg9: memref<8x6x2xi32, #tpu.memory_space<vmem>>) attributes {dimension_semantics = [#tpu.dimension_semantics<arbitrary>], iteration_bounds = array<i64: 1>, scalar_prefetch = 0 : i64, scratch_operands = 2 : i64, tpu.core_type = #tpu.core_type<tc>, window_params = [{pipeline_mode = #tpu.pipeline_mode<synchronous>, transform_indices = @transform_0, window_bounds = array<i64: 8, 6, 2>}, {pipeline_mode = #tpu.pipeline_mode<synchronous>, transform_indices = @transform_1, window_bounds = array<i64: 8, 1, 2>}, {pipeline_mode = #tpu.pipeline_mode<synchronous>, transform_indices = @transform_2, window_bounds = array<i64: 6, 6, 1>}, {pipeline_mode = #tpu.pipeline_mode<synchronous>, transform_indices = @transform_3, window_bounds = array<i64: 6, 1>}, {pipeline_mode = #tpu.pipeline_mode<synchronous>, transform_indices = @transform_4, window_bounds = array<i64: 6, 1>}, {pipeline_mode = #tpu.pipeline_mode<synchronous>, transform_indices = @transform_5, window_bounds = array<i64: 1, 2>}, {pipeline_mode = #tpu.pipeline_mode<synchronous>, transform_indices = @transform_6, window_bounds = array<i64: 8, 2>}]} {
    %c0 = arith.constant 0 : index
    %c0_0 = arith.constant 0 : index
    %c0_1 = arith.constant 0 : index
    %0 = vector.load %arg3[%c0, %c0_0, %c0_1] : memref<6x6x1xf32, #tpu.memory_space<vmem>>, vector<6x6x1xf32>
    %1 = tpu.iota {dimensions = array<i32: 0>} : vector<6x2xi32>
    %2 = vector.shape_cast %1 : vector<6x2xi32> to vector<6x1x2xi32>
    %3 = vector.broadcast %2 : vector<6x1x2xi32> to vector<6x6x2xi32>
    %4 = tpu.iota {dimensions = array<i32: 0>} : vector<8x2xi32>
    %c0_2 = arith.constant 0 : index
    %c0_3 = arith.constant 0 : index
    %5 = vector.load %arg4[%c0_2, %c0_3] : memref<6x1xf32, #tpu.memory_space<vmem>>, vector<6x1xf32>
    %c0_4 = arith.constant 0 : index
    %c0_5 = arith.constant 0 : index
    %c0_6 = arith.constant 0 : index
    %6 = vector.load %arg1[%c0_4, %c0_5, %c0_6] : memref<8x6x2xf32, #tpu.memory_space<vmem>>, vector<1x6x2xf32>
    %7 = vector.shape_cast %6 : vector<1x6x2xf32> to vector<6x2xf32>
    %8 = vector.broadcast %5 : vector<6x1xf32> to vector<6x2xf32>
    %9 = arith.addf %8, %7 : vector<6x2xf32>
    %c0_7 = arith.constant 0 : index
    %c0_8 = arith.constant 0 : index
    %10 = vector.load %arg8[%c0_7, %c0_8] : memref<6x2xf32, #tpu.memory_space<vmem>>, vector<6x2xf32>
    tpu.vector_store %arg8[%c0_7, %c0_8], %9 {strides = array<i32>} : memref<6x2xf32, #tpu.memory_space<vmem>>, vector<6x2xf32>,
    %c0_i32 = arith.constant 0 : i32
    %c7_i32 = arith.constant 7 : i32
    %11 = arith.addi %c0_i32, %c7_i32 : i32
    %c1_i32 = arith.constant 1 : i32
    scf.for %arg10 = %c0_i32 to %11 step %c1_i32  : i32 {
      %c1_i32_25 = arith.constant 1 : i32
      %34 = arith.muli %arg10, %c1_i32_25 : i32
      %c1_i32_26 = arith.constant 1 : i32
      %35 = arith.addi %c1_i32_26, %34 : i32
      %c0_27 = arith.constant 0 : index
      %c0_28 = arith.constant 0 : index
      %36 = vector.load %arg8[%c0_27, %c0_28] : memref<6x2xf32, #tpu.memory_space<vmem>>, vector<6x2xf32>
      %37 = vector.shape_cast %36 : vector<6x2xf32> to vector<6x1x2xf32>
      %38 = vector.broadcast %37 : vector<6x1x2xf32> to vector<6x6x2xf32>
      %39 = vector.broadcast %0 : vector<6x6x1xf32> to vector<6x6x2xf32>
      %40 = arith.addf %38, %39 : vector<6x6x2xf32>
      %cst_29 = arith.constant dense<0xFF800000> : vector<6x2xf32>
      %41 = vector.multi_reduction <maximumf>, %40, %cst_29 [0] : vector<6x6x2xf32> to vector<6x2xf32>
      %42 = vector.shape_cast %41 : vector<6x2xf32> to vector<1x6x2xf32>
      %43 = vector.broadcast %42 : vector<1x6x2xf32> to vector<6x6x2xf32>
      %44 = arith.cmpf oeq, %40, %43 : vector<6x6x2xf32>
      %c6_i32_30 = arith.constant 6 : i32
      %45 = vector.broadcast %c6_i32_30 : i32 to vector<6x6x2xi32>
      %46 = arith.select %44, %3, %45 : vector<6x6x2xi1>, vector<6x6x2xi32>
      %cst_31 = arith.constant dense<2147483647> : vector<6x2xi32>
      %47 = vector.multi_reduction <minsi>, %46, %cst_31 [0] : vector<6x6x2xi32> to vector<6x2xi32>
      %48 = arith.index_cast %35 : i32 to index
      %c0_32 = arith.constant 0 : index
      %c0_33 = arith.constant 0 : index
      %49 = vector.load %arg1[%48, %c0_32, %c0_33] : memref<8x6x2xf32, #tpu.memory_space<vmem>>, vector<1x6x2xf32>
      %50 = vector.shape_cast %49 : vector<1x6x2xf32> to vector<6x2xf32>
      %51 = arith.addf %41, %50 : vector<6x2xf32>
      %52 = arith.index_cast %35 : i32 to index
      %c0_34 = arith.constant 0 : index
      %c0_35 = arith.constant 0 : index
      %53 = vector.load %arg2[%52, %c0_34, %c0_35] : memref<8x1x2xf32, #tpu.memory_space<vmem>>, vector<1x1x2xf32>
      %54 = vector.shape_cast %53 : vector<1x1x2xf32> to vector<1x2xf32>
      %cst_36 = arith.constant 0.000000e+00 : f32
      %55 = vector.broadcast %cst_36 : f32 to vector<1x2xf32>
      %56 = arith.cmpf ogt, %54, %55 : vector<1x2xf32>
      %57 = vector.shape_cast %56 : vector<1x2xi1> to vector<1x2xi1>
      %58 = vector.broadcast %57 : vector<1x2xi1> to vector<6x2xi1>
      %59 = arith.select %58, %51, %36 : vector<6x2xi1>, vector<6x2xf32>
      %c0_37 = arith.constant 0 : index
      %c0_38 = arith.constant 0 : index
      %60 = vector.load %arg8[%c0_37, %c0_38] : memref<6x2xf32, #tpu.memory_space<vmem>>, vector<6x2xf32>
      tpu.vector_store %arg8[%c0_37, %c0_38], %59 {strides = array<i32>} : memref<6x2xf32, #tpu.memory_space<vmem>>, vector<6x2xf32>,
      %61 = arith.index_cast %35 : i32 to index
      %c0_39 = arith.constant 0 : index
      %c0_40 = arith.constant 0 : index
      %62 = vector.load %arg9[%61, %c0_39, %c0_40] : memref<8x6x2xi32, #tpu.memory_space<vmem>>, vector<1x6x2xi32>
      %63 = vector.shape_cast %62 : vector<1x6x2xi32> to vector<6x2xi32>
      %64 = vector.shape_cast %47 : vector<6x2xi32> to vector<1x6x2xi32>
      tpu.vector_store %arg9[%61, %c0_39, %c0_40], %64 {strides = array<i32>} : memref<8x6x2xi32, #tpu.memory_space<vmem>>, vector<1x6x2xi32>,
    }
    %c7_i32_9 = arith.constant 7 : i32
    %c0_10 = arith.constant 0 : index
    %c0_11 = arith.constant 0 : index
    %12 = vector.load %arg8[%c0_10, %c0_11] : memref<6x2xf32, #tpu.memory_space<vmem>>, vector<6x2xf32>
    %c0_12 = arith.constant 0 : index
    %c0_13 = arith.constant 0 : index
    %13 = vector.load %arg5[%c0_12, %c0_13] : memref<6x1xf32, #tpu.memory_space<vmem>>, vector<6x1xf32>
    %14 = vector.broadcast %13 : vector<6x1xf32> to vector<6x2xf32>
    %15 = arith.addf %12, %14 : vector<6x2xf32>
    %cst = arith.constant dense<0xFF800000> : vector<2xf32>
    %16 = vector.multi_reduction <maximumf>, %15, %cst [0] : vector<6x2xf32> to vector<2xf32>
    %17 = vector.shape_cast %16 : vector<2xf32> to vector<1x2xf32>
    %18 = vector.broadcast %17 : vector<1x2xf32> to vector<6x2xf32>
    %19 = arith.cmpf oeq, %15, %18 : vector<6x2xf32>
    %c6_i32 = arith.constant 6 : i32
    %20 = vector.broadcast %c6_i32 : i32 to vector<6x2xi32>
    %21 = arith.select %19, %1, %20 : vector<6x2xi1>, vector<6x2xi32>
    %cst_14 = arith.constant dense<2147483647> : vector<2xi32>
    %22 = vector.multi_reduction <minsi>, %21, %cst_14 [0] : vector<6x2xi32> to vector<2xi32>
    %23 = vector.shape_cast %22 : vector<2xi32> to vector<1x2xi32>
    %c0_15 = arith.constant 0 : index
    %c0_16 = arith.constant 0 : index
    %24 = vector.load %arg6[%c0_15, %c0_16] : memref<1x2xf32, #tpu.memory_space<vmem>>, vector<1x2xf32>
    tpu.vector_store %arg6[%c0_15, %c0_16], %17 {strides = array<i32>} : memref<1x2xf32, #tpu.memory_space<vmem>>, vector<1x2xf32>,
    %c0_i32_17 = arith.constant 0 : i32
    %25 = vector.broadcast %c0_i32_17 : i32 to vector<8x2xi32>
    %c0_i32_18 = arith.constant 0 : i32
    %c7_i32_19 = arith.constant 7 : i32
    %26 = arith.addi %c0_i32_18, %c7_i32_19 : i32
    %c1_i32_20 = arith.constant 1 : i32
    %27:2 = scf.for %arg10 = %c0_i32_18 to %26 step %c1_i32_20 iter_args(%arg11 = %23, %arg12 = %25) -> (vector<1x2xi32>, vector<8x2xi32>)  : i32 {
      %c7_i32_25 = arith.constant 7 : i32
      %34 = arith.subi %c7_i32_25, %arg10 : i32
      %35 = arith.index_cast %34 : i32 to index
      %c0_26 = arith.constant 0 : index
      %c0_27 = arith.constant 0 : index
      %36 = vector.load %arg2[%35, %c0_26, %c0_27] : memref<8x1x2xf32, #tpu.memory_space<vmem>>, vector<1x1x2xf32>
      %37 = vector.shape_cast %36 : vector<1x1x2xf32> to vector<1x2xf32>
      %cst_28 = arith.constant 0.000000e+00 : f32
      %38 = vector.broadcast %cst_28 : f32 to vector<1x2xf32>
      %39 = arith.cmpf ogt, %37, %38 : vector<1x2xf32>
      %40 = vector.broadcast %34 : i32 to vector<8x2xi32>
      %41 = arith.cmpi eq, %4, %40 : vector<8x2xi32>
      %c0_i32_29 = arith.constant 0 : i32
      %42 = vector.broadcast %c0_i32_29 : i32 to vector<1x2xi32>
      %43 = arith.select %39, %arg11, %42 : vector<1x2xi1>, vector<1x2xi32>
      %44 = vector.shape_cast %43 : vector<1x2xi32> to vector<1x2xi32>
      %45 = vector.broadcast %44 : vector<1x2xi32> to vector<8x2xi32>
      %46 = arith.select %41, %45, %arg12 : vector<8x2xi1>, vector<8x2xi32>
      %47 = vector.broadcast %arg11 : vector<1x2xi32> to vector<6x2xi32>
      %48 = arith.cmpi eq, %1, %47 : vector<6x2xi32>
      %49 = arith.index_cast %34 : i32 to index
      %c0_30 = arith.constant 0 : index
      %c0_31 = arith.constant 0 : index
      %50 = vector.load %arg9[%49, %c0_30, %c0_31] : memref<8x6x2xi32, #tpu.memory_space<vmem>>, vector<1x6x2xi32>
      %51 = vector.shape_cast %50 : vector<1x6x2xi32> to vector<6x2xi32>
      %c0_i32_32 = arith.constant 0 : i32
      %52 = vector.broadcast %c0_i32_32 : i32 to vector<6x2xi32>
      %53 = arith.select %48, %51, %52 : vector<6x2xi1>, vector<6x2xi32>
      %cst_33 = arith.constant dense<0> : vector<2xi32>
      %54 = vector.multi_reduction <add>, %53, %cst_33 [0] : vector<6x2xi32> to vector<2xi32>
      %55 = vector.shape_cast %54 : vector<2xi32> to vector<1x2xi32>
      %56 = arith.select %39, %55, %arg11 : vector<1x2xi1>, vector<1x2xi32>
      scf.yield %56, %46 : vector<1x2xi32>, vector<8x2xi32>
    }
    %c7_i32_21 = arith.constant 7 : i32
    %c0_i32_22 = arith.constant 0 : i32
    %28 = vector.broadcast %c0_i32_22 : i32 to vector<8x2xi32>
    %29 = arith.cmpi eq, %4, %28 : vector<8x2xi32>
    %30 = vector.shape_cast %27#0 : vector<1x2xi32> to vector<1x2xi32>
    %31 = vector.broadcast %30 : vector<1x2xi32> to vector<8x2xi32>
    %32 = arith.select %29, %31, %27#1 : vector<8x2xi1>, vector<8x2xi32>
    %c0_23 = arith.constant 0 : index
    %c0_24 = arith.constant 0 : index
    %33 = vector.load %arg7[%c0_23, %c0_24] : memref<8x2xi32, #tpu.memory_space<vmem>>, vector<8x2xi32>
    tpu.vector_store %arg7[%c0_23, %c0_24], %32 {strides = array<i32>} : memref<8x2xi32, #tpu.memory_space<vmem>>, vector<8x2xi32>,
    return
  }
  func.func @transform_0(%arg0: i32) -> (i32, i32, i32) {
    %c0_i32 = arith.constant 0 : i32
    %c0_i32_0 = arith.constant 0 : i32
    %c0_i32_1 = arith.constant 0 : i32
    %c0_i32_2 = arith.constant 0 : i32
    return %c0_i32, %c0_i32_0, %c0_i32_1 : i32, i32, i32
  }
  func.func @transform_1(%arg0: i32) -> (i32, i32, i32) {
    %c0_i32 = arith.constant 0 : i32
    %c0_i32_0 = arith.constant 0 : i32
    %c0_i32_1 = arith.constant 0 : i32
    %c0_i32_2 = arith.constant 0 : i32
    return %c0_i32, %c0_i32_0, %c0_i32_1 : i32, i32, i32
  }
  func.func @transform_2(%arg0: i32) -> (i32, i32, i32) {
    %c0_i32 = arith.constant 0 : i32
    %c0_i32_0 = arith.constant 0 : i32
    %c0_i32_1 = arith.constant 0 : i32
    %c0_i32_2 = arith.constant 0 : i32
    return %c0_i32, %c0_i32_0, %c0_i32_1 : i32, i32, i32
  }
  func.func @transform_3(%arg0: i32) -> (i32, i32) {
    %c0_i32 = arith.constant 0 : i32
    %c0_i32_0 = arith.constant 0 : i32
    %c0_i32_1 = arith.constant 0 : i32
    return %c0_i32, %c0_i32_0 : i32, i32
  }
  func.func @transform_4(%arg0: i32) -> (i32, i32) {
    %c0_i32 = arith.constant 0 : i32
    %c0_i32_0 = arith.constant 0 : i32
    %c0_i32_1 = arith.constant 0 : i32
    return %c0_i32, %c0_i32_0 : i32, i32
  }
  func.func @transform_5(%arg0: i32) -> (i32, i32) {
    %c0_i32 = arith.constant 0 : i32
    %c0_i32_0 = arith.constant 0 : i32
    %c0_i32_1 = arith.constant 0 : i32
    return %c0_i32, %c0_i32_0 : i32, i32
  }
  func.func @transform_6(%arg0: i32) -> (i32, i32) {
    %c0_i32 = arith.constant 0 : i32
    %c0_i32_0 = arith.constant 0 : i32
    %c0_i32_1 = arith.constant 0 : i32
    return %c0_i32, %c0_i32_0 : i32, i32
  }
}

</mosaic_0001>

<bundles_post_ra>
// kernel: transformer_crf_forward.3
= control target key start
LH: loop header
LB: loop body
LE: loop exit
PB: predicated region body
PF: predicated region fallthrough
CT: control target
= control target key end

     0   :  { %vm43_vm0 = vcmask 261120   ;;  %v1190_v14 = vmov 0   ;;  %s1191_s22 = smov 64   ;;  %s1458_s1 = inlined_call_operand.vmem [shape: bf16[2,32,128], index: 1, kind: input, shape index: {}]   ;;  %s1459_s2 = inlined_call_operand.vmem [shape: bf16[2,32,128], index: 2, kind: input, shape index: {}]   ;;  %s1460_s0 = inlined_call_operand.vmem [shape: f32[2,12,32], index: 0, kind: input, shape index: {}]   ;;  %s1461_s3 = inlined_call_operand.vmem [shape: f32[2,1,128], index: 3, kind: input, shape index: {}]   ;;  %s1462_s4 = inlined_call_operand.vmem [shape: bf16[2,32,32], index: 4, kind: input, shape index: {}]   ;;  %s1463_s5 = inlined_call_operand.vmem [shape: f32[1,32], index: 5, kind: input, shape index: {}]   ;;  %s1464_s6 = inlined_call_operand.vmem [shape: f32[2,32], index: 6, kind: output, shape index: {}]  }
   0x1   :  { %v1075_v0 = vld [vmem:[%s1458_s1 + $0x8] sm:$0xff]  ;;  %v1239_v2 = vld [vmem:[%s1459_s2 + $0x18] sm:$0xff]  ;;  %v1074_v3 = vld [vmem:[%s1458_s1] sm:$0xff] }
   0x2   :  { %v1234_v1 = vld [vmem:[%s1459_s2 + $0x8] sm:$0xff]  ;;  %v1247_v4 = vld [vmem:[%s1459_s2] sm:$0xff]  ;;  %53 = vmatpush.bf16.msra.mxu0 %v1075_v0  ;;  %v1077_v5 = vld [vmem:[%s1458_s1 + $0x18] sm:$0xff]  ;;  %199 = vmatpush.bf16.msra.mxu3 %v1239_v2 }
   0x3   :  { %132 = vmatpush.bf16.msra.mxu2 %v1234_v1  ;;  %v24_v6 = vld [vmem:[%s1460_s0] sm:$0xff]  ;;  %v25_v7 = vld [vmem:[%s1460_s0 + $0x8] sm:$0xf]  ;;  %v1263_v8 = vld [vmem:[%s1459_s2 + $0x10] sm:$0xff]  ;;  %91 = vmatpush.bf16.msra.mxu1 %v1077_v5 }
   0x4   :  { %v1076_v9 = vld [vmem:[%s1458_s1 + $0x10] sm:$0xff]  ;;  %v995_v11 = vld [vmem:[%s1460_s0 + $0x18] sm:$0xf]  ;;  %v26_v12 = vpack.c.bf16 %v25_v7, %v24_v6  ;;  %v1297_v15 = vld [vmem:[%s1461_s3] ss:$0 sm:$0xff] }
   0x5   :  { %v994_v10 = vld [vmem:[%s1460_s0 + $0x10] sm:$0xff]  ;;  %v1309_v23 = vld [vmem:[%s1461_s3 + $0x1] ss:$0 sm:$0xff]  ;;  %s1192_s3 = smov 32  }
   0x6   :  { %54 = vmatpush.bf16.msra.mxu0 %v1074_v3  ;;  %200 = vmatpush.bf16.msra.mxu3 %v1263_v8  ;;  %v64_v13 = vpack.c.bf16 %v995_v11, %v994_v10 }
   0x7   :  { %133 = vmatpush.bf16.msra.mxu2 %v1247_v4  ;;  %92 = vmatpush.bf16.msra.mxu1 %v1076_v9 }
   0x9   :  { %993 = vmatmul.msk.bf16.vlgmr.msra.gmra.mxu0 %vm43_vm0, %v26_v12  ;;  %201 = vmatmul.bf16.vlgmr.msra.gmra.mxu3 %v1190_v14 }
   0xa   :  { %261 = vmatpush.bf16.msrb.mxu0 %v1234_v1  ;;  %134 = vmatmul.bf16.vlgmr.msra.gmra.mxu2 %v1190_v14 }
   0xb   :  { %392 = vmatpush.bf16.msrb.mxu2 %v1234_v1  ;;  %326 = vmatpush.bf16.msrb.mxu1 %v1239_v2 }
   0xc   :  { %1008 = vmatmul.msk.bf16.vlgmr.msra.gmra.mxu1 %vm43_vm0, %v64_v13  ;;  %458 = vmatpush.bf16.msrb.mxu3 %v1239_v2 }
   0xe   :  { %262 = vmatpush.bf16.msrb.mxu0 %v1247_v4 }
   0xf   :  { %393 = vmatpush.bf16.msrb.mxu2 %v1247_v4  ;;  %327 = vmatpush.bf16.msrb.mxu1 %v1263_v8 }
  0x10   :  { %459 = vmatpush.bf16.msrb.mxu3 %v1263_v8 }
  0x12   :  { %524 = vmatpush.bf16.msra.mxu0 %v1234_v1 }
  0x13   :  { %656 = vmatpush.bf16.msra.mxu2 %v1234_v1  ;;  %590 = vmatpush.bf16.msra.mxu1 %v1239_v2 }
  0x14   :  { %719 = vmatpush.bf16.msra.mxu3 %v1239_v2 }
  0x16   :  { %525 = vmatpush.bf16.msra.mxu0 %v1247_v4 }
  0x17   :  { %657 = vmatpush.bf16.msra.mxu2 %v1247_v4  ;;  %591 = vmatpush.bf16.msra.mxu1 %v1263_v8 }
  0x18   :  { %720 = vmatpush.bf16.msra.mxu3 %v1263_v8 }
  0x86   :  { %v1299_v16 = vpop.f32.mrf.mxu0 }
  0x89   :  { %v1302_v20 = vpop.f32.mrf.mxu1 }
  0x8c   :  { %v202_v19 = vpop.f32.mrf.mxu3 }
  0x8d   :  { %v135_v17 = vpop.f32.mrf.mxu2  ;;  %v206_v22 = vadd.f32 %v202_v19, %v1302_v20 }
  0x8e   :  { %v139_v18 = vadd.f32 %v135_v17, %v1299_v16  ;;  %v1332_v17 = vpop.f32.mrf.mxu0 }
  0x8f   :  { %v210_v25 = vadd.f32 %v1309_v23, %v206_v22 }
  0x90   :  { %v143_v21 = vadd.f32 %v1297_v15, %v139_v18 }
  0x91   :  { %v1031_v30 = vmul.f32 -1.442695, %v210_v25  ;;  %v1334_v18 = vpop.f32.mrf.mxu1 }
  0x92   :  { %1092 = vtanh.f32 %v143_v21  ;;  %v1022_v29 = vmul.f32 -1.442695, %v143_v21 }
  0x93   :  { %1094 = vtanh.f32 %v210_v25 }
  0x94   :  { %v204_v26 = vpop.f32.mrf.mxu3  ;;  %1096 = vpow2.f32 %v1022_v29 }
  0x95   :  { %v137_v24 = vpop.f32.mrf.mxu2  ;;  %1098 = vpow2.f32 %v1031_v30 }
  0x98   :  { %v1093_v27 = vpop.eup %1092 }
  0x99   :  { %166 = vrot.lane.b32.xlu0 %v1093_v27, %s1191_s22  ;;  %v1095_v28 = vpop.eup %1094 }
  0x9a   :  { %v1097_v31 = vpop.eup %1096 }
  0x9b   :  { %v147_v32 = vadd.f32 1.0, %v1097_v31  ;;  %v1099_v33 = vpop.eup %1098 }
  0x9c   :  { %v214_v34 = vadd.f32 1.0, %v1099_v33 }
  0x9d   :  { %1100 = vrcp.f32 %v147_v32  ;;  %v159_v43 = vand.u32 2147483648, %v147_v32  ;;  %vm153_vm2 = vweird.f32 %v147_v32  ;;  %v157_v44 = vand.u32 2147483647, %v147_v32 }
  0x9e   :  { %1102 = vrcp.f32 %v214_v34  ;;  %vm220_vm5 = vweird.f32 %v214_v34  ;;  %v226_v52 = vand.u32 2147483648, %v214_v34  ;;  %v224_v53 = vand.u32 2147483647, %v214_v34 }
  0x9f   :  { %v160_v47 = vor.u32 1.1754944e-38, %v159_v43  ;;  %vm158_vm4 = vcmp.eq.f32.partialorder %v157_v44, 8.507059e+37 }
  0xa0   :  { %v227_v55 = vor.u32 1.1754944e-38, %v226_v52  ;;  %vm225_vm8 = vcmp.eq.f32.partialorder %v224_v53, 8.507059e+37 }
  0xa1   :  { %233 = vrot.lane.b32.xlu0 %v1095_v28, %s1191_s22 }
  0xa3   :  { %v1101_v35 = vpop.eup %1100 }
  0xa4   :  { %v149_v36 = vmul.f32 %v1101_v35, %v147_v32  ;;  %v1103_v38 = vpop.eup %1102  ;;  %vm154_vm1 = vweird.f32 %v1101_v35 }
  0xa5   :  { %v216_v40 = vmul.f32 %v1103_v38, %v214_v34  ;;  %vm155_vm3 = vmor %vm153_vm2, %vm154_vm1  ;;  %vm221_vm6 = vweird.f32 %v1103_v38 }
  0xa6   :  { %v150_v37 = vsub.f32 1.0, %v149_v36  ;;  %vm222_vm7 = vmor %vm220_vm5, %vm221_vm6 }
  0xa7   :  { %v217_v42 = vsub.f32 1.0, %v216_v40 }
  0xa8   :  { %v151_v39 = vmul.f32 %v1101_v35, %v150_v37 }
  0xa9   :  { %v218_v46 = vmul.f32 %v1103_v38, %v217_v42 }
  0xaa   :  { %v152_v41 = vadd.f32 %v1101_v35, %v151_v39 }
  0xab   :  { %v219_v51 = vadd.f32 %v1103_v38, %v218_v46 }
  0xac   :  { %v156_v45 = vsel %vm155_vm3, %v1101_v35, %v152_v41 }
  0xad   :  { %v161_v49 = vsel %vm158_vm4, %v160_v47, %v156_v45  ;;  %v223_v54 = vsel %vm222_vm7, %v1103_v38, %v219_v51 }
  0xae   :  { %v228_v56 = vsel %vm225_vm8, %v227_v55, %v223_v54  ;;  %v164_v59 = vmul.f32 0.0, %v161_v49 }
  0xaf   :  { %v231_v62 = vmul.f32 0.0, %v228_v56 }
 0x10b   :  { %v167_v48 = vpop.permute.xlu0 %166 }
 0x10c   :  { %v169_v50 = vmul.f32 %v167_v48, %v161_v49 }
 0x10e   :  { %171 = vrot.lane.b32.xlu1 %v169_v50, %s1192_s3 }
 0x113   :  { %v234_v57 = vpop.permute.xlu0 %233 }
 0x114   :  { %v236_v58 = vmul.f32 %v234_v57, %v228_v56 }
 0x116   :  { %238 = vrot.lane.b32.xlu1 %v236_v58, %s1192_s3 }
 0x180   :  { %v172_v60 = vpop.permute.xlu1 %171 }
 0x181   :  { %v1316_v61 = vadd.f32 %v172_v60, %v164_v59 }
 0x183   :  { %1104 = vtanh.f32 %v1316_v61  ;;  %v294_v59 = vrot.slane %v1316_v61, 6 }
 0x188   :  { %v239_v63 = vpop.permute.xlu1 %238 }
 0x189   :  { %v1105_v0 = vpop.eup %1104  ;;  %v1319_v3 = vadd.f32 %v239_v63, %v231_v62 }
 0x18a   :  { %177 = vrot.lane.b32.xlu2 %v1105_v0, %s1191_s22 }
 0x18b   :  { %1106 = vtanh.f32 %v1319_v3  ;;  %v359_v0 = vrot.slane %v1319_v3, 6 }
 0x191   :  { %v1107_v5 = vpop.eup %1106 }
 0x192   :  { %244 = vrot.lane.b32.xlu2 %v1107_v5, %s1191_s22 }
 0x1e4   :  { %v178_v6 = vpop.permute.xlu2 %177 }
 0x1e5   :  { %v180_v7 = vmul.f32 %v178_v6, %v161_v49 }
 0x1e7   :  { %v248_v9 = vpack.c.bf16 %v180_v7, %v180_v7 }
 0x1e9   :  { %250 = vrot.lane.b32.xlu0 %v248_v9, %s1192_s3 }
 0x1ec   :  { %v245_v10 = vpop.permute.xlu2 %244 }
 0x1ed   :  { %v247_v11 = vmul.f32 %v245_v10, %v228_v56 }
 0x1ef   :  { %v313_v12 = vpack.c.bf16 %v247_v11, %v247_v11 }
 0x1f1   :  { %315 = vrot.lane.b32.xlu1 %v313_v12, %s1192_s3 }
 0x25b   :  { %v251_v13 = vpop.permute.xlu0 %250 }
 0x25c   :  { %1032 = vmatmul.msk.bf16.vlgmr.msrb.gmra.mxu0 %vm43_vm0, %v251_v13 }
 0x25d   :  { %781 = vmatpush.bf16.msrb.mxu0 %v1234_v1 }
 0x261   :  { %782 = vmatpush.bf16.msrb.mxu0 %v1247_v4 }
 0x263   :  { %v316_v14 = vpop.permute.xlu1 %315 }
 0x264   :  { %1034 = vmatmul.msk.bf16.vlgmr.msrb.gmra.mxu1 %vm43_vm0, %v316_v14 }
 0x265   :  { %846 = vmatpush.bf16.msrb.mxu1 %v1239_v2 }
 0x269   :  { %847 = vmatpush.bf16.msrb.mxu1 %v1263_v8 }
 0x2d9   :  { %v264_v19 = vpop.f32.mrf.mxu0 }
 0x2da   :  { %v269_v21 = vrot.slane %v264_v19, 6 }
 0x2dc   :  { %v271_v22 = vadd.f32 %v269_v21, %v1299_v16 }
 0x2de   :  { %v272_v24 = vadd.f32 %v1297_v15, %v271_v22 }
 0x2e0   :  { %1108 = vtanh.f32 %v272_v24  ;;  %v1033_v29 = vmul.f32 -1.442695, %v272_v24 }
 0x2e1   :  { %v266_v1 = vpop.f32.mrf.mxu0  ;;  %v329_v4 = vpop.f32.mrf.mxu1 }
 0x2e2   :  { %v334_v25 = vrot.slane %v329_v4, 6 }
 0x2e4   :  { %v336_v26 = vadd.f32 %v334_v25, %v1302_v20 }
 0x2e6   :  { %v1109_v27 = vpop.eup %1108  ;;  %v337_v2 = vadd.f32 %v1309_v23, %v336_v26 }
 0x2e7   :  { %298 = vrot.lane.b32.xlu2 %v1109_v27, %s1191_s22 }
 0x2e8   :  { %1110 = vtanh.f32 %v337_v2  ;;  %v1035_v35 = vmul.f32 -1.442695, %v337_v2 }
 0x2e9   :  { %v331_v8 = vpop.f32.mrf.mxu1  ;;  %1112 = vpow2.f32 %v1033_v29 }
 0x2ee   :  { %v1111_v28 = vpop.eup %1110 }
 0x2ef   :  { %363 = vrot.lane.b32.xlu0 %v1111_v28, %s1191_s22  ;;  %v1113_v30 = vpop.eup %1112 }
 0x2f0   :  { %v276_v31 = vadd.f32 1.0, %v1113_v30 }
 0x2f2   :  { %1114 = vrcp.f32 %v276_v31  ;;  %v288_v38 = vand.u32 2147483648, %v276_v31  ;;  %vm282_vm10 = vweird.f32 %v276_v31  ;;  %v286_v39 = vand.u32 2147483647, %v276_v31 }
 0x2f3   :  { %1116 = vpow2.f32 %v1035_v35 }
 0x2f4   :  { %v289_v42 = vor.u32 1.1754944e-38, %v288_v38  ;;  %vm287_vm12 = vcmp.eq.f32.partialorder %v286_v39, 8.507059e+37 }
 0x2f8   :  { %v1115_v32 = vpop.eup %1114 }
 0x2f9   :  { %v278_v33 = vmul.f32 %v1115_v32, %v276_v31  ;;  %vm283_vm9 = vweird.f32 %v1115_v32  ;;  %v1117_v40 = vpop.eup %1116 }
 0x2fa   :  { %vm284_vm11 = vmor %vm282_vm10, %vm283_vm9  ;;  %v341_v43 = vadd.f32 1.0, %v1117_v40 }
 0x2fb   :  { %v279_v34 = vsub.f32 1.0, %v278_v33 }
 0x2fc   :  { %1118 = vrcp.f32 %v341_v43  ;;  %v353_v52 = vand.u32 2147483648, %v341_v43  ;;  %vm347_vm14 = vweird.f32 %v341_v43  ;;  %v351_v53 = vand.u32 2147483647, %v341_v43 }
 0x2fd   :  { %v280_v36 = vmul.f32 %v1115_v32, %v279_v34 }
 0x2fe   :  { %v354_v55 = vor.u32 1.1754944e-38, %v353_v52  ;;  %vm352_vm1 = vcmp.eq.f32.partialorder %v351_v53, 8.507059e+37 }
 0x2ff   :  { %v281_v37 = vadd.f32 %v1115_v32, %v280_v36 }
 0x301   :  { %v285_v41 = vsel %vm284_vm11, %v1115_v32, %v281_v37 }
 0x302   :  { %v290_v45 = vsel %vm287_vm12, %v289_v42, %v285_v41  ;;  %v1119_v47 = vpop.eup %1118 }
 0x303   :  { %v343_v48 = vmul.f32 %v1119_v47, %v341_v43  ;;  %vm348_vm13 = vweird.f32 %v1119_v47  ;;  %v296_v60 = vmul.f32 %v294_v59, %v290_v45 }
 0x304   :  { %vm349_vm15 = vmor %vm347_vm14, %vm348_vm13 }
 0x305   :  { %v344_v49 = vsub.f32 1.0, %v343_v48 }
 0x307   :  { %v345_v50 = vmul.f32 %v1119_v47, %v344_v49 }
 0x309   :  { %v346_v51 = vadd.f32 %v1119_v47, %v345_v50 }
 0x30b   :  { %v350_v54 = vsel %vm349_vm15, %v1119_v47, %v346_v51 }
 0x30c   :  { %v355_v57 = vsel %vm352_vm1, %v354_v55, %v350_v54 }
 0x30d   :  { %v361_v5 = vmul.f32 %v359_v0, %v355_v57 }
 0x341   :  { %v299_v44 = vpop.permute.xlu2 %298 }
 0x342   :  { %v301_v46 = vmul.f32 %v299_v44, %v290_v45 }
 0x344   :  { %303 = vrot.lane.b32.xlu1 %v301_v46, %s1192_s3 }
 0x361   :  { %v364_v56 = vpop.permute.xlu0 %363 }
 0x362   :  { %v366_v58 = vmul.f32 %v364_v56, %v355_v57 }
 0x364   :  { %368 = vrot.lane.b32.xlu2 %v366_v58, %s1192_s3 }
 0x3b6   :  { %v304_v62 = vpop.permute.xlu1 %303 }
 0x3b7   :  { %v1345_v63 = vadd.f32 %v304_v62, %v296_v60 }
 0x3b9   :  { %1120 = vtanh.f32 %v1345_v63 }
 0x3be   :  { %v369_v6 = vpop.permute.xlu2 %368 }
 0x3bf   :  { %v1121_v7 = vpop.eup %1120  ;;  %v1349_v9 = vadd.f32 %v369_v6, %v361_v5  ;;  %v425_v5 = vrot.slane %v1345_v63, 6 }
 0x3c0   :  { %309 = vrot.lane.b32.xlu0 %v1121_v7, %s1191_s22 }
 0x3c1   :  { %1122 = vtanh.f32 %v1349_v9 }
 0x3c7   :  { %v1123_v10 = vpop.eup %1122 }
 0x3c8   :  { %374 = vrot.lane.b32.xlu1 %v1123_v10, %s1191_s22 }
 0x432   :  { %v310_v61 = vpop.permute.xlu0 %309 }
 0x433   :  { %v312_v11 = vmul.f32 %v310_v61, %v290_v45  ;;  %v491_v61 = vrot.slane %v1349_v9, 6 }
 0x435   :  { %v378_v12 = vpack.c.bf16 %v312_v11, %v312_v11 }
 0x437   :  { %v380_v13 = vrot.slane %v378_v12, 1 }
 0x439   :  { %381 = vrot.lane.b32.xlu2 %v380_v13, %s1192_s3 }
 0x43a   :  { %v375_v14 = vpop.permute.xlu1 %374 }
 0x43b   :  { %v377_v3 = vmul.f32 %v375_v14, %v355_v57 }
 0x43d   :  { %v444_v19 = vpack.c.bf16 %v377_v3, %v377_v3 }
 0x43f   :  { %v446_v21 = vrot.slane %v444_v19, 1 }
 0x441   :  { %447 = vrot.lane.b32.xlu0 %v446_v21, %s1192_s3 }
 0x493   :  { %v382_v22 = vpop.permute.xlu2 %381 }
 0x494   :  { %1036 = vmatmul.msk.bf16.vlgmr.msrb.gmra.mxu2 %vm43_vm0, %v382_v22 }
 0x4b3   :  { %v448_v24 = vpop.permute.xlu0 %447 }
 0x4b4   :  { %1038 = vmatmul.msk.bf16.vlgmr.msrb.gmra.mxu3 %vm43_vm0, %v448_v24 }
 0x517   :  { %v395_v1 = vpop.f32.mrf.mxu2 }
 0x518   :  { %v400_v4 = vrot.slane %v395_v1, 4 }
 0x51a   :  { %v402_v25 = vadd.f32 %v400_v4, %v1299_v16 }
 0x51c   :  { %v403_v26 = vadd.f32 %v1297_v15, %v402_v25 }
 0x51e   :  { %1124 = vtanh.f32 %v403_v26  ;;  %v1037_v33 = vmul.f32 -1.442695, %v403_v26 }
 0x51f   :  { %v397_v27 = vpop.f32.mrf.mxu2 }
 0x524   :  { %v1125_v2 = vpop.eup %1124 }
 0x525   :  { %429 = vrot.lane.b32.xlu1 %v1125_v2, %s1191_s22 }
 0x537   :  { %v461_v8 = vpop.f32.mrf.mxu3 }
 0x538   :  { %v466_v28 = vrot.slane %v461_v8, 4 }
 0x53a   :  { %v468_v29 = vadd.f32 %v466_v28, %v1302_v20 }
 0x53c   :  { %v469_v30 = vadd.f32 %v1309_v23, %v468_v29 }
 0x53e   :  { %1126 = vtanh.f32 %v469_v30  ;;  %v1039_v34 = vmul.f32 -1.442695, %v469_v30 }
 0x53f   :  { %v463_v31 = vpop.f32.mrf.mxu3  ;;  %1128 = vpow2.f32 %v1037_v33 }
 0x540   :  { %1130 = vpow2.f32 %v1039_v34 }
 0x544   :  { %v1127_v32 = vpop.eup %1126 }
 0x545   :  { %495 = vrot.lane.b32.xlu2 %v1127_v32, %s1191_s22  ;;  %v1129_v35 = vpop.eup %1128 }
 0x546   :  { %v407_v36 = vadd.f32 1.0, %v1129_v35  ;;  %v1131_v37 = vpop.eup %1130 }
 0x547   :  { %v473_v38 = vadd.f32 1.0, %v1131_v37 }
 0x548   :  { %1132 = vrcp.f32 %v407_v36  ;;  %v419_v47 = vand.u32 2147483648, %v407_v36  ;;  %vm413_vm3 = vweird.f32 %v407_v36  ;;  %v417_v48 = vand.u32 2147483647, %v407_v36 }
 0x549   :  { %1134 = vrcp.f32 %v473_v38  ;;  %v485_v56 = vand.u32 2147483648, %v473_v38  ;;  %vm479_vm7 = vweird.f32 %v473_v38  ;;  %v483_v57 = vand.u32 2147483647, %v473_v38 }
 0x54a   :  { %v420_v51 = vor.u32 1.1754944e-38, %v419_v47  ;;  %vm418_vm5 = vcmp.eq.f32.partialorder %v417_v48, 8.507059e+37 }
 0x54b   :  { %v486_v59 = vor.u32 1.1754944e-38, %v485_v56  ;;  %vm484_vm9 = vcmp.eq.f32.partialorder %v483_v57, 8.507059e+37 }
 0x54e   :  { %v1133_v39 = vpop.eup %1132 }
 0x54f   :  { %v409_v40 = vmul.f32 %v1133_v39, %v407_v36  ;;  %v1135_v42 = vpop.eup %1134  ;;  %vm414_vm2 = vweird.f32 %v1133_v39 }
 0x550   :  { %v475_v44 = vmul.f32 %v1135_v42, %v473_v38  ;;  %vm415_vm4 = vmor %vm413_vm3, %vm414_vm2  ;;  %vm480_vm6 = vweird.f32 %v1135_v42 }
 0x551   :  { %v410_v41 = vsub.f32 1.0, %v409_v40  ;;  %vm481_vm8 = vmor %vm479_vm7, %vm480_vm6 }
 0x552   :  { %v476_v46 = vsub.f32 1.0, %v475_v44 }
 0x553   :  { %v411_v43 = vmul.f32 %v1133_v39, %v410_v41 }
 0x554   :  { %v477_v50 = vmul.f32 %v1135_v42, %v476_v46 }
 0x555   :  { %v412_v45 = vadd.f32 %v1133_v39, %v411_v43 }
 0x556   :  { %v478_v55 = vadd.f32 %v1135_v42, %v477_v50 }
 0x557   :  { %v416_v49 = vsel %vm415_vm4, %v1133_v39, %v412_v45 }
 0x558   :  { %v421_v53 = vsel %vm418_vm5, %v420_v51, %v416_v49  ;;  %v482_v58 = vsel %vm481_vm8, %v1135_v42, %v478_v55 }
 0x559   :  { %v487_v62 = vsel %vm484_vm9, %v486_v59, %v482_v58  ;;  %v427_v6 = vmul.f32 %v425_v5, %v421_v53 }
 0x55a   :  { %v493_v11 = vmul.f32 %v491_v61, %v487_v62 }
 0x597   :  { %v430_v52 = vpop.permute.xlu1 %429 }
 0x598   :  { %v432_v54 = vmul.f32 %v430_v52, %v421_v53 }
 0x59a   :  { %434 = vrot.lane.b32.xlu0 %v432_v54, %s1192_s3 }
 0x59f   :  { %v496_v60 = vpop.permute.xlu2 %495 }
 0x5a0   :  { %v498_v0 = vmul.f32 %v496_v60, %v487_v62 }
 0x5a2   :  { %500 = vrot.lane.b32.xlu1 %v498_v0, %s1192_s3 }
 0x60c   :  { %v435_v7 = vpop.permute.xlu0 %434 }
 0x60d   :  { %v1367_v10 = vadd.f32 %v435_v7, %v427_v6 }
 0x60f   :  { %1136 = vtanh.f32 %v1367_v10  ;;  %v557_v7 = vrot.slane %v1367_v10, 6 }
 0x614   :  { %v501_v12 = vpop.permute.xlu1 %500 }
 0x615   :  { %v1137_v13 = vpop.eup %1136  ;;  %v1371_v14 = vadd.f32 %v501_v12, %v493_v11 }
 0x616   :  { %440 = vrot.lane.b32.xlu2 %v1137_v13, %s1191_s22 }
 0x617   :  { %1138 = vtanh.f32 %v1371_v14 }
 0x61d   :  { %v1139_v3 = vpop.eup %1138 }
 0x61e   :  { %506 = vrot.lane.b32.xlu0 %v1139_v3, %s1191_s22  ;;  %v623_v3 = vrot.slane %v1371_v14, 6 }
 0x670   :  { %v441_v63 = vpop.permute.xlu2 %440 }
 0x671   :  { %v443_v19 = vmul.f32 %v441_v63, %v421_v53 }
 0x673   :  { %v510_v21 = vpack.c.bf16 %v443_v19, %v443_v19 }
 0x675   :  { %v512_v22 = vrot.slane %v510_v21, 2 }
 0x677   :  { %513 = vrot.lane.b32.xlu1 %v512_v22, %s1192_s3 }
 0x690   :  { %v507_v24 = vpop.permute.xlu0 %506 }
 0x691   :  { %v509_v9 = vmul.f32 %v507_v24, %v487_v62 }
 0x693   :  { %v576_v1 = vpack.c.bf16 %v509_v9, %v509_v9 }
 0x695   :  { %v578_v4 = vrot.slane %v576_v1, 2 }
 0x697   :  { %579 = vrot.lane.b32.xlu2 %v578_v4, %s1192_s3 }
 0x6e9   :  { %v514_v25 = vpop.permute.xlu1 %513 }
 0x6ea   :  { %1040 = vmatmul.msk.bf16.vlgmr.msra.gmra.mxu0 %vm43_vm0, %v514_v25 }
 0x6f1   :  { %v580_v26 = vpop.permute.xlu2 %579 }
 0x6f2   :  { %1042 = vmatmul.msk.bf16.vlgmr.msra.gmra.mxu1 %vm43_vm0, %v580_v26 }
 0x767   :  { %v527_v27 = vpop.f32.mrf.mxu0 }
 0x768   :  { %v532_v2 = vrot.slane %v527_v27, 2 }
 0x76a   :  { %v534_v8 = vadd.f32 %v532_v2, %v1299_v16 }
 0x76c   :  { %v535_v28 = vadd.f32 %v1297_v15, %v534_v8 }
 0x76e   :  { %1140 = vtanh.f32 %v535_v28  ;;  %v1041_v37 = vmul.f32 -1.442695, %v535_v28 }
 0x76f   :  { %v529_v29 = vpop.f32.mrf.mxu0  ;;  %v593_v30 = vpop.f32.mrf.mxu1 }
 0x770   :  { %v598_v31 = vrot.slane %v593_v30, 2 }
 0x772   :  { %v600_v32 = vadd.f32 %v598_v31, %v1302_v20 }
 0x774   :  { %v1141_v33 = vpop.eup %1140  ;;  %v601_v34 = vadd.f32 %v1309_v23, %v600_v32 }
 0x775   :  { %561 = vrot.lane.b32.xlu0 %v1141_v33, %s1191_s22 }
 0x776   :  { %1142 = vtanh.f32 %v601_v34  ;;  %v1043_v16 = vmul.f32 -1.442695, %v601_v34 }
 0x777   :  { %v595_v35 = vpop.f32.mrf.mxu1  ;;  %1144 = vpow2.f32 %v1041_v37 }
 0x778   :  { %1146 = vpow2.f32 %v1043_v16 }
 0x77c   :  { %v1143_v36 = vpop.eup %1142 }
 0x77d   :  { %627 = vrot.lane.b32.xlu1 %v1143_v36, %s1191_s22  ;;  %v1145_v38 = vpop.eup %1144 }
 0x77e   :  { %v539_v39 = vadd.f32 1.0, %v1145_v38  ;;  %v1147_v40 = vpop.eup %1146 }
 0x77f   :  { %v605_v41 = vadd.f32 1.0, %v1147_v40 }
 0x780   :  { %1148 = vrcp.f32 %v539_v39  ;;  %v551_v49 = vand.u32 2147483648, %v539_v39  ;;  %vm545_vm11 = vweird.f32 %v539_v39  ;;  %v549_v50 = vand.u32 2147483647, %v539_v39 }
 0x781   :  { %1150 = vrcp.f32 %v605_v41  ;;  %v617_v58 = vand.u32 2147483648, %v605_v41  ;;  %vm611_vm15 = vweird.f32 %v605_v41  ;;  %v615_v59 = vand.u32 2147483647, %v605_v41 }
 0x782   :  { %v552_v53 = vor.u32 1.1754944e-38, %v551_v49  ;;  %vm550_vm13 = vcmp.eq.f32.partialorder %v549_v50, 8.507059e+37 }
 0x783   :  { %v618_v62 = vor.u32 1.1754944e-38, %v617_v58  ;;  %vm616_vm2 = vcmp.eq.f32.partialorder %v615_v59, 8.507059e+37 }
 0x786   :  { %v1149_v20 = vpop.eup %1148 }
 0x787   :  { %v541_v42 = vmul.f32 %v1149_v20, %v539_v39  ;;  %v1151_v44 = vpop.eup %1150  ;;  %vm546_vm10 = vweird.f32 %v1149_v20 }
 0x788   :  { %v607_v46 = vmul.f32 %v1151_v44, %v605_v41  ;;  %vm547_vm12 = vmor %vm545_vm11, %vm546_vm10  ;;  %vm612_vm14 = vweird.f32 %v1151_v44 }
 0x789   :  { %v542_v43 = vsub.f32 1.0, %v541_v42  ;;  %vm613_vm1 = vmor %vm611_vm15, %vm612_vm14 }
 0x78a   :  { %v608_v48 = vsub.f32 1.0, %v607_v46 }
 0x78b   :  { %v543_v45 = vmul.f32 %v1149_v20, %v542_v43 }
 0x78c   :  { %v609_v52 = vmul.f32 %v1151_v44, %v608_v48 }
 0x78d   :  { %v544_v47 = vadd.f32 %v1149_v20, %v543_v45 }
 0x78e   :  { %v610_v57 = vadd.f32 %v1151_v44, %v609_v52 }
 0x78f   :  { %v548_v51 = vsel %vm547_vm12, %v1149_v20, %v544_v47 }
 0x790   :  { %v553_v55 = vsel %vm550_vm13, %v552_v53, %v548_v51  ;;  %v614_v60 = vsel %vm613_vm1, %v1151_v44, %v610_v57 }
 0x791   :  { %v619_v5 = vsel %vm616_vm2, %v618_v62, %v614_v60  ;;  %v559_v61 = vmul.f32 %v557_v7, %v553_v55 }
 0x792   :  { %v625_v63 = vmul.f32 %v623_v3, %v619_v5 }
 0x7e7   :  { %v562_v54 = vpop.permute.xlu0 %561 }
 0x7e8   :  { %v564_v56 = vmul.f32 %v562_v54, %v553_v55 }
 0x7ea   :  { %566 = vrot.lane.b32.xlu2 %v564_v56, %s1192_s3 }
 0x7ef   :  { %v628_v0 = vpop.permute.xlu1 %627 }
 0x7f0   :  { %v630_v6 = vmul.f32 %v628_v0, %v619_v5 }
 0x7f2   :  { %632 = vrot.lane.b32.xlu0 %v630_v6, %s1192_s3 }
 0x844   :  { %v567_v11 = vpop.permute.xlu2 %566 }
 0x845   :  { %v1389_v12 = vadd.f32 %v567_v11, %v559_v61 }
 0x847   :  { %1152 = vtanh.f32 %v1389_v12  ;;  %v686_v7 = vrot.slane %v1389_v12, 6 }
 0x84d   :  { %v1153_v13 = vpop.eup %1152 }
 0x84e   :  { %572 = vrot.lane.b32.xlu1 %v1153_v13, %s1191_s22 }
 0x864   :  { %v633_v19 = vpop.permute.xlu0 %632 }
 0x865   :  { %v1394_v21 = vadd.f32 %v633_v19, %v625_v63 }
 0x867   :  { %1154 = vtanh.f32 %v1394_v21  ;;  %v749_v3 = vrot.slane %v1394_v21, 6 }
 0x86d   :  { %v1155_v22 = vpop.eup %1154 }
 0x86e   :  { %638 = vrot.lane.b32.xlu2 %v1155_v22, %s1191_s22 }
 0x8c0   :  { %v573_v10 = vpop.permute.xlu1 %572 }
 0x8c1   :  { %v575_v24 = vmul.f32 %v573_v10, %v553_v55 }
 0x8c3   :  { %v642_v9 = vpack.c.bf16 %v575_v24, %v575_v24 }
 0x8c5   :  { %v644_v1 = vrot.slane %v642_v9, 3 }
 0x8c7   :  { %645 = vrot.lane.b32.xlu0 %v644_v1, %s1192_s3 }
 0x8c8   :  { %v639_v4 = vpop.permute.xlu2 %638 }
 0x8c9   :  { %v641_v25 = vmul.f32 %v639_v4, %v619_v5 }
 0x8cb   :  { %v705_v26 = vpack.c.bf16 %v641_v25, %v641_v25 }
 0x8cd   :  { %v707_v27 = vrot.slane %v705_v26, 3 }
 0x8cf   :  { %708 = vrot.lane.b32.xlu1 %v707_v27, %s1192_s3 }
 0x939   :  { %v646_v14 = vpop.permute.xlu0 %645 }
 0x93a   :  { %1044 = vmatmul.msk.bf16.vlgmr.msra.gmra.mxu2 %vm43_vm0, %v646_v14 }
 0x941   :  { %v709_v2 = vpop.permute.xlu1 %708 }
 0x942   :  { %1046 = vmatmul.msk.bf16.vlgmr.msra.gmra.mxu3 %vm43_vm0, %v709_v2 }
 0x9bd   :  { %v659_v8 = vpop.f32.mrf.mxu2 }
 0x9be   :  { %v663_v28 = vadd.f32 %v659_v8, %v1332_v17 }
 0x9c0   :  { %v664_v29 = vadd.f32 %v1297_v15, %v663_v28 }
 0x9c2   :  { %1156 = vtanh.f32 %v664_v29  ;;  %v1045_v37 = vmul.f32 -1.442695, %v664_v29 }
 0x9c5   :  { %v661_v30 = vpop.f32.mrf.mxu2  ;;  %v722_v31 = vpop.f32.mrf.mxu3 }
 0x9c6   :  { %v726_v32 = vadd.f32 %v722_v31, %v1334_v18 }
 0x9c8   :  { %v1157_v33 = vpop.eup %1156  ;;  %v727_v34 = vadd.f32 %v1309_v23, %v726_v32 }
 0x9c9   :  { %690 = vrot.lane.b32.xlu2 %v1157_v33, %s1191_s22 }
 0x9ca   :  { %1158 = vtanh.f32 %v727_v34  ;;  %v1047_v20 = vmul.f32 -1.442695, %v727_v34 }
 0x9cb   :  { %1160 = vpow2.f32 %v1045_v37 }
 0x9cd   :  { %v724_v35 = vpop.f32.mrf.mxu3 }
 0x9d0   :  { %v1159_v36 = vpop.eup %1158 }
 0x9d1   :  { %753 = vrot.lane.b32.xlu0 %v1159_v36, %s1191_s22  ;;  %v1161_v16 = vpop.eup %1160 }
 0x9d2   :  { %v668_v38 = vadd.f32 1.0, %v1161_v16 }
 0x9d4   :  { %1162 = vrcp.f32 %v668_v38  ;;  %v680_v44 = vand.u32 2147483648, %v668_v38  ;;  %vm674_vm4 = vweird.f32 %v668_v38  ;;  %v678_v45 = vand.u32 2147483647, %v668_v38 }
 0x9d5   :  { %1164 = vpow2.f32 %v1047_v20 }
 0x9d6   :  { %v681_v48 = vor.u32 1.1754944e-38, %v680_v44  ;;  %vm679_vm6 = vcmp.eq.f32.partialorder %v678_v45, 8.507059e+37 }
 0x9da   :  { %v1163_v39 = vpop.eup %1162 }
 0x9db   :  { %v670_v40 = vmul.f32 %v1163_v39, %v668_v38  ;;  %vm675_vm3 = vweird.f32 %v1163_v39  ;;  %v1165_v46 = vpop.eup %1164 }
 0x9dc   :  { %vm676_vm5 = vmor %vm674_vm4, %vm675_vm3  ;;  %v731_v49 = vadd.f32 1.0, %v1165_v46  ;;  %vm979_vm4 = vcmask 254976  }
 0x9dd   :  { %v671_v41 = vsub.f32 1.0, %v670_v40 }
 0x9de   :  { %1166 = vrcp.f32 %v731_v49  ;;  %v743_v58 = vand.u32 2147483648, %v731_v49  ;;  %vm737_vm8 = vweird.f32 %v731_v49  ;;  %v741_v59 = vand.u32 2147483647, %v731_v49 }
 0x9df   :  { %v672_v42 = vmul.f32 %v1163_v39, %v671_v41 }
 0x9e0   :  { %v744_v62 = vor.u32 1.1754944e-38, %v743_v58  ;;  %vm742_vm10 = vcmp.eq.f32.partialorder %v741_v59, 8.507059e+37 }
 0x9e1   :  { %v673_v43 = vadd.f32 %v1163_v39, %v672_v42 }
 0x9e3   :  { %v677_v47 = vsel %vm676_vm5, %v1163_v39, %v673_v43 }
 0x9e4   :  { %v682_v51 = vsel %vm679_vm6, %v681_v48, %v677_v47  ;;  %v1167_v53 = vpop.eup %1166 }
 0x9e5   :  { %v733_v54 = vmul.f32 %v1167_v53, %v731_v49  ;;  %vm738_vm7 = vweird.f32 %v1167_v53  ;;  %v688_v61 = vmul.f32 %v686_v7, %v682_v51 }
 0x9e6   :  { %vm739_vm9 = vmor %vm737_vm8, %vm738_vm7 }
 0x9e7   :  { %v734_v55 = vsub.f32 1.0, %v733_v54 }
 0x9e9   :  { %v735_v56 = vmul.f32 %v1167_v53, %v734_v55 }
 0x9eb   :  { %v736_v57 = vadd.f32 %v1167_v53, %v735_v56 }
 0x9ed   :  { %v740_v60 = vsel %vm739_vm9, %v1167_v53, %v736_v57 }
 0x9ee   :  { %v745_v5 = vsel %vm742_vm10, %v744_v62, %v740_v60 }
 0x9ef   :  { %v751_v63 = vmul.f32 %v749_v3, %v745_v5 }
 0xa23   :  { %v691_v50 = vpop.permute.xlu2 %690 }
 0xa24   :  { %v693_v52 = vmul.f32 %v691_v50, %v682_v51 }
 0xa26   :  { %695 = vrot.lane.b32.xlu1 %v693_v52, %s1192_s3 }
 0xa43   :  { %v754_v0 = vpop.permute.xlu0 %753 }
 0xa44   :  { %v756_v6 = vmul.f32 %v754_v0, %v745_v5 }
 0xa46   :  { %758 = vrot.lane.b32.xlu2 %v756_v6, %s1192_s3 }
 0xa98   :  { %v696_v11 = vpop.permute.xlu1 %695 }
 0xa99   :  { %v1411_v13 = vadd.f32 %v696_v11, %v688_v61 }
 0xa9b   :  { %1168 = vtanh.f32 %v1411_v13  ;;  %v814_v62 = vrot.slane %v1411_v13, 6 }
 0xaa0   :  { %v759_v19 = vpop.permute.xlu2 %758 }
 0xaa1   :  { %v1169_v22 = vpop.eup %1168  ;;  %v1415_v10 = vadd.f32 %v759_v19, %v751_v63 }
 0xaa2   :  { %701 = vrot.lane.b32.xlu0 %v1169_v22, %s1191_s22 }
 0xaa3   :  { %1170 = vtanh.f32 %v1415_v10  ;;  %v879_v7 = vrot.slane %v1415_v10, 6  ;;  %v1083_v10 = vld [vmem:[%s1462_s4 + $0x8] sm:$0xff] }
 0xaa4   :  { %966 = vmatpush.bf16.msrb.mxu3 %v1083_v10 }
 0xaa9   :  { %v1171_v24 = vpop.eup %1170 }
 0xaaa   :  { %764 = vrot.lane.b32.xlu1 %v1171_v24, %s1191_s22 }
 0xb14   :  { %v702_v12 = vpop.permute.xlu0 %701 }
 0xb15   :  { %v704_v9 = vmul.f32 %v702_v12, %v682_v51 }
 0xb17   :  { %v768_v1 = vpack.c.bf16 %v704_v9, %v704_v9  ;;  %v1082_v9 = vld [vmem:[%s1462_s4] sm:$0xff] }
 0xb18   :  { %967 = vmatpush.bf16.msrb.mxu3 %v1082_v9 }
 0xb19   :  { %770 = vrot.lane.b32.xlu2 %v768_v1, %s1192_s3 }
 0xb1c   :  { %v765_v4 = vpop.permute.xlu1 %764 }
 0xb1d   :  { %v767_v25 = vmul.f32 %v765_v4, %v745_v5 }
 0xb1f   :  { %v833_v21 = vpack.c.bf16 %v767_v25, %v767_v25 }
 0xb21   :  { %835 = vrot.lane.b32.xlu0 %v833_v21, %s1192_s3 }
 0xb73   :  { %v771_v26 = vpop.permute.xlu2 %770 }
 0xb74   :  { %1048 = vmatmul.msk.bf16.vlgmr.msrb.gmra.mxu0 %vm43_vm0, %v771_v26  ;;  %v1085_v26 = vld [vmem:[%s1462_s4 + $0x18] sm:$0xff] }
 0xb75   :  { %934 = vmatpush.bf16.msrb.mxu2 %v1085_v26 }
 0xb93   :  { %v836_v27 = vpop.permute.xlu0 %835 }
 0xb94   :  { %1050 = vmatmul.msk.bf16.vlgmr.msrb.gmra.mxu1 %vm43_vm0, %v836_v27  ;;  %v1084_v27 = vld [vmem:[%s1462_s4 + $0x10] sm:$0xff] }
 0xb95   :  { %935 = vmatpush.bf16.msrb.mxu2 %v1084_v27 }
 0xbf1   :  { %v784_v14 = vpop.f32.mrf.mxu0 }
 0xbf2   :  { %v789_v2 = vrot.slane %v784_v14, 6 }
 0xbf4   :  { %v791_v8 = vadd.f32 %v789_v2, %v1332_v17 }
 0xbf6   :  { %v792_v28 = vadd.f32 %v1297_v15, %v791_v8 }
 0xbf8   :  { %1172 = vtanh.f32 %v792_v28  ;;  %v1049_v37 = vmul.f32 -1.442695, %v792_v28 }
 0xbf9   :  { %v786_v29 = vpop.f32.mrf.mxu0 }
 0xbfa   :  { %v1091_v29 = vld [vmem:[%s1463_s5] ss:$0 sm:$0xff] }
 0xbfe   :  { %v1173_v30 = vpop.eup %1172 }
 0xbff   :  { %818 = vrot.lane.b32.xlu1 %v1173_v30, %s1191_s22 }
 0xc11   :  { %v849_v31 = vpop.f32.mrf.mxu1 }
 0xc12   :  { %v854_v32 = vrot.slane %v849_v31, 6 }
 0xc14   :  { %v856_v33 = vadd.f32 %v854_v32, %v1334_v18 }
 0xc16   :  { %v857_v34 = vadd.f32 %v1309_v23, %v856_v33 }
 0xc18   :  { %1174 = vtanh.f32 %v857_v34  ;;  %v1051_v17 = vmul.f32 -1.442695, %v857_v34 }
 0xc19   :  { %v851_v35 = vpop.f32.mrf.mxu1  ;;  %1176 = vpow2.f32 %v1049_v37 }
 0xc1a   :  { %1178 = vpow2.f32 %v1051_v17 }
 0xc1e   :  { %v1175_v36 = vpop.eup %1174 }
 0xc1f   :  { %883 = vrot.lane.b32.xlu2 %v1175_v36, %s1191_s22  ;;  %v1177_v15 = vpop.eup %1176 }
 0xc20   :  { %v796_v16 = vadd.f32 1.0, %v1177_v15  ;;  %v1179_v38 = vpop.eup %1178 }
 0xc21   :  { %v861_v39 = vadd.f32 1.0, %v1179_v38 }
 0xc22   :  { %1180 = vrcp.f32 %v796_v16  ;;  %v808_v45 = vand.u32 2147483648, %v796_v16  ;;  %vm802_vm12 = vweird.f32 %v796_v16  ;;  %v806_v46 = vand.u32 2147483647, %v796_v16 }
 0xc23   :  { %1182 = vrcp.f32 %v861_v39  ;;  %v873_v54 = vand.u32 2147483648, %v861_v39  ;;  %vm867_vm1 = vweird.f32 %v861_v39  ;;  %v871_v55 = vand.u32 2147483647, %v861_v39 }
 0xc24   :  { %v809_v49 = vor.u32 1.1754944e-38, %v808_v45  ;;  %vm807_vm14 = vcmp.eq.f32.partialorder %v806_v46, 8.507059e+37 }
 0xc25   :  { %v874_v57 = vor.u32 1.1754944e-38, %v873_v54  ;;  %vm872_vm3 = vcmp.eq.f32.partialorder %v871_v55, 8.507059e+37 }
 0xc28   :  { %v1181_v40 = vpop.eup %1180 }
 0xc29   :  { %v798_v41 = vmul.f32 %v1181_v40, %v796_v16  ;;  %v1183_v20 = vpop.eup %1182  ;;  %vm803_vm11 = vweird.f32 %v1181_v40 }
 0xc2a   :  { %v863_v42 = vmul.f32 %v1183_v20, %v861_v39  ;;  %vm804_vm13 = vmor %vm802_vm12, %vm803_vm11  ;;  %vm868_vm15 = vweird.f32 %v1183_v20 }
 0xc2b   :  { %v799_v18 = vsub.f32 1.0, %v798_v41  ;;  %vm869_vm2 = vmor %vm867_vm1, %vm868_vm15 }
 0xc2c   :  { %v864_v44 = vsub.f32 1.0, %v863_v42 }
 0xc2d   :  { %v800_v23 = vmul.f32 %v1181_v40, %v799_v18 }
 0xc2e   :  { %v865_v48 = vmul.f32 %v1183_v20, %v864_v44 }
 0xc2f   :  { %v801_v43 = vadd.f32 %v1181_v40, %v800_v23 }
 0xc30   :  { %v866_v53 = vadd.f32 %v1183_v20, %v865_v48 }
 0xc31   :  { %v805_v47 = vsel %vm804_vm13, %v1181_v40, %v801_v43 }
 0xc32   :  { %v810_v51 = vsel %vm807_vm14, %v809_v49, %v805_v47  ;;  %v870_v56 = vsel %vm869_vm2, %v1183_v20, %v866_v53 }
 0xc33   :  { %v875_v59 = vsel %vm872_vm3, %v874_v57, %v870_v56  ;;  %v816_v0 = vmul.f32 %v814_v62, %v810_v51 }
 0xc34   :  { %v881_v61 = vmul.f32 %v879_v7, %v875_v59 }
 0xc71   :  { %v819_v50 = vpop.permute.xlu1 %818 }
 0xc72   :  { %v821_v52 = vmul.f32 %v819_v50, %v810_v51 }
 0xc74   :  { %823 = vrot.lane.b32.xlu0 %v821_v52, %s1192_s3 }
 0xc79   :  { %v884_v58 = vpop.permute.xlu2 %883 }
 0xc7a   :  { %v886_v60 = vmul.f32 %v884_v58, %v875_v59 }
 0xc7c   :  { %888 = vrot.lane.b32.xlu1 %v886_v60, %s1192_s3 }
 0xce6   :  { %v824_v5 = vpop.permute.xlu0 %823 }
 0xce7   :  { %v826_v6 = vadd.f32 %v824_v5, %v816_v0 }
 0xce9   :  { %1184 = vtanh.f32 %v826_v6 }
 0xcee   :  { %v889_v11 = vpop.permute.xlu1 %888 }
 0xcef   :  { %v1185_v3 = vpop.eup %1184  ;;  %v891_v63 = vadd.f32 %v889_v11, %v881_v61 }
 0xcf0   :  { %829 = vrot.lane.b32.xlu2 %v1185_v3, %s1191_s22 }
 0xcf1   :  { %1186 = vtanh.f32 %v891_v63 }
 0xcf7   :  { %v1187_v19 = vpop.eup %1186 }
 0xcf8   :  { %894 = vrot.lane.b32.xlu0 %v1187_v19, %s1191_s22 }
 0xd4a   :  { %v830_v22 = vpop.permute.xlu2 %829 }
 0xd4b   :  { %v832_v24 = vmul.f32 %v830_v22, %v810_v51 }
 0xd4d   :  { %v898_v12 = vpack.c.bf16 %v832_v24, %v832_v24 }
 0xd4f   :  { %v942_v13 = vrot.slane %v898_v12, 1 }
 0xd51   :  { %943 = vrot.lane.b32.xlu2 %v942_v13, %s1192_s3 }
 0xd6a   :  { %v895_v1 = vpop.permute.xlu0 %894 }
 0xd6b   :  { %v897_v4 = vmul.f32 %v895_v1, %v875_v59 }
 0xd6d   :  { %v903_v25 = vpack.c.bf16 %v897_v4, %v897_v4 }
 0xd6f   :  { %v910_v21 = vrot.slane %v903_v25, 1 }
 0xd71   :  { %911 = vrot.lane.b32.xlu1 %v910_v21, %s1192_s3 }
 0xdab   :  { %v944_v14 = vpop.permute.xlu2 %943 }
 0xdac   :  { %1073 = vmatmul.msk.bf16.vlgmr.msrb.gmra.mxu3 %vm43_vm0, %v944_v14 }
 0xde3   :  { %v912_v2 = vpop.permute.xlu1 %911 }
 0xde4   :  { %1064 = vmatmul.msk.bf16.vlgmr.msrb.gmra.mxu2 %vm43_vm0, %v912_v2 }
 0xe2f   :  { %v969_v8 = vpop.f32.mrf.mxu3 }
 0xe37   :  { %v971_v28 = vpop.f32.mrf.mxu3 }
 0xe67   :  { %v937_v30 = vpop.f32.mrf.mxu2 }
 0xe68   :  { %v970_v31 = vadd.f32 %v969_v8, %v937_v30 }
 0xe6a   :  { %v977_v32 = vadd.f32 %v1091_v29, %v970_v31 }
 0xe6c   :  { %1188 = vtanh.f32 %v977_v32 }
 0xe6f   :  { %v939_v33 = vpop.f32.mrf.mxu2 }
 0xe72   :  { %v1189_v34 = vpop.eup %1188 }
 0xe73   :  { %980 = vst.msk [vmem:[%s1464_s6] sm:$0x3] %vm979_vm4, %v1189_v34 }

// kernel: transformer_crf_forward.5
= control target key start
LH: loop header
LB: loop body
LE: loop exit
PB: predicated region body
PF: predicated region fallthrough
CT: control target
= control target key end

     0   :  { %v378_v1 = vmov 0   ;;  %s554_s0 = inlined_call_operand.vmem [shape: f32[8,6,2], index: 0, kind: input, shape index: {}]   ;;  %s555_s1 = inlined_call_operand.vmem [shape: f32[8,1,2], index: 1, kind: input, shape index: {}]   ;;  %s556_s2 = inlined_call_operand.vmem [shape: f32[6,6,1], index: 2, kind: input, shape index: {}]   ;;  %s557_s3 = inlined_call_operand.vmem [shape: f32[6,1], index: 3, kind: input, shape index: {}]   ;;  %s558_s4 = inlined_call_operand.vmem [shape: f32[6,1], index: 4, kind: input, shape index: {}]   ;;  %s559_s5 = inlined_call_operand.hbm [shape: f32[1,2], index: 5, kind: output, shape index: {0}]   ;;  %s560_s6 = inlined_call_operand.vmem [shape: s32[8,2], index: 6, kind: output, shape index: {1}]  }
   0x1   :  { %v37_v0 = vld [vmem:[%s557_s3] sm:$0x3f]  ;;  %315 = vset.pattern.permute.xlu0 %v378_v1 }
   0x2   :  { %12 = vsyncpa [#allocation5], 0  ;;  %41 = vperm.xlu0 %315, %v37_v0   ;;  %v29_v2 = vlaneseq  ;;  %v425_v4 = vld [vmem:[%s556_s2] sm:$0x3f]  ;;  %v430_v5 = vld [vmem:[%s556_s2 + $0x8] sm:$0x3f] }
   0x3   :  { %v435_v6 = vld [vmem:[%s556_s2 + $0x10] sm:$0x3f]  ;;  %v440_v7 = vld [vmem:[%s556_s2 + $0x18] sm:$0x3f]  ;;  %v445_v8 = vld [vmem:[%s556_s2 + $0x20] sm:$0x3f] }
   0x4   :  { %v420_v3 = vshrl.u32 %v29_v2, 7  ;;  %v450_v9 = vld [vmem:[%s556_s2 + $0x28] sm:$0x3f]  ;;  %v38_v16 = vld [vmem:[%s554_s0] sm:$0x3f]  ;;  %vm45_vm0 = vcmask 13312  }
   0x5   :  { %s462_s2 = smov 0  }
   0x6   :  { %v31_v10 = vperm.slane %v420_v3, 0  ;;  %v32_v11 = vperm.slane %v420_v3, 1  ;;  %v33_v12 = vperm.slane %v420_v3, 2  ;;  %v34_v13 = vperm.slane %v420_v3, 3 }
   0x7   :  { %v35_v14 = vperm.slane %v420_v3, 4  ;;  %v36_v15 = vperm.slane %v420_v3, 5 }
  0x74   :  { %v42_v17 = vpop.permute.xlu0 %41 }
  0x75   :  { %v44_v18 = vadd.f32 %v42_v17, %v38_v16 }
  0x77   :  { %46 = vst.msk [vmem:[#allocation2] sm:$0x3f] %vm45_vm0, %v44_v18 }
  0x78 LB: > { %v379_v19 = vmov 0   ;;  %s250_s14 = scalar_lea.vmem %s555_s1, %s364_s2  ;;  %s274_s15 = sshll.u32 %s364_s2, 3  ;;  %s364_s2 = sphi %s462_s2, %s52_s2  }
  0x79   : > { %317 = vset.pattern.permute.xlu1 %v379_v19  ;;  %316 = vset.pattern.permute.xlu0 %v379_v19  ;;  %v276_v33 = vld [vmem:[%s250_s14 + $0x1] sm:$0x1]  ;;  %s248_s18 = scalar_lea.vmem %s554_s0, %s274_s15  ;;  %s253_s19 = scalar_lea.vmem [#allocation3], %s274_s15 }
  0x7a   : > { %95 = vperm.xlu1 %317, %v445_v8   ;;  %75 = vperm.xlu0 %316, %v425_v4   ;;  %vm154_vm1 = vcmp.gt.f32.partialorder %v276_v33, 0.0  ;;  %v275_v59 = vld [vmem:[%s248_s18 + $0x8] sm:$0x3f]  ;;  %s52_s2 = sadd.s32 1, %s364_s2  }
  0x7b   : > { %318 = vset.pattern.permute.xlu2 %v379_v19  ;;  %v155_v47 = vsel %vm154_vm1, 1, %v379_v19  ;;  %p49_p0 = scmp.ge.s32.totalorder %s52_s2, 7  }
  0x7c   : > { %85 = vperm.xlu2 %318, %v435_v6   ;;  %v156_v54 = vperm.slane %v155_v47, 0  ;;  %vm189_vm14 = vcmask (%p49_p0), 8192   ;;  %s536_s0 = smov (%p49_p0), 0  }
  0x7e   : > { %v473_v21 = vld [vmem:[#allocation2] sm:$0x3f]  ;;  %vm497_vm2 = vcmp.eq.s32.totalorder %v156_v54, 1 }
  0x7f   : > { %v59_v22 = vrot.slane %v473_v21, 4  ;;  %v57_v23 = vrot.slane %v473_v21, 2  ;;  %v58_v24 = vrot.slane %v473_v21, 3  ;;  %v61_v28 = vperm.slane %v473_v21, 0 }
  0x80   : > { %v60_v29 = vrot.slane %v473_v21, 5  ;;  %v56_v30 = vrot.slane %v473_v21, 1 }
  0x81   : > { %v65_v27 = vperm.slane %v59_v22, 0  ;;  %v63_v31 = vperm.slane %v57_v23, 0  ;;  %v64_v32 = vperm.slane %v58_v24, 0 }
  0x82   : > { %100 = vperm.xlu1 %317, %v450_v9   ;;  %80 = vperm.xlu0 %316, %v430_v5   ;;  %v66_v37 = vperm.slane %v60_v29, 0  ;;  %v62_v38 = vperm.slane %v56_v30, 0 }
  0x84   : > { %90 = vperm.xlu2 %318, %v440_v7  }
  0x8a   :  { %319 = vset.pattern.permute.xlu0 (%p49_p0), %v378_v1 }
  0xd6   : > { %v86_v20 = vpop.permute.xlu2 %85 }
  0xd7   : > { %v105_v39 = vadd.f32 %v86_v20, %v63_v31 }
  0xd9   : > { %v111_v48 = vsel %vm45_vm0, %v105_v39, -inf }
  0xde   : > { %v91_v34 = vpop.permute.xlu2 %90 }
  0xdf   : > { %v106_v40 = vadd.f32 %v91_v34, %v64_v32 }
  0xe1   : > { %v112_v49 = vsel %vm45_vm0, %v106_v40, -inf }
  0xe2   : > { %v118_v55 = vmax.f32 %v111_v48, %v112_v49 }
  0xec   : > { %v96_v25 = vpop.permute.xlu1 %95  ;;  %v76_v26 = vpop.permute.xlu0 %75 }
  0xed   : > { %v107_v35 = vadd.f32 %v96_v25, %v65_v27  ;;  %v103_v36 = vadd.f32 %v76_v26, %v61_v28 }
  0xef   : > { %v113_v43 = vsel %vm45_vm0, %v107_v35, -inf  ;;  %v109_v44 = vsel %vm45_vm0, %v103_v36, -inf }
  0xf0   : > { %v114_v52 = vmax.f32 %v109_v44, %v113_v43 }
  0xf4   : > { %v101_v41 = vpop.permute.xlu1 %100  ;;  %v81_v42 = vpop.permute.xlu0 %80 }
  0xf5   : > { %v108_v45 = vadd.f32 %v101_v41, %v66_v37  ;;  %v104_v46 = vadd.f32 %v81_v42, %v62_v38 }
  0xf7   : > { %v115_v50 = vsel %vm45_vm0, %v108_v45, -inf  ;;  %v110_v51 = vsel %vm45_vm0, %v104_v46, -inf }
  0xf8   : > { %v116_v53 = vmax.f32 %v110_v51, %v115_v50 }
  0xfa   : > { %v117_v56 = vmax.f32 %v114_v52, %v116_v53 }
  0xfc   : > { %v119_v57 = vmax.f32 %v117_v56, %v118_v55 }
  0xfe   : > { %vm120_vm3 = vcmp.eq.f32.partialorder %v103_v36, %v119_v57  ;;  %vm121_vm4 = vcmp.eq.f32.partialorder %v104_v46, %v119_v57  ;;  %vm122_vm5 = vcmp.eq.f32.partialorder %v105_v39, %v119_v57  ;;  %vm123_vm6 = vcmp.eq.f32.partialorder %v106_v40, %v119_v57 }
  0xff   : > { %vm124_vm7 = vcmp.eq.f32.partialorder %v107_v35, %v119_v57  ;;  %vm125_vm8 = vcmp.eq.f32.partialorder %v108_v45, %v119_v57  ;;  %v126_v60 = vsel %vm120_vm3, %v31_v10, 6  ;;  %v127_v61 = vsel %vm121_vm4, %v32_v11, 6 }
 0x100   : > { %v128_v62 = vsel %vm122_vm5, %v33_v12, 6  ;;  %v129_v63 = vsel %vm123_vm6, %v34_v13, 6  ;;  %v130_v0 = vsel %vm124_vm7, %v35_v14, 6  ;;  %v131_v2 = vsel %vm125_vm8, %v36_v15, 6 }
 0x101   : > { %v132_v16 = vsel %vm45_vm0, %v126_v60, 2147483647  ;;  %v133_v17 = vsel %vm45_vm0, %v127_v61, 2147483647  ;;  %v134_v18 = vsel %vm45_vm0, %v128_v62, 2147483647  ;;  %v151_v19 = vadd.f32 %v275_v59, %v119_v57 }
 0x102   : > { %v135_v20 = vsel %vm45_vm0, %v129_v63, 2147483647  ;;  %v136_v22 = vsel %vm45_vm0, %v130_v0, 2147483647  ;;  %v139_v23 = vsel %vm45_vm0, %v131_v2, 2147483647 }
 0x103   : > { %vm137_vm9 = vcmp.lt.s32.totalorder %v132_v16, %v136_v22  ;;  %vm140_vm10 = vcmp.lt.s32.totalorder %v133_v17, %v139_v23  ;;  %vm144_vm11 = vcmp.lt.s32.totalorder %v134_v18, %v135_v20  ;;  %v158_v24 = vsel %vm497_vm2, %v151_v19, %v473_v21  ;;  %v163_v21 = vld [vmem:[%s558_s4] sm:$0x3f] (%p49_p0) }
 0x104   : > { %v138_v25 = vsel %vm137_vm9, %v132_v16, %v136_v22  ;;  %v141_v26 = vsel %vm140_vm10, %v133_v17, %v139_v23  ;;  %159 = vst.msk [vmem:[#allocation2] sm:$0x3f] %vm45_vm0, %v158_v24  ;;  %v145_v28 = vsel %vm144_vm11, %v134_v18, %v135_v20  ;;  %166 = vperm.xlu0 (%p49_p0), %319, %v163_v21   ;;  %v366_v11 = vmov (%p49_p0), 0  }
 0x105   : > { %vm142_vm12 = vcmp.lt.s32.totalorder %v138_v25, %v141_v26  ;;  %51 = sbr.rel (!%p49_p0) target bundleno = 120 (0x78), region = 67 }
 0x106   : > { %v143_v27 = vsel %vm142_vm12, %v138_v25, %v141_v26 }
 0x107   : > { %vm146_vm13 = vcmp.lt.s32.totalorder %v143_v27, %v145_v28 }
 0x108   : > { %v147_v29 = vsel %vm146_vm13, %v143_v27, %v145_v28 }
 0x109   : > { %278 = vst.msk [vmem:[%s253_s19 + $0x8] sm:$0x3f] %vm45_vm0, %v147_v29 }
 0x10b   :  { %v162_v30 = vld [vmem:[#allocation2] sm:$0x3f] }
 0x176   :  { %v167_v31 = vpop.permute.xlu0 %166 }
 0x177   :  { %v169_v32 = vadd.f32 %v167_v31, %v162_v30 }
 0x179   :  { %v170_v33 = vsel %vm45_vm0, %v169_v32, -inf }
 0x17a   :  { %v171_v34 = vrot.slane %v170_v33, 4 }
 0x17c   :  { %v172_v35 = vmax.f32 %v170_v33, %v171_v34 }
 0x17e   :  { %v173_v36 = vrot.slane %v172_v35, 2 }
 0x180   :  { %v174_v37 = vmax.f32 %v172_v35, %v173_v36 }
 0x182   :  { %v175_v38 = vrot.slane %v174_v37, 1 }
 0x184   :  { %v176_v39 = vmax.f32 %v174_v37, %v175_v38 }
 0x186   :  { %vm177_vm15 = vcmp.eq.f32.partialorder %v169_v32, %v176_v39  ;;  %190 = vst.msk [vmem:[#allocation4] sm:$0x1] %vm189_vm14, %v176_v39 }
 0x187   :  { %v178_v1 = vsel %vm177_vm15, %v420_v3, 6 }
 0x188   :  { %v179_v4 = vsel %vm45_vm0, %v178_v1, 2147483647 }
 0x189   :  { %v180_v5 = vrot.slane %v179_v4, 4 }
 0x18b   :  { %vm181_vm1 = vcmp.lt.s32.totalorder %v179_v4, %v180_v5 }
 0x18c   :  { %v182_v6 = vsel %vm181_vm1, %v179_v4, %v180_v5 }
 0x18d   :  { %v183_v7 = vrot.slane %v182_v6, 2 }
 0x18f   :  { %vm184_vm2 = vcmp.lt.s32.totalorder %v182_v6, %v183_v7 }
 0x190   :  { %v185_v8 = vsel %vm184_vm2, %v182_v6, %v183_v7 }
 0x191   :  { %v186_v9 = vrot.slane %v185_v8, 1 }
 0x193   :  { %vm187_vm3 = vcmp.lt.s32.totalorder %v185_v8, %v186_v9 }
 0x194   :  { %v188_v10 = vsel %vm187_vm3, %v185_v8, %v186_v9  }
 0x195   :  { %v370_v12 = vmov %v188_v10  }
 0x196 LB: > { %s199_s4 = ssub.s32 7, %s376_s0  ;;  %v208_v13 = vperm.slane %v372_v12, 0  ;;  %s196_s0 = sadd.s32 1, %s376_s0   ;;  %s376_s0 = sphi %s536_s0, %s196_s0   ;;  %v372_v12 = vphi %v370_v12, %v371_v12   ;;  %v368_v11 = vphi %v366_v11, %v367_v11  }
 0x197   : > { %s200_s24 = scalar_lea.vmem %s555_s1, %s199_s4  ;;  %v203_v14 = vstv %s199_s4  ;;  %s279_s25 = sshll.u32 %s199_s4, 3 }
 0x198   : > { %v201_v15 = vld [vmem:[%s200_s24] sm:$0x1]  ;;  %vm209_vm4 = vcmp.eq.s32.totalorder %v420_v3, %v208_v13  ;;  %s211_s26 = scalar_lea.vmem [#allocation3], %s279_s25  ;;  %vm204_vm6 = vcmp.eq.s32.totalorder %v420_v3, %v203_v14  ;;  %p193_p1 = scmp.ge.s32.totalorder %s196_s0, 7  }
 0x199   : > { %vm202_vm5 = vcmp.gt.f32.partialorder %v201_v15, 0.0  ;;  %v212_v40 = vld [vmem:[%s211_s26] sm:$0x3f]  ;;  %vm222_vm7 = vcmp.eq.s32.totalorder (%p193_p1), %v420_v3, 0  ;;  %vm225_vm8 = vcmask (%p193_p1), 15360   ;;  %s234_s28 = sshll.u32 (%p193_p1), %s559_s5, 4  ;;  %s235_s28 = int_to_ptr.hbm [resolvable:$true] %s234_s28 }
 0x19a   : > { %v205_v41 = vsel %vm202_vm5, %v372_v12, 0  ;;  %v213_v42 = vsel %vm209_vm4, %v212_v40, 0  ;;  %s380_s29 = smov (%p193_p1), [#allocation4]  }
 0x19b   : > { %v206_v43 = vperm.slane %v205_v41, 0  ;;  %v214_v44 = vsel %vm45_vm0, %v213_v42, 0  ;;  %s232_s30 = sshll.u32 (%p193_p1), %s380_s29, 4  ;;  %s233_s30 = int_to_ptr.vmem [resolvable:$true] %s232_s30 }
 0x19c   : > { %v215_v45 = vrot.slane %v214_v44, 4  ;;  %237 = dma.vmem_to_hbm [thread:$0]  (%p193_p1), %s233_s30, 16, %s235_s28, [#allocation5]  }
 0x19d   : > { %v207_v46 = vsel %vm204_vm6, %v206_v43, %v368_v11  }
 0x19e   : > { %v216_v47 = vadd.s32 %v215_v45, %v214_v44  ;;  %v367_v11 = vmov %v207_v46  }
 0x1a0   : > { %v217_v48 = vrot.slane %v216_v47, 2 }
 0x1a2   : > { %v218_v49 = vadd.s32 %v217_v48, %v216_v47 }
 0x1a4   : > { %v219_v50 = vrot.slane %v218_v49, 1 }
 0x1a5   :  { %195 = sbr.rel (!%p193_p1) target bundleno = 406 (0x196), region = 78 }
 0x1a6   : > { %v220_v51 = vadd.s32 %v219_v50, %v218_v49 }
 0x1a8   : > { %v221_v52 = vsel %vm202_vm5, %v220_v51, %v372_v12  }
 0x1a9   : > { %v371_v12 = vmov %v221_v52   ;;  %v223_v53 = vperm.slane (%p193_p1), %v221_v52, 0 }
 0x1ab   :  { %v224_v54 = vsel %vm222_vm7, %v223_v53, %v207_v46 }
 0x1ac   :  { %226 = vst.msk [vmem:[%s560_s6] sm:$0xff] %vm225_vm8, %v224_v54 }
 0x1ad   :  { %360 = dma.done.wait [#allocation5], 16  }
 0x1ae   :  { %361 = vsyncadd [#allocation5], 4294967280 }
 0x1af   :  { %246 = vsyncpa [#allocation5], 1 }

// kernel: transformer_crf_forward.4
= control target key start
LH: loop header
LB: loop body
LE: loop exit
PB: predicated region body
PF: predicated region fallthrough
CT: control target
= control target key end

     0   :  { %vm105_vm0 = vcmask 261120   ;;  %vm213_vm1 = vcmask 64512   ;;  %s1001_s27 = smov 120   ;;  %vm238_vm2 = vcmask 130048   ;;  %vm361_vm3 = vcmask 1043456   ;;  %s1349_s4 = inlined_call_operand.vmem [shape: bf16[32,32], index: 4, kind: input, shape index: {}]   ;;  %s1350_s6 = inlined_call_operand.vmem [shape: bf16[32,32], index: 6, kind: input, shape index: {}]   ;;  %s1351_s0 = inlined_call_operand.vmem [shape: f32[16,32], index: 0, kind: input, shape index: {}]   ;;  %s1352_s1 = inlined_call_operand.vmem [shape: f32[16,32], index: 1, kind: input, shape index: {}]   ;;  %s1353_s2 = inlined_call_operand.vmem [shape: f32[16,32], index: 2, kind: input, shape index: {}]   ;;  %s1354_s5 = inlined_call_operand.vmem [shape: f32[1,32], index: 5, kind: input, shape index: {}]   ;;  %s1355_s7 = inlined_call_operand.vmem [shape: f32[1,32], index: 7, kind: input, shape index: {}]   ;;  %s1356_s3 = inlined_call_operand.vmem [shape: f32[16,16], index: 3, kind: input, shape index: {}]   ;;  %s1357_s8 = inlined_call_operand.vmem [shape: bf16[32,32], index: 8, kind: input, shape index: {}]   ;;  %s1358_s9 = inlined_call_operand.vmem [shape: f32[1,32], index: 9, kind: input, shape index: {}]   ;;  %s1359_s10 = inlined_call_operand.vmem [shape: bf16[32,32], index: 10, kind: input, shape index: {}]   ;;  %s1360_s11 = inlined_call_operand.vmem [shape: f32[1,32], index: 11, kind: input, shape index: {}]   ;;  %s1361_s12 = inlined_call_operand.vmem [shape: f32[1,32], index: 12, kind: input, shape index: {}]   ;;  %s1362_s13 = inlined_call_operand.vmem [shape: f32[1,32], index: 13, kind: input, shape index: {}]   ;;  %s1363_s17 = inlined_call_operand.vmem [shape: f32[1,64], index: 17, kind: input, shape index: {}]   ;;  %s1364_s16 = inlined_call_operand.vmem [shape: bf16[32,64], index: 16, kind: input, shape index: {}]   ;;  %s1365_s19 = inlined_call_operand.vmem [shape: f32[1,32], index: 19, kind: input, shape index: {}]   ;;  %s1366_s18 = inlined_call_operand.vmem [shape: bf16[64,32], index: 18, kind: input, shape index: {}]   ;;  %s1367_s14 = inlined_call_operand.vmem [shape: f32[1,32], index: 14, kind: input, shape index: {}]   ;;  %s1368_s15 = inlined_call_operand.vmem [shape: f32[1,32], index: 15, kind: input, shape index: {}]   ;;  %s1369_s21 = inlined_call_operand.vmem [shape: f32[1,6], index: 21, kind: input, shape index: {}]   ;;  %s1370_s20 = inlined_call_operand.vmem [shape: bf16[32,6], index: 20, kind: input, shape index: {}]   ;;  %s1371_s22 = inlined_call_operand.vmem [shape: f32[16,6], index: 22, kind: output, shape index: {}]  }
   0x1   :  { %1377 = sst [smem:[#allocation2_spill]] %s1349_s4  ;;  %v1175_v42 = vld [vmem:[%s1356_s3] sm:$0xff]  ;;  %v1182_v47 = vld [vmem:[%s1356_s3 + $0x8] sm:$0xff]  ;;  %vm735_vm11 = vcmask 523264  }
   0x2   :  { %1378 = sst [smem:[#allocation3_spill]] %s1350_s6  ;;  %v935_v51 = vld [vmem:[%s1357_s8 + $0x8] sm:$0xff]  ;;  %v934_v52 = vld [vmem:[%s1357_s8] sm:$0xff] }
   0x3   :  { %1379 = sst [smem:[#allocation4_spill]] %s1351_s0  ;;  %183 = vmatpush.bf16.msra.mxu2 %v935_v51 }
   0x4   :  { %1380 = sst [smem:[#allocation5_spill]] %s1352_s1  ;;  %s1002_s1 = smov 104  }
   0x5   :  { %1381 = sst [smem:[#allocation6_spill]] %s1353_s2  ;;  %s1003_s2 = smov 112  }
   0x6   :  { %1382 = sst [smem:[#allocation7_spill]] %s1354_s5 }
   0x7   :  { %1383 = sst [smem:[#allocation8_spill]] %s1355_s7  ;;  %184 = vmatpush.bf16.msra.mxu2 %v934_v52 }
   0x8   :  { %1384 = sst [smem:[#allocation9_spill]] %s1365_s19 }
   0x9   :  { %s1385_s29 = sld [smem:[#allocation2_spill]] }
   0xa   :  { %s1386_s19 = sld [smem:[#allocation3_spill]] }
   0xb   :  { %s1387_s25 = sld [smem:[#allocation4_spill]] }
   0xc   :  { %s1388_s28 = sld [smem:[#allocation5_spill]] }
   0xd   :  { %s1389_s4 = sld [smem:[#allocation6_spill]] }
   0xe   :  { %s1390_s7 = sld [smem:[#allocation8_spill]] }
   0xf   :  { %v931_v0 = vld [vmem:[%s1385_s29 + $0x8] sm:$0xff]  ;;  %v930_v2 = vld [vmem:[%s1385_s29] sm:$0xff]  ;;  %s1391_s0 = sld [smem:[#allocation7_spill]] }
  0x10   :  { %v933_v1 = vld [vmem:[%s1386_s19 + $0x8] sm:$0xff]  ;;  %v932_v3 = vld [vmem:[%s1386_s19] sm:$0xff]  ;;  %115 = vmatpush.bf16.msra.mxu0 %v931_v0 }
  0x11   :  { %v72_v4 = vld [vmem:[%s1387_s25] sm:$0xff]  ;;  %v73_v5 = vld [vmem:[%s1387_s25 + $0x8] sm:$0xff]  ;;  %149 = vmatpush.bf16.msra.mxu1 %v933_v1 }
  0x12   :  { %v74_v6 = vmul.f32 5.656854, %v72_v4  ;;  %v75_v7 = vmul.f32 5.656854, %v73_v5  ;;  %v76_v8 = vld [vmem:[%s1388_s28] sm:$0xff]  ;;  %v77_v9 = vld [vmem:[%s1388_s28 + $0x8] sm:$0xff] }
  0x13   :  { %v80_v10 = vld [vmem:[%s1389_s4] sm:$0xff]  ;;  %v81_v11 = vld [vmem:[%s1389_s4 + $0x8] sm:$0xff] }
  0x14   :  { %v78_v12 = vadd.f32 %v76_v8, %v74_v6  ;;  %v79_v13 = vadd.f32 %v77_v9, %v75_v7  ;;  %116 = vmatpush.bf16.msra.mxu0 %v930_v2  ;;  %v949_v19 = vld [vmem:[%s1390_s7] ss:$0 sm:$0xff] }
  0x15   :  { %150 = vmatpush.bf16.msra.mxu1 %v932_v3  ;;  %v948_v21 = vld [vmem:[%s1391_s0] ss:$0 sm:$0xff] }
  0x16   :  { %v1150_v14 = vadd.f32 %v80_v10, %v78_v12  ;;  %v1152_v15 = vadd.f32 %v81_v11, %v79_v13  ;;  %v950_v9 = vld [vmem:[%s1358_s9] ss:$0 sm:$0xff] }
  0x18   :  { %v84_v16 = vpack.c.bf16 %v1152_v15, %v1150_v14 }
  0x1a   :  { %864 = vmatmul.msk.bf16.vlgmr.msra.gmra.mxu0 %vm105_vm0, %v84_v16  ;;  %873 = vmatmul.msk.bf16.vlgmr.msra.gmra.mxu1 %vm105_vm0, %v84_v16 }
  0x1b   :  { %882 = vmatmul.msk.bf16.vlgmr.msra.gmra.mxu2 %vm105_vm0, %v84_v16 }
  0x97   :  { %v118_v17 = vpop.f32.mrf.mxu0  ;;  %v152_v18 = vpop.f32.mrf.mxu1 }
  0x98   :  { %v153_v20 = vadd.f32 %v949_v19, %v152_v18  ;;  %v119_v26 = vadd.f32 %v948_v21, %v118_v17 }
  0x9a   :  { %v193_v24 = vpack.c.bf16 %v153_v20, %v153_v20  ;;  %v191_v31 = vpack.c.bf16 %v119_v26, %v119_v26 }
  0x9c   :  { %v210_v29 = vunpack.c.l.b16 %v193_v24  ;;  %v205_v35 = vunpack.c.l.b16 %v191_v31 }
  0x9e   :  { %v186_v10 = vpop.f32.mrf.mxu2 }
  0x9f   :  { %v120_v22 = vpop.f32.mrf.mxu0  ;;  %v154_v23 = vpop.f32.mrf.mxu1  ;;  %v187_v11 = vadd.f32 %v950_v9, %v186_v10 }
  0xa0   :  { %v155_v25 = vadd.f32 %v949_v19, %v154_v23  ;;  %v121_v27 = vadd.f32 %v948_v21, %v120_v22  ;;  %v199_v21 = vld [vmem:[%s1359_s10] sm:$0xf] }
  0xa1   :  { %v195_v12 = vpack.c.bf16 %v187_v11, %v187_v11  ;;  %v383_v22 = vsel %vm361_vm3, %v199_v21, 0 }
  0xa2   :  { %v194_v28 = vpack.c.bf16 %v155_v25, %v155_v25  ;;  %v192_v32 = vpack.c.bf16 %v121_v27, %v121_v27 }
  0xa3   :  { %v264_v17 = vunpack.c.l.b16 %v195_v12 }
  0xa4   :  { %v211_v30 = vunpack.c.l.b16 %v194_v28  ;;  %v206_v36 = vunpack.c.l.b16 %v192_v32 }
  0xa6   :  { %v212_v33 = vpack.c.b16 %v211_v30, %v210_v29  ;;  %v207_v37 = vpack.c.b16 %v206_v36, %v205_v35  ;;  %v188_v13 = vpop.f32.mrf.mxu2 }
  0xa7   :  { %v189_v16 = vadd.f32 %v950_v9, %v188_v13 }
  0xa8   :  { %288 = vrot.lane.b32.xlu2 %v212_v33, %s1001_s27  ;;  %v218_v34 = vsel %vm213_vm1, %v212_v33, 0 }
  0xa9   :  { %227 = vmatpush.bf16.xpose.msra.mxu3 %v218_v34  ;;  %v196_v18 = vpack.c.bf16 %v189_v16, %v189_v16 }
  0xab   :  { %v265_v19 = vunpack.c.l.b16 %v196_v18 }
  0xad   :  { %v1211_v20 = vpack.c.b16 %v265_v19, %v264_v17 }
  0xaf   :  { %278 = vmatpush.bf16.msrb.mxu0 %v1211_v20 }
  0xb0   :  { %286 = vrot.lane.b32.xlu2 %v207_v37, %s1001_s27  ;;  %883 = vmatmul.msk.bf16.vlgmr.msra.gmra.mxu3 %vm213_vm1, %v207_v37 }
  0xb3   :  { %392 = vmatpush.bf16.msra.mxu0 %v383_v22 }
  0xb8   :  { %495 = vrot.lane.b32.xlu2 %v212_v33, %s1002_s1 }
  0xc0   :  { %493 = vrot.lane.b32.xlu2 %v207_v37, %s1002_s1 }
 0x102   :  { %v289_v38 = vpop.permute.xlu2 %288 }
 0x103   :  { %v294_v39 = vsel %vm213_vm1, %v289_v38, 0 }
 0x104   :  { %303 = vmatpush.bf16.xpose.msrb.mxu1 %v294_v39 }
 0x10a   :  { %v287_v40 = vpop.permute.xlu2 %286 }
 0x10b   :  { %885 = vmatmul.msk.bf16.vlgmr.msrb.gmra.mxu1 %vm213_vm1, %v287_v40 }
 0x112   :  { %v496_v29 = vpop.permute.xlu2 %495 }
 0x113   :  { %v501_v31 = vsel %vm213_vm1, %v496_v29, 0 }
 0x133   :  { %v229_v41 = vpop.f32.mrf.mxu3 }
 0x134   :  { %v234_v43 = vmul.f32 0.35355338, %v229_v41 }
 0x136   :  { %v236_v44 = vadd.f32 %v234_v43, %v1175_v42 }
 0x138   :  { %v239_v45 = vsel %vm238_vm2, %v236_v44, -inf }
 0x139   :  { %240 = vmax.xlane.f32.xlu0 %v239_v45 }
 0x13b   :  { %v231_v46 = vpop.f32.mrf.mxu3 }
 0x13c   :  { %v235_v48 = vmul.f32 0.35355338, %v231_v46 }
 0x13e   :  { %v237_v49 = vadd.f32 %v235_v48, %v1182_v47 }
 0x140   :  { %v242_v50 = vsel %vm238_vm2, %v237_v49, -inf }
 0x141   :  { %243 = vmax.xlane.f32.xlu0 %v242_v50 }
 0x155   :  { %401 = vrot.lane.b32.xlu0 %v212_v33, %s1003_s2  ;;  %v494_v33 = vpop.permute.xlu2 %493 }
 0x188   :  { %v305_v53 = vpop.f32.mrf.mxu1 }
 0x189   :  { %v310_v54 = vmul.f32 0.35355338, %v305_v53 }
 0x18b   :  { %v1195_v55 = vadd.f32 %v310_v54, %v1175_v42 }
 0x18d   :  { %v314_v56 = vsel %vm238_vm2, %v1195_v55, -inf }
 0x18e   :  { %315 = vmax.xlane.f32.xlu2 %v314_v56 }
 0x190   :  { %v307_v57 = vpop.f32.mrf.mxu1 }
 0x191   :  { %v311_v58 = vmul.f32 0.35355338, %v307_v57 }
 0x193   :  { %v1200_v59 = vadd.f32 %v311_v58, %v1182_v47 }
 0x195   :  { %v317_v60 = vsel %vm238_vm2, %v1200_v59, -inf }
 0x196   :  { %318 = vmax.xlane.f32.xlu0 %v317_v60 }
 0x1ac   :  { %v241_v61 = vpop.xlane.xlu0 %240 }
 0x1ad   :  { %v245_v62 = vsub.f32 %v236_v44, %v241_v61 }
 0x1af   :  { %v247_v63 = vmul.f32 1.442695, %v245_v62 }
 0x1b1   :  { %959 = vpow2.f32 %v247_v63 }
 0x1b4   :  { %v244_v0 = vpop.xlane.xlu0 %243 }
 0x1b5   :  { %v246_v1 = vsub.f32 %v237_v49, %v244_v0 }
 0x1b7   :  { %v960_v2 = vpop.eup %959  ;;  %v249_v3 = vmul.f32 1.442695, %v246_v1 }
 0x1b8   :  { %v251_v4 = vsel %vm238_vm2, %v960_v2, 0.0 }
 0x1b9   :  { %961 = vpow2.f32 %v249_v3  ;;  %252 = vadd.xlane.f32.xlu1 %v251_v4 }
 0x1bf   :  { %v962_v5 = vpop.eup %961 }
 0x1c0   :  { %v254_v6 = vsel %vm238_vm2, %v962_v5, 0.0 }
 0x1c1   :  { %255 = vadd.xlane.f32.xlu1 %v254_v6 }
 0x1c7   :  { %v402_v7 = vpop.permute.xlu0 %401 }
 0x1c8   :  { %v407_v8 = vsel %vm213_vm1, %v402_v7, 0 }
 0x1c9   :  { %416 = vmatpush.bf16.xpose.msra.mxu1 %v407_v8 }
 0x1da   :  { %399 = vrot.lane.b32.xlu1 %v207_v37, %s1003_s2 }
 0x201   :  { %v316_v35 = vpop.xlane.xlu2 %315 }
 0x202   :  { %v320_v37 = vsub.f32 %v1195_v55, %v316_v35 }
 0x204   :  { %v322_v39 = vmul.f32 1.442695, %v320_v37 }
 0x209   :  { %v319_v58 = vpop.xlane.xlu0 %318 }
 0x20a   :  { %v321_v61 = vsub.f32 %v1200_v59, %v319_v58  ;;  %v201_v58 = vld [vmem:[%s1359_s10 + $0x8] sm:$0xf] }
 0x20c   :  { %v324_v62 = vmul.f32 1.442695, %v321_v61 }
 0x22c   :  { %v253_v23 = vpop.xlane.xlu1 %252 }
 0x22d   :  { %963 = vrcp.f32 %v253_v23 }
 0x233   :  { %v964_v25 = vpop.eup %963 }
 0x234   :  { %v256_v24 = vpop.xlane.xlu1 %255  ;;  %v259_v27 = vmul.f32 %v964_v25, %v960_v2 }
 0x235   :  { %965 = vrcp.f32 %v256_v24 }
 0x236   :  { %967 = vpow2.f32 %v322_v39 }
 0x23b   :  { %v966_v26 = vpop.eup %965 }
 0x23c   :  { %v260_v28 = vmul.f32 %v966_v26, %v962_v5  ;;  %v968_v48 = vpop.eup %967 }
 0x23d   :  { %v326_v50 = vsel %vm238_vm2, %v968_v48, 0.0 }
 0x23e   :  { %v261_v30 = vpack.c.bf16 %v260_v28, %v259_v27 }
 0x240   :  { %884 = vmatmul.msk.bf16.vlgmr.msrb.gmra.mxu0 %vm238_vm2, %v261_v30 }
 0x241   :  { %510 = vmatpush.bf16.xpose.msrb.mxu0 %v501_v31 }
 0x24c   :  { %v400_v32 = vpop.permute.xlu1 %399 }
 0x24d   :  { %889 = vmatmul.msk.bf16.vlgmr.msra.gmra.mxu1 %vm213_vm1, %v400_v32  ;;  %v200_v32 = vld [vmem:[%s1359_s10 + $0x4] sm:$0xf] }
 0x2bd   :  { %v280_v34 = vpop.f32.mrf.mxu0 }
 0x2c5   :  { %v282_v36 = vpop.f32.mrf.mxu0 }
 0x2c6   :  { %v285_v38 = vpack.c.bf16 %v282_v36, %v280_v34 }
 0x2c8   :  { %888 = vmatmul.msk.bf16.vlgmr.msra.gmra.mxu0 %vm213_vm1, %v285_v38 }
 0x2ca   :  { %v418_v40 = vpop.f32.mrf.mxu1 }
 0x2cb   :  { %v423_v41 = vmul.f32 0.35355338, %v418_v40 }
 0x2cd   :  { %v425_v43 = vadd.f32 %v423_v41, %v1175_v42 }
 0x2cf   :  { %v427_v44 = vsel %vm238_vm2, %v425_v43, -inf }
 0x2d0   :  { %428 = vmax.xlane.f32.xlu1 %v427_v44 }
 0x2d2   :  { %v420_v45 = vpop.f32.mrf.mxu1 }
 0x2d3   :  { %v424_v46 = vmul.f32 0.35355338, %v420_v45 }
 0x2d5   :  { %v426_v49 = vadd.f32 %v424_v46, %v1182_v47 }
 0x2d7   :  { %v430_v51 = vsel %vm238_vm2, %v426_v49, -inf }
 0x2d8   :  { %892 = vmatmul.msk.bf16.vlgmr.msrb.gmra.mxu0 %vm213_vm1, %v494_v33  ;;  %327 = vadd.xlane.f32.xlu1 %v326_v50  ;;  %v363_v33 = vsel %vm361_vm3, %v200_v32, 0 }
 0x2d9   :  { %431 = vmax.xlane.f32.xlu2 %v430_v51  ;;  %372 = vmatpush.bf16.msrb.mxu3 %v363_v33 }
 0x343   :  { %v429_v52 = vpop.xlane.xlu1 %428 }
 0x344   :  { %v433_v53 = vsub.f32 %v425_v43, %v429_v52 }
 0x345   :  { %v1229_v54 = vpop.f32.mrf.mxu0 }
 0x346   :  { %v435_v55 = vmul.f32 1.442695, %v433_v53 }
 0x348   :  { %969 = vpow2.f32 %v435_v55  ;;  %v202_v55 = vld [vmem:[%s1359_s10 + $0xc] sm:$0xf] }
 0x349   :  { %971 = vpow2.f32 %v324_v62 }
 0x34b   :  { %v328_v17 = vpop.xlane.xlu1 %327 }
 0x34c   :  { %v432_v0 = vpop.xlane.xlu2 %431 }
 0x34d   :  { %v1231_v56 = vpop.f32.mrf.mxu0  ;;  %v434_v3 = vsub.f32 %v426_v49, %v432_v0 }
 0x34e   :  { %v1233_v57 = vpop.eup %969 }
 0x34f   :  { %v439_v60 = vsel %vm238_vm2, %v1233_v57, 0.0  ;;  %v437_v5 = vmul.f32 1.442695, %v434_v3  ;;  %v972_v8 = vpop.eup %971 }
 0x350   :  { %440 = vadd.xlane.f32.xlu1 %v439_v60  ;;  %v329_v10 = vsel %vm238_vm2, %v972_v8, 0.0  ;;  %v475_v60 = vsel %vm361_vm3, %v201_v58, 0  ;;  %v952_v58 = vld [vmem:[%s1361_s12] ss:$0 sm:$0xff] }
 0x351   :  { %973 = vpow2.f32 %v437_v5  ;;  %484 = vmatpush.bf16.msra.mxu3 %v475_v60 }
 0x355   :  { %v512_v63 = vpop.f32.mrf.mxu0 }
 0x356   :  { %v517_v1 = vmul.f32 0.35355338, %v512_v63 }
 0x357   :  { %v974_v11 = vpop.eup %973 }
 0x358   :  { %v519_v2 = vadd.f32 %v517_v1, %v1175_v42  ;;  %v442_v42 = vsel %vm238_vm2, %v974_v11, 0.0 }
 0x35a   :  { %v521_v4 = vsel %vm238_vm2, %v519_v2, -inf }
 0x35b   :  { %522 = vmax.xlane.f32.xlu0 %v521_v4 }
 0x35d   :  { %v514_v6 = vpop.f32.mrf.mxu0 }
 0x35e   :  { %v518_v7 = vmul.f32 0.35355338, %v514_v6 }
 0x360   :  { %v520_v9 = vadd.f32 %v518_v7, %v1182_v47 }
 0x362   :  { %v524_v59 = vsel %vm238_vm2, %v520_v9, -inf }
 0x363   :  { %525 = vmax.xlane.f32.xlu2 %v524_v59  ;;  %330 = vadd.xlane.f32.xlu0 %v329_v10 }
 0x36b   :  { %443 = vadd.xlane.f32.xlu0 %v442_v42 }
 0x37b   :  { %337 = vrot.lane.b32.xlu2 %v1211_v20, %s1001_s27  ;;  %s1392_s27 = sld [smem:[#allocation9_spill]] }
 0x3c3   :  { %v441_v35 = vpop.xlane.xlu1 %440 }
 0x3ce   :  { %v523_v12 = vpop.xlane.xlu0 %522 }
 0x3cf   :  { %v527_v13 = vsub.f32 %v519_v2, %v523_v12 }
 0x3d1   :  { %v529_v16 = vmul.f32 1.442695, %v527_v13 }
 0x3d3   :  { %975 = vpow2.f32 %v529_v16 }
 0x3d4   :  { %977 = vrcp.f32 %v328_v17 }
 0x3d6   :  { %v526_v47 = vpop.xlane.xlu2 %525  ;;  %v331_v18 = vpop.xlane.xlu0 %330 }
 0x3d7   :  { %v528_v19 = vsub.f32 %v520_v9, %v526_v47  ;;  %979 = vrcp.f32 %v331_v18  ;;  %v951_v9 = vld [vmem:[%s1360_s11] ss:$0 sm:$0xff] }
 0x3d9   :  { %v976_v21 = vpop.eup %975  ;;  %v531_v22 = vmul.f32 1.442695, %v528_v19 }
 0x3da   :  { %v533_v23 = vsel %vm238_vm2, %v976_v21, 0.0  ;;  %v978_v24 = vpop.eup %977 }
 0x3db   :  { %981 = vpow2.f32 %v531_v22  ;;  %534 = vadd.xlane.f32.xlu1 %v533_v23  ;;  %v334_v26 = vmul.f32 %v978_v24, %v968_v48 }
 0x3dd   :  { %v980_v25 = vpop.eup %979 }
 0x3de   :  { %v335_v27 = vmul.f32 %v980_v25, %v972_v8  ;;  %v338_v28 = vpop.permute.xlu2 %337  ;;  %v444_v34 = vpop.xlane.xlu0 %443 }
 0x3df   :  { %350 = vmatpush.bf16.msrb.mxu2 %v338_v28  ;;  %983 = vrcp.f32 %v444_v34 }
 0x3e0   :  { %v336_v29 = vpack.c.bf16 %v335_v27, %v334_v26  ;;  %985 = vrcp.f32 %v441_v35  ;;  %v937_v35 = vld [vmem:[%s1364_s16 + $0x8] sm:$0xff] }
 0x3e1   :  { %v982_v30 = vpop.eup %981 }
 0x3e2   :  { %886 = vmatmul.msk.bf16.vlgmr.msrb.gmra.mxu2 %vm238_vm2, %v336_v29  ;;  %v536_v31 = vsel %vm238_vm2, %v982_v30, 0.0 }
 0x3e3   :  { %537 = vadd.xlane.f32.xlu0 %v536_v31 }
 0x3e5   :  { %v984_v38 = vpop.eup %983 }
 0x3e6   :  { %v986_v39 = vpop.eup %985  ;;  %v448_v41 = vmul.f32 %v984_v38, %v974_v11 }
 0x3e7   :  { %v447_v44 = vmul.f32 %v986_v39, %v1233_v57  ;;  %v569_v57 = vsel %vm361_vm3, %v202_v55, 0  ;;  %v936_v39 = vld [vmem:[%s1364_s16] sm:$0xff]  ;;  %vm849_vm3 = vcmask 48128  }
 0x3e9   :  { %v449_v48 = vpack.c.bf16 %v448_v41, %v447_v44 }
 0x3f4   :  { %450 = vrot.lane.b32.xlu1 %v1211_v20, %s1003_s2 }
 0x3f7   :  { %544 = vrot.lane.b32.xlu0 %v1211_v20, %s1002_s1 }
 0x44e   :  { %v535_v37 = vpop.xlane.xlu1 %534 }
 0x456   :  { %v538_v36 = vpop.xlane.xlu0 %537 }
 0x457   :  { %987 = vrcp.f32 %v538_v36 }
 0x458   :  { %989 = vrcp.f32 %v535_v37 }
 0x45d   :  { %v988_v40 = vpop.eup %987 }
 0x45e   :  { %v990_v43 = vpop.eup %989  ;;  %v542_v46 = vmul.f32 %v988_v40, %v982_v30 }
 0x45f   :  { %v541_v49 = vmul.f32 %v990_v43, %v976_v21  ;;  %v1004_v21 = vmov 32.0  }
 0x460   :  { %991 = vrcp.f32 %v1004_v21 }
 0x461   :  { %v543_v51 = vpack.c.bf16 %v542_v46, %v541_v49 }
 0x465   :  { %v352_v20 = vpop.f32.mrf.mxu2 }
 0x466   :  { %v451_v45 = vpop.permute.xlu1 %450  ;;  %v992_v22 = vpop.eup %991 }
 0x467   :  { %463 = vmatpush.bf16.msra.mxu2 %v451_v45  ;;  %v604_v23 = vmul.f32 32.0, %v992_v22  ;;  %vm608_vm4 = vweird.f32 %v992_v22 }
 0x469   :  { %v545_v50 = vpop.permute.xlu0 %544 }
 0x46a   :  { %890 = vmatmul.msk.bf16.vlgmr.msra.gmra.mxu2 %vm238_vm2, %v449_v48  ;;  %557 = vmatpush.bf16.msrb.mxu1 %v545_v50 }
 0x46b   :  { %578 = vmatpush.bf16.msrb.mxu2 %v569_v57 }
 0x46d   :  { %v354_v52 = vpop.f32.mrf.mxu2  ;;  %893 = vmatmul.msk.bf16.vlgmr.msrb.gmra.mxu1 %vm238_vm2, %v543_v51 }
 0x46e   :  { %v357_v53 = vpack.c.bf16 %v354_v52, %v352_v20 }
 0x470   :  { %887 = vmatmul.msk.bf16.vlgmr.msrb.gmra.mxu3 %vm213_vm1, %v357_v53 }
 0x471   :  { %688 = vmatpush.bf16.msrb.mxu3 %v937_v35 }
 0x475   :  { %689 = vmatpush.bf16.msrb.mxu3 %v936_v39 }
 0x4ea   :  { %v559_v61 = vpop.f32.mrf.mxu1 }
 0x4ed   :  { %v465_v62 = vpop.f32.mrf.mxu2 }
 0x4f2   :  { %v561_v63 = vpop.f32.mrf.mxu1 }
 0x4f3   :  { %v564_v0 = vpack.c.bf16 %v561_v63, %v559_v61  ;;  %v374_v3 = vpop.f32.mrf.mxu3  ;;  %v953_v63 = vld [vmem:[%s1362_s13] ss:$0 sm:$0xff] }
 0x4f4   :  { %v395_v5 = vadd.f32 %v1229_v54, %v374_v3 }
 0x4f5   :  { %v467_v1 = vpop.f32.mrf.mxu2  ;;  %894 = vmatmul.msk.bf16.vlgmr.msrb.gmra.mxu2 %vm213_vm1, %v564_v0 }
 0x4f6   :  { %v470_v2 = vpack.c.bf16 %v467_v1, %v465_v62 }
 0x4f8   :  { %891 = vmatmul.msk.bf16.vlgmr.msra.gmra.mxu3 %vm213_vm1, %v470_v2 }
 0x4fb   :  { %v376_v4 = vpop.f32.mrf.mxu3 }
 0x4fc   :  { %v397_v11 = vadd.f32 %v1231_v56, %v376_v4  ;;  %v605_v56 = vsub.f32 1.0, %v604_v23 }
 0x4fe   :  { %v606_v24 = vmul.f32 %v992_v22, %v605_v56 }
 0x578   :  { %v580_v6 = vpop.f32.mrf.mxu2 }
 0x57b   :  { %v486_v7 = vpop.f32.mrf.mxu3 }
 0x57c   :  { %v491_v8 = vadd.f32 %v486_v7, %v395_v5  ;;  %v940_v7 = vld [vmem:[%s1366_s18 + $0x10] sm:$0xff] }
 0x57e   :  { %v585_v59 = vadd.f32 %v580_v6, %v491_v8  ;;  %v941_v6 = vld [vmem:[%s1366_s18 + $0x18] sm:$0xff]  ;;  %v939_v8 = vld [vmem:[%s1366_s18 + $0x8] sm:$0xff] }
 0x57f   :  { %743 = vmatpush.bf16.msra.mxu0 %v941_v6 }
 0x580   :  { %v591_v10 = vadd.f32 %v951_v9, %v585_v59  ;;  %v582_v17 = vpop.f32.mrf.mxu2 }
 0x582   :  { %v593_v42 = vadd.f32 %v591_v10, %v1150_v14  ;;  %v607_v14 = vadd.f32 %v992_v22, %v606_v24  ;;  %v954_v10 = vld [vmem:[%s1363_s17] ss:$0 sm:$0xff] }
 0x583   :  { %v488_v12 = vpop.f32.mrf.mxu3  ;;  %744 = vmatpush.bf16.msra.mxu0 %v940_v7 }
 0x584   :  { %v492_v13 = vadd.f32 %v488_v12, %v397_v11  ;;  %v597_v16 = vsel %vm105_vm0, %v593_v42, 0.0  ;;  %v1280_v25 = vsel %vm608_vm4, %v992_v22, %v607_v14 }
 0x585   :  { %598 = vadd.xlane.f32.xlu2 %v597_v16 }
 0x586   :  { %v586_v54 = vadd.f32 %v582_v17, %v492_v13 }
 0x587   :  { %745 = vmatpush.bf16.msra.mxu0 %v939_v8 }
 0x588   :  { %v592_v47 = vadd.f32 %v951_v9, %v586_v54  ;;  %v938_v9 = vld [vmem:[%s1366_s18] sm:$0xff] }
 0x589   :  { %v955_v54 = vld [vmem:[%s1392_s27] ss:$0 sm:$0xff] }
 0x58a   :  { %v594_v18 = vadd.f32 %v592_v47, %v1152_v15 }
 0x58b   :  { %746 = vmatpush.bf16.msra.mxu0 %v938_v9 }
 0x58c   :  { %v600_v19 = vsel %vm105_vm0, %v594_v18, 0.0 }
 0x58d   :  { %601 = vadd.xlane.f32.xlu0 %v600_v19 }
 0x5f8   :  { %v599_v26 = vpop.xlane.xlu2 %598 }
 0x5f9   :  { %v610_v27 = vmul.f32 %v1280_v25, %v599_v26 }
 0x5fb   :  { %v612_v28 = vsub.f32 %v593_v42, %v610_v27 }
 0x5fd   :  { %v614_v29 = vmul.f32 %v612_v28, %v612_v28 }
 0x5ff   :  { %v616_v15 = vsel %vm105_vm0, %v614_v29, 0.0 }
 0x600   :  { %617 = vadd.xlane.f32.xlu1 %v616_v15  ;;  %v602_v30 = vpop.xlane.xlu0 %601 }
 0x601   :  { %v611_v31 = vmul.f32 %v1280_v25, %v602_v30 }
 0x603   :  { %v613_v32 = vsub.f32 %v594_v18, %v611_v31 }
 0x605   :  { %v615_v33 = vmul.f32 %v613_v32, %v613_v32 }
 0x607   :  { %v619_v34 = vsel %vm105_vm0, %v615_v33, 0.0 }
 0x608   :  { %620 = vadd.xlane.f32.xlu2 %v619_v34  ;;  %v943_v34 = vld [vmem:[%s1370_s20 + $0x8] sm:$0xff] }
 0x609   :  { %841 = vmatpush.bf16.msra.mxu1 %v943_v34 }
 0x673   :  { %v618_v36 = vpop.xlane.xlu1 %617 }
 0x674   :  { %v622_v37 = vmul.f32 %v618_v36, %v1280_v25 }
 0x676   :  { %v624_v38 = vadd.f32 1e-05, %v622_v37 }
 0x678   :  { %993 = vrsqrt.f32 %v624_v38  ;;  %vm632_vm6 = vweird.f32 %v624_v38 }
 0x67b   :  { %v621_v40 = vpop.xlane.xlu2 %620 }
 0x67c   :  { %v623_v41 = vmul.f32 %v621_v40, %v1280_v25 }
 0x67e   :  { %v994_v20 = vpop.eup %993  ;;  %v625_v43 = vadd.f32 1e-05, %v623_v41 }
 0x67f   :  { %v627_v44 = vmul.f32 %v994_v20, %v624_v38  ;;  %vm633_vm5 = vweird.f32 %v994_v20  ;;  %v942_v38 = vld [vmem:[%s1370_s20] sm:$0xff] }
 0x680   :  { %995 = vrsqrt.f32 %v625_v43  ;;  %vm634_vm7 = vmor %vm632_vm6, %vm633_vm5  ;;  %vm642_vm9 = vweird.f32 %v625_v43  ;;  %842 = vmatpush.bf16.msra.mxu1 %v942_v38 }
 0x681   :  { %v628_v45 = vmul.f32 %v994_v20, %v627_v44 }
 0x683   :  { %v629_v46 = vmul.f32 0.5, %v628_v45 }
 0x685   :  { %v630_v48 = vsub.f32 1.5, %v629_v46 }
 0x686   :  { %v996_v49 = vpop.eup %995 }
 0x687   :  { %v631_v50 = vmul.f32 %v994_v20, %v630_v48  ;;  %v637_v51 = vmul.f32 %v996_v49, %v625_v43  ;;  %vm643_vm8 = vweird.f32 %v996_v49 }
 0x688   :  { %vm644_vm10 = vmor %vm642_vm9, %vm643_vm8 }
 0x689   :  { %v638_v52 = vmul.f32 %v996_v49, %v637_v51  ;;  %v635_v53 = vsel %vm634_vm7, %v994_v20, %v631_v50 }
 0x68a   :  { %v646_v60 = vmul.f32 %v635_v53, %v612_v28 }
 0x68b   :  { %v639_v55 = vmul.f32 0.5, %v638_v52 }
 0x68c   :  { %v651_v0 = vmul.f32 %v952_v58, %v646_v60 }
 0x68d   :  { %v640_v57 = vsub.f32 1.5, %v639_v55 }
 0x68e   :  { %v656_v3 = vadd.f32 %v953_v63, %v651_v0 }
 0x68f   :  { %v641_v61 = vmul.f32 %v996_v49, %v640_v57 }
 0x691   :  { %v645_v62 = vsel %vm644_vm10, %v996_v49, %v641_v61  ;;  %v957_v61 = vld [vmem:[%s1368_s15] ss:$0 sm:$0xff] }
 0x692   :  { %v647_v1 = vmul.f32 %v645_v62, %v613_v32 }
 0x694   :  { %v652_v2 = vmul.f32 %v952_v58, %v647_v1 }
 0x696   :  { %v657_v4 = vadd.f32 %v953_v63, %v652_v2 }
 0x698   :  { %v658_v5 = vpack.c.bf16 %v657_v4, %v656_v3 }
 0x69a   :  { %903 = vmatmul.msk.bf16.vlgmr.msrb.gmra.mxu3 %vm105_vm0, %v658_v5 }
 0x71d   :  { %v691_v59 = vpop.f32.mrf.mxu3 }
 0x71e   :  { %v692_v11 = vadd.f32 %v954_v10, %v691_v59 }
 0x720   :  { %v696_v13 = vmax.f32 %v692_v11, 0.0 }
 0x725   :  { %v693_v42 = vpop.f32.mrf.mxu3 }
 0x726   :  { %v694_v12 = vadd.f32 %v954_v10, %v693_v42 }
 0x728   :  { %v697_v16 = vmax.f32 %v694_v12, 0.0 }
 0x72a   :  { %v698_v17 = vpack.c.bf16 %v697_v16, %v696_v13 }
 0x72c   :  { %920 = vmatmul.msk.bf16.vlgmr.msra.gmra.mxu0 %vm735_vm11, %v698_v17 }
 0x7a9   :  { %v748_v47 = vpop.f32.mrf.mxu0 }
 0x7aa   :  { %v749_v18 = vadd.f32 %v955_v54, %v748_v47 }
 0x7ac   :  { %v753_v19 = vadd.f32 %v749_v18, %v656_v3 }
 0x7ae   :  { %v757_v21 = vsel %vm105_vm0, %v753_v19, 0.0 }
 0x7af   :  { %758 = vadd.xlane.f32.xlu2 %v757_v21 }
 0x7b1   :  { %v750_v22 = vpop.f32.mrf.mxu0 }
 0x7b2   :  { %v751_v23 = vadd.f32 %v955_v54, %v750_v22 }
 0x7b4   :  { %v754_v56 = vadd.f32 %v751_v23, %v657_v4  ;;  %v958_v4 = vld [vmem:[%s1369_s21] ss:$0 sm:$0xff] }
 0x7b6   :  { %v760_v24 = vsel %vm105_vm0, %v754_v56, 0.0 }
 0x7b7   :  { %761 = vadd.xlane.f32.xlu2 %v760_v24 }
 0x822   :  { %v759_v14 = vpop.xlane.xlu2 %758 }
 0x823   :  { %v763_v26 = vmul.f32 %v759_v14, %v1280_v25 }
 0x825   :  { %v765_v27 = vsub.f32 %v753_v19, %v763_v26 }
 0x827   :  { %v767_v28 = vmul.f32 %v765_v27, %v765_v27 }
 0x829   :  { %v769_v29 = vsel %vm105_vm0, %v767_v28, 0.0 }
 0x82a   :  { %770 = vadd.xlane.f32.xlu0 %v769_v29  ;;  %v762_v15 = vpop.xlane.xlu2 %761 }
 0x82b   :  { %v764_v30 = vmul.f32 %v762_v15, %v1280_v25 }
 0x82d   :  { %v766_v31 = vsub.f32 %v754_v56, %v764_v30 }
 0x82f   :  { %v768_v32 = vmul.f32 %v766_v31, %v766_v31 }
 0x831   :  { %v772_v33 = vsel %vm105_vm0, %v768_v32, 0.0 }
 0x832   :  { %773 = vadd.xlane.f32.xlu1 %v772_v33 }
 0x89d   :  { %v771_v35 = vpop.xlane.xlu0 %770 }
 0x89e   :  { %v775_v36 = vmul.f32 %v771_v35, %v1280_v25 }
 0x8a0   :  { %v777_v37 = vadd.f32 1e-05, %v775_v36 }
 0x8a2   :  { %997 = vrsqrt.f32 %v777_v37  ;;  %vm785_vm13 = vweird.f32 %v777_v37 }
 0x8a5   :  { %v774_v39 = vpop.xlane.xlu1 %773 }
 0x8a6   :  { %v776_v40 = vmul.f32 %v774_v39, %v1280_v25  ;;  %v956_v25 = vld [vmem:[%s1367_s14] ss:$0 sm:$0xff] }
 0x8a8   :  { %v998_v41 = vpop.eup %997  ;;  %v778_v20 = vadd.f32 1e-05, %v776_v40 }
 0x8a9   :  { %v780_v43 = vmul.f32 %v998_v41, %v777_v37  ;;  %vm786_vm12 = vweird.f32 %v998_v41 }
 0x8aa   :  { %999 = vrsqrt.f32 %v778_v20  ;;  %vm787_vm14 = vmor %vm785_vm13, %vm786_vm12  ;;  %vm795_vm1 = vweird.f32 %v778_v20 }
 0x8ab   :  { %v781_v44 = vmul.f32 %v998_v41, %v780_v43 }
 0x8ad   :  { %v782_v45 = vmul.f32 0.5, %v781_v44 }
 0x8af   :  { %v783_v46 = vsub.f32 1.5, %v782_v45 }
 0x8b0   :  { %v1000_v48 = vpop.eup %999 }
 0x8b1   :  { %v784_v49 = vmul.f32 %v998_v41, %v783_v46  ;;  %v790_v50 = vmul.f32 %v1000_v48, %v778_v20  ;;  %vm796_vm15 = vweird.f32 %v1000_v48 }
 0x8b2   :  { %vm797_vm2 = vmor %vm795_vm1, %vm796_vm15 }
 0x8b3   :  { %v791_v51 = vmul.f32 %v1000_v48, %v790_v50  ;;  %v788_v52 = vsel %vm787_vm14, %v998_v41, %v784_v49 }
 0x8b4   :  { %v799_v57 = vmul.f32 %v788_v52, %v765_v27 }
 0x8b5   :  { %v792_v53 = vmul.f32 0.5, %v791_v51 }
 0x8b6   :  { %v804_v62 = vmul.f32 %v956_v25, %v799_v57 }
 0x8b7   :  { %v793_v55 = vsub.f32 1.5, %v792_v53 }
 0x8b8   :  { %v809_v1 = vadd.f32 %v957_v61, %v804_v62 }
 0x8b9   :  { %v794_v58 = vmul.f32 %v1000_v48, %v793_v55 }
 0x8bb   :  { %v798_v60 = vsel %vm797_vm2, %v1000_v48, %v794_v58 }
 0x8bc   :  { %v800_v63 = vmul.f32 %v798_v60, %v766_v31 }
 0x8be   :  { %v805_v0 = vmul.f32 %v956_v25, %v800_v63 }
 0x8c0   :  { %v810_v2 = vadd.f32 %v957_v61, %v805_v0 }
 0x8c2   :  { %v811_v3 = vpack.c.bf16 %v810_v2, %v809_v1 }
 0x8c4   :  { %929 = vmatmul.msk.bf16.vlgmr.msra.gmra.mxu1 %vm105_vm0, %v811_v3 }
 0x941   :  { %v844_v5 = vpop.f32.mrf.mxu1 }
 0x942   :  { %v845_v6 = vadd.f32 %v958_v4, %v844_v5 }
 0x944   :  { %850 = vst.msk [vmem:[%s1371_s22] sm:$0xff] %vm849_vm3, %v845_v6 }
 0x949   :  { %v846_v7 = vpop.f32.mrf.mxu1 }
 0x94a   :  { %v847_v8 = vadd.f32 %v958_v4, %v846_v7 }
 0x94c   :  { %851 = vst.msk [vmem:[%s1371_s22 + $0x8] sm:$0xff] %vm849_vm3, %v847_v8 }

</bundles_post_ra>
